<compile_context>
chip_gen: v6e
topology: v6e:2x2x1
jax: 0.10.0
libtpu: 0.0.40
codegen_flags: <defaults>
</compile_context>

<pallas_src>
import functools

import jax
import jax.numpy as jnp
from jax.experimental import pallas as pl
from jax.experimental.pallas import tpu as pltpu


def _quick_gelu(v):
    # QuickGELU: x * sigmoid(1.702 * x)
    return v * jax.nn.sigmoid(1.702 * v)


def _full_spec(shape):
    """BlockSpec covering the whole array with a constant index map (stays VMEM resident)."""
    n = len(shape)
    return pl.BlockSpec(shape, lambda b: (0,) * n)


_WEIGHT_ORDER = (
    "spec_down_w", "spec_down_b", "spec_conv_w", "spec_conv_b", "spec_up_w", "spec_up_b",
    "rgb_down_w", "rgb_down_b", "rgb_conv_w", "rgb_conv_b", "rgb_up_w", "rgb_up_b",
    "text_down_w", "text_down_b", "text_up_w", "text_up_b",
)


# ---------------------------------------------------------------------------
# ONE fused kernel: spec + rgb + text streams for a single batch element.
# ---------------------------------------------------------------------------
def _fused_kernel(x_ref, y_ref, z_ref,
                  swd, swdb, swc, swcb, swu, swub,
                  rwd, rwdb, rwc, rwcb, rwu, rwub,
                  twd, twdb, twu, twub,
                  xo_ref, yo_ref, zo_ref,
                  spec_pad, rgb_pad,
                  *, f, t, F, H, W):
    Dp = swd.shape[1]
    f32 = jnp.float32

    # --------------------------- SPEC stream ---------------------------
    # down-proj + QuickGELU
    x = x_ref[0]                                               # (Nx, 768)
    xd = _quick_gelu(jnp.dot(x, swd[...], preferred_element_type=f32) + swdb[...])

    # Halo-padded (f+2, t+2, Dp) patch grid in VMEM scratch (halo stays zero).
    spec_pad[...] = jnp.zeros(spec_pad.shape, f32)
    spec_pad[1:1 + f, 1:1 + t, :] = xd[1:, :].reshape(f, t, Dp)
    xp = spec_pad[...]

    # im2col: one (f*t, 9*Dp) @ (9*Dp, Dp) matmul instead of 9 tiny ones.
    cols = jnp.concatenate(
        [xp[kh:kh + f, kw:kw + t, :].reshape(f * t, Dp)
         for kh in range(3) for kw in range(3)], axis=-1)
    patch = jnp.dot(cols, swc[...], preferred_element_type=f32) + swcb[...]

    # CLS token only sees the center tap (kh=1, kw=1) of the 3x3 conv.
    cls_x = jnp.dot(xd[0:1, :], swc[4 * Dp:5 * Dp, :],
                    preferred_element_type=f32) + swcb[...]

    xm = _quick_gelu(jnp.concatenate([cls_x, patch], axis=0))   # (Nx, Dp)
    xo_ref[0] = (jnp.dot(xm, swu[...], preferred_element_type=f32)
                 + swub[...]).astype(xo_ref.dtype)

    # ---------------------------- RGB stream ---------------------------
    y = y_ref[0]                                               # (Ny, 768)
    yd = _quick_gelu(jnp.dot(y, rwd[...], preferred_element_type=f32) + rwdb[...])

    rgb_pad[...] = jnp.zeros(rgb_pad.shape, f32)
    rgb_pad[1:1 + F, 1:1 + H, 1:1 + W, :] = yd[1:, :].reshape(F, H, W, Dp)

    # Depthwise 3x3x3 conv = 27 shifted, lane-dense VPU multiply-adds.
    wc = rwc[...]                                              # (27, Dp)
    acc = jnp.zeros((F, H, W, Dp), f32) + rwcb[...].reshape(1, 1, 1, Dp)
    for kf in range(3):
        plane = rgb_pad[kf:kf + F]                             # (F, H+2, W+2, Dp)
        for kh in range(3):
            for kw in range(3):
                tap = wc[kf * 9 + kh * 3 + kw].reshape(1, 1, 1, Dp)
                acc = acc + plane[:, kh:kh + H, kw:kw + W, :] * tap

    # CLS token through the depthwise conv == per-channel center-tap scale.
    cls_y = yd[0:1, :] * wc[13].reshape(1, Dp) + rwcb[...]

    ym = _quick_gelu(jnp.concatenate([cls_y, acc.reshape(F * H * W, Dp)], axis=0))
    yo_ref[0] = (jnp.dot(ym, rwu[...], preferred_element_type=f32)
                 + rwub[...]).astype(yo_ref.dtype)

    # --------------------------- TEXT stream ---------------------------
    z = z_ref[0]                                               # (Nz, 768)
    zd = _quick_gelu(jnp.dot(z, twd[...], preferred_element_type=f32) + twdb[...])
    zm = _quick_gelu(zd)
    zo_ref[0] = (jnp.dot(zm, twu[...], preferred_element_type=f32)
                 + twub[...]).astype(zo_ref.dtype)


def t_avel_pallas(prep, x, y, z, shapes):
    f_dim, t_dim, nF, rH, rW = shapes
    B, Nx, C = x.shape
    Ny, Nz = y.shape[1], z.shape[1]
    Dp = prep["spec_down_w"].shape[1]
    kern = functools.partial(_fused_kernel, f=f_dim, t=t_dim, F=nF, H=rH, W=rW)

    def io_spec(n):
        return pl.BlockSpec((1, n, C), lambda b: (b, 0, 0))

    return pl.pallas_call(
        kern,
        out_shape=(jax.ShapeDtypeStruct((B, Nx, C), jnp.float32),
                   jax.ShapeDtypeStruct((B, Ny, C), jnp.float32),
                   jax.ShapeDtypeStruct((B, Nz, C), jnp.float32)),
        grid=(B,),
        in_specs=[io_spec(Nx), io_spec(Ny), io_spec(Nz)]
                 + [_full_spec(prep[k].shape) for k in _WEIGHT_ORDER],
        out_specs=(io_spec(Nx), io_spec(Ny), io_spec(Nz)),
        scratch_shapes=[
            pltpu.VMEM((f_dim + 2, t_dim + 2, Dp), jnp.float32),
            pltpu.VMEM((nF + 2, rH + 2, rW + 2, Dp), jnp.float32),
        ],
        compiler_params=pltpu.CompilerParams(dimension_semantics=("parallel",)),
    )(x, y, z, *[prep[k] for k in _WEIGHT_ORDER])


@functools.partial(jax.jit, static_argnames=("shapes",))
def t_avel_forward(prep, x, y, z, shapes):
    return t_avel_pallas(prep, x, y, z, shapes)


# ---------------------------------------------------------------------------
# Parameter prep (one-time host transform): pad dim -> 128 (lane-dense),
# reshape conv weights to matmul layouts, fold output scales into up-proj.
# Zero padding is exact: padded channels carry 0 through QuickGELU and the
# padded up-projection rows are 0, so outputs match the unpadded math.
# ---------------------------------------------------------------------------
def prepare_params(params, dim, lane=128):
    dp = ((max(dim, lane) + lane - 1) // lane) * lane
    pad = dp - dim

    def pad_last(a):
        return jnp.pad(a, [(0, 0)] * (a.ndim - 1) + [(0, pad)])

    prep = {}
    # spec
    prep["spec_down_w"] = pad_last(params["spec_down_w"])                    # (768, dp)
    prep["spec_down_b"] = pad_last(params["spec_down_b"]).reshape(1, dp)
    wc = jnp.pad(params["spec_conv_w"], ((0, 0), (0, 0), (0, pad), (0, pad)))
    prep["spec_conv_w"] = wc.reshape(9 * dp, dp)                             # im2col layout
    prep["spec_conv_b"] = pad_last(params["spec_conv_b"]).reshape(1, dp)
    prep["spec_up_w"] = jnp.pad(params["spec_up_w"] * params["spec_scale"][0],
                                ((0, pad), (0, 0)))                          # (dp, 768)
    prep["spec_up_b"] = (params["spec_up_b"] * params["spec_scale"][0]).reshape(1, -1)
    # rgb
    prep["rgb_down_w"] = pad_last(params["rgb_down_w"])
    prep["rgb_down_b"] = pad_last(params["rgb_down_b"]).reshape(1, dp)
    prep["rgb_conv_w"] = pad_last(params["rgb_conv_w"]).reshape(27, dp)
    prep["rgb_conv_b"] = pad_last(params["rgb_conv_b"]).reshape(1, dp)
    prep["rgb_up_w"] = jnp.pad(params["rgb_up_w"] * params["rgb_scale"][0],
                               ((0, pad), (0, 0)))
    prep["rgb_up_b"] = (params["rgb_up_b"] * params["rgb_scale"][0]).reshape(1, -1)
    # text
    prep["text_down_w"] = pad_last(params["text_down_w"])
    prep["text_down_b"] = pad_last(params["text_down_b"]).reshape(1, dp)
    prep["text_up_w"] = jnp.pad(params["text_up_w"] * params["text_scale"][0],
                                ((0, pad), (0, 0)))
    prep["text_up_b"] = (params["text_up_b"] * params["text_scale"][0]).reshape(1, -1)
    return prep


# ---------------------------------------------------------------------------
# Pure-JAX reference (uses the ORIGINAL, unpadded parameters)
# ---------------------------------------------------------------------------
def t_avel_reference(params, x, y, z, shapes):
    qg = _quick_gelu
    f_dim, t_dim, nF, rH, rW = shapes
    B, Nx, C = x.shape
    dim = params["spec_down_w"].shape[1]

    x_down = qg(x @ params["spec_down_w"] + params["spec_down_b"])
    y_down = qg(y @ params["rgb_down_w"] + params["rgb_down_b"])
    z_down = qg(z @ params["text_down_w"] + params["text_down_b"])

    xp = x_down[:, 1:].reshape(B, f_dim, t_dim, dim)
    xp = jax.lax.conv_general_dilated(xp, params["spec_conv_w"], (1, 1), "SAME",
                                      dimension_numbers=("NHWC", "HWIO", "NHWC"))
    xp = xp + params["spec_conv_b"]
    xc = x_down[:, :1] @ params["spec_conv_w"][1, 1] + params["spec_conv_b"]
    x_ = qg(jnp.concatenate([xc, xp.reshape(B, f_dim * t_dim, dim)], axis=1))

    yp = y_down[:, 1:].reshape(B, nF, rH, rW, dim)
    w5 = params["rgb_conv_w"].reshape(3, 3, 3, 1, dim)
    yp = jax.lax.conv_general_dilated(yp, w5, (1, 1, 1), "SAME",
                                      dimension_numbers=("NDHWC", "DHWIO", "NDHWC"),
                                      feature_group_count=dim)
    yp = yp + params["rgb_conv_b"]
    yc = y_down[:, :1] * params["rgb_conv_w"][1, 1, 1] + params["rgb_conv_b"]
    y_ = qg(jnp.concatenate([yc, yp.reshape(B, nF * rH * rW, dim)], axis=1))

    z_ = qg(z_down)
    x_up = (x_ @ params["spec_up_w"] + params["spec_up_b"]) * params["spec_scale"]
    y_up = (y_ @ params["rgb_up_w"] + params["rgb_up_b"]) * params["rgb_scale"]
    z_up = (z_ @ params["text_up_w"] + params["text_up_b"]) * params["text_scale"]
    return x_up, y_up, z_up


# ---------------------------------------------------------------------------
# Deterministic parameter init (xavier-uniform weights, zero biases),
# matching shapes implied by T_AVeL.__init__ (stored in math-friendly layouts).
# ---------------------------------------------------------------------------
def init_params(key, dim, C=768):
    keys = jax.random.split(key, 8)

    def xavier(k, shape, fan_in, fan_out):
        bound = (6.0 / (fan_in + fan_out)) ** 0.5
        return jax.random.uniform(k, shape, jnp.float32, -bound, bound)

    return {
        "spec_down_w": xavier(keys[0], (C, dim), C, dim),
        "spec_down_b": jnp.zeros((dim,), jnp.float32),
        "spec_up_w": xavier(keys[1], (dim, C), dim, C),
        "spec_up_b": jnp.zeros((C,), jnp.float32),
        # Conv2d weight stored as (kh, kw, in, out)  <->  torch (out, in, kh, kw)
        "spec_conv_w": xavier(keys[2], (3, 3, dim, dim), dim * 9, dim * 9),
        "spec_conv_b": jnp.zeros((dim,), jnp.float32),
        "rgb_down_w": xavier(keys[3], (C, dim), C, dim),
        "rgb_down_b": jnp.zeros((dim,), jnp.float32),
        "rgb_up_w": xavier(keys[4], (dim, C), dim, C),
        "rgb_up_b": jnp.zeros((C,), jnp.float32),
        # depthwise Conv3d weight stored as (kf, kh, kw, dim) <-> torch (dim,1,3,3,3)
        "rgb_conv_w": xavier(keys[5], (3, 3, 3, dim), 27, dim * 27),
        "rgb_conv_b": jnp.zeros((dim,), jnp.float32),
        "text_down_w": xavier(keys[6], (C, dim), C, dim),
        "text_down_b": jnp.zeros((dim,), jnp.float32),
        "text_up_w": xavier(keys[7], (dim, C), dim, C),
        "text_up_b": jnp.zeros((C,), jnp.float32),
        # NOTE: PyTorch __init__ initializes these scales to 0 (which would zero
        # every output).  Use nonzero values so the example exercises the datapath.
        "spec_scale": jnp.asarray([0.5], jnp.float32),
        "rgb_scale": jnp.asarray([-0.7], jnp.float32),
        "text_scale": jnp.asarray([1.3], jnp.float32),
    }


if __name__ == "__main__":
    key = jax.random.PRNGKey(0)
    dim, C, B = 32, 768, 2
    f_dim, t_dim = 4, 4          # spec tokens = 1 + 16 = 17
    nF, rH, rW = 2, 4, 4         # rgb tokens  = 1 + 32 = 33
    Nz = 8                       # text tokens
    shapes = (f_dim, t_dim, nF, rH, rW)

    kx, ky, kz, kp = jax.random.split(key, 4)
    x = jax.random.normal(kx, (B, 1 + f_dim * t_dim, C), jnp.float32)
    y = jax.random.normal(ky, (B, 1 + nF * rH * rW, C), jnp.float32)
    z = jax.random.normal(kz, (B, Nz, C), jnp.float32)
    params = init_params(kp, dim, C)
    prep = prepare_params(params, dim)

    outs = jax.block_until_ready(t_avel_forward(prep, x, y, z, shapes))
    refs = jax.block_until_ready(t_avel_reference(params, x, y, z, shapes))
    for o, r in zip(outs, refs):
        assert o.shape == r.shape, (o.shape, r.shape)
        err = float(jnp.max(jnp.abs(o - r)))
        assert err < 2e-2, err
    print("KERNEL_OK")
</pallas_src>

<mosaic_0001>
module attributes {stable_mosaic.version = 11 : i64} {
  func.func @_fused_kernel(%arg0: i32, %arg1: memref<1x17x768xf32, #tpu.memory_space<vmem>>, %arg2: memref<1x33x768xf32, #tpu.memory_space<vmem>>, %arg3: memref<1x8x768xf32, #tpu.memory_space<vmem>>, %arg4: memref<768x128xf32, #tpu.memory_space<vmem>>, %arg5: memref<1x128xf32, #tpu.memory_space<vmem>>, %arg6: memref<1152x128xf32, #tpu.memory_space<vmem>>, %arg7: memref<1x128xf32, #tpu.memory_space<vmem>>, %arg8: memref<128x768xf32, #tpu.memory_space<vmem>>, %arg9: memref<1x768xf32, #tpu.memory_space<vmem>>, %arg10: memref<768x128xf32, #tpu.memory_space<vmem>>, %arg11: memref<1x128xf32, #tpu.memory_space<vmem>>, %arg12: memref<27x128xf32, #tpu.memory_space<vmem>>, %arg13: memref<1x128xf32, #tpu.memory_space<vmem>>, %arg14: memref<128x768xf32, #tpu.memory_space<vmem>>, %arg15: memref<1x768xf32, #tpu.memory_space<vmem>>, %arg16: memref<768x128xf32, #tpu.memory_space<vmem>>, %arg17: memref<1x128xf32, #tpu.memory_space<vmem>>, %arg18: memref<128x768xf32, #tpu.memory_space<vmem>>, %arg19: memref<1x768xf32, #tpu.memory_space<vmem>>, %arg20: memref<1x17x768xf32, #tpu.memory_space<vmem>>, %arg21: memref<1x33x768xf32, #tpu.memory_space<vmem>>, %arg22: memref<1x8x768xf32, #tpu.memory_space<vmem>>, %arg23: memref<6x6x128xf32, #tpu.memory_space<vmem>>, %arg24: memref<4x6x6x128xf32, #tpu.memory_space<vmem>>) attributes {dimension_semantics = [#tpu.dimension_semantics<parallel>], iteration_bounds = array<i64: 2>, scalar_prefetch = 0 : i64, scratch_operands = 2 : i64, tpu.core_type = #tpu.core_type<tc>, window_params = [{transform_indices = @transform_0, window_bounds = array<i64: 1, 17, 768>}, {transform_indices = @transform_1, window_bounds = array<i64: 1, 33, 768>}, {transform_indices = @transform_2, window_bounds = array<i64: 1, 8, 768>}, {pipeline_mode = #tpu.pipeline_mode<synchronous>, transform_indices = @transform_3, window_bounds = array<i64: 768, 128>}, {pipeline_mode = #tpu.pipeline_mode<synchronous>, transform_indices = @transform_4, window_bounds = array<i64: 1, 128>}, {pipeline_mode = #tpu.pipeline_mode<synchronous>, transform_indices = @transform_5, window_bounds = array<i64: 1152, 128>}, {pipeline_mode = #tpu.pipeline_mode<synchronous>, transform_indices = @transform_6, window_bounds = array<i64: 1, 128>}, {pipeline_mode = #tpu.pipeline_mode<synchronous>, transform_indices = @transform_7, window_bounds = array<i64: 128, 768>}, {pipeline_mode = #tpu.pipeline_mode<synchronous>, transform_indices = @transform_8, window_bounds = array<i64: 1, 768>}, {pipeline_mode = #tpu.pipeline_mode<synchronous>, transform_indices = @transform_9, window_bounds = array<i64: 768, 128>}, {pipeline_mode = #tpu.pipeline_mode<synchronous>, transform_indices = @transform_10, window_bounds = array<i64: 1, 128>}, {pipeline_mode = #tpu.pipeline_mode<synchronous>, transform_indices = @transform_11, window_bounds = array<i64: 27, 128>}, {pipeline_mode = #tpu.pipeline_mode<synchronous>, transform_indices = @transform_12, window_bounds = array<i64: 1, 128>}, {pipeline_mode = #tpu.pipeline_mode<synchronous>, transform_indices = @transform_13, window_bounds = array<i64: 128, 768>}, {pipeline_mode = #tpu.pipeline_mode<synchronous>, transform_indices = @transform_14, window_bounds = array<i64: 1, 768>}, {pipeline_mode = #tpu.pipeline_mode<synchronous>, transform_indices = @transform_15, window_bounds = array<i64: 768, 128>}, {pipeline_mode = #tpu.pipeline_mode<synchronous>, transform_indices = @transform_16, window_bounds = array<i64: 1, 128>}, {pipeline_mode = #tpu.pipeline_mode<synchronous>, transform_indices = @transform_17, window_bounds = array<i64: 128, 768>}, {pipeline_mode = #tpu.pipeline_mode<synchronous>, transform_indices = @transform_18, window_bounds = array<i64: 1, 768>}, {transform_indices = @transform_19, window_bounds = array<i64: 1, 17, 768>}, {transform_indices = @transform_20, window_bounds = array<i64: 1, 33, 768>}, {transform_indices = @transform_21, window_bounds = array<i64: 1, 8, 768>}]} {
    %c0 = arith.constant 0 : index
    %c0_0 = arith.constant 0 : index
    %c0_1 = arith.constant 0 : index
    %0 = vector.load %arg1[%c0, %c0_0, %c0_1] : memref<1x17x768xf32, #tpu.memory_space<vmem>>, vector<1x17x768xf32>
    %1 = vector.shape_cast %0 : vector<1x17x768xf32> to vector<17x768xf32>
    %c0_2 = arith.constant 0 : index
    %c0_3 = arith.constant 0 : index
    %2 = vector.load %arg4[%c0_2, %c0_3] : memref<768x128xf32, #tpu.memory_space<vmem>>, vector<768x128xf32>
    %cst = arith.constant dense<0.000000e+00> : vector<17x128xf32>
    %3 = tpu.matmul %1, %2, %cst {dimension_numbers = #tpu.dot_dimension_numbers<[1], [0], [0], [1], [0, 0, 1, 1], [], []>} : vector<17x768xf32>, vector<768x128xf32>, vector<17x128xf32> -> vector<17x128xf32>
    %c0_4 = arith.constant 0 : index
    %c0_5 = arith.constant 0 : index
    %4 = vector.load %arg5[%c0_4, %c0_5] : memref<1x128xf32, #tpu.memory_space<vmem>>, vector<1x128xf32>
    %5 = vector.broadcast %4 : vector<1x128xf32> to vector<17x128xf32>
    %6 = arith.addf %3, %5 : vector<17x128xf32>
    %cst_6 = arith.constant 1.702000e+00 : f32
    %7 = vector.broadcast %cst_6 : f32 to vector<17x128xf32>
    %8 = arith.mulf %7, %6 : vector<17x128xf32>
    %9 = arith.negf %8 : vector<17x128xf32>
    %10 = math.exp %9 : vector<17x128xf32>
    %cst_7 = arith.constant 1.000000e+00 : f32
    %11 = vector.broadcast %cst_7 : f32 to vector<17x128xf32>
    %12 = arith.addf %11, %10 : vector<17x128xf32>
    %13 = arith.divf %11, %12 : vector<17x128xf32>
    %14 = arith.mulf %6, %13 : vector<17x128xf32>
    %cst_8 = arith.constant 0.000000e+00 : f32
    %15 = vector.broadcast %cst_8 : f32 to vector<6x6x128xf32>
    %c0_9 = arith.constant 0 : index
    %c0_10 = arith.constant 0 : index
    %c0_11 = arith.constant 0 : index
    %16 = vector.load %arg23[%c0_9, %c0_10, %c0_11] : memref<6x6x128xf32, #tpu.memory_space<vmem>>, vector<6x6x128xf32>
    tpu.vector_store %arg23[%c0_9, %c0_10, %c0_11], %15 {strides = array<i32>} : memref<6x6x128xf32, #tpu.memory_space<vmem>>, vector<6x6x128xf32>,
    %17 = vector.extract_strided_slice %14 {offsets = [1, 0], sizes = [16, 128], strides = [1, 1]} : vector<17x128xf32> to vector<16x128xf32>
    %18 = vector.shape_cast %17 : vector<16x128xf32> to vector<4x4x128xf32>
    %c1 = arith.constant 1 : index
    %c1_12 = arith.constant 1 : index
    %c0_13 = arith.constant 0 : index
    %19 = vector.load %arg23[%c1, %c1_12, %c0_13] : memref<6x6x128xf32, #tpu.memory_space<vmem>>, vector<4x4x128xf32>
    tpu.vector_store %arg23[%c1, %c1_12, %c0_13], %18 {strides = array<i32>} : memref<6x6x128xf32, #tpu.memory_space<vmem>>, vector<4x4x128xf32>,
    %c0_14 = arith.constant 0 : index
    %c0_15 = arith.constant 0 : index
    %c0_16 = arith.constant 0 : index
    %20 = vector.load %arg23[%c0_14, %c0_15, %c0_16] : memref<6x6x128xf32, #tpu.memory_space<vmem>>, vector<6x6x128xf32>
    %21 = vector.extract_strided_slice %20 {offsets = [0, 0, 0], sizes = [4, 4, 128], strides = [1, 1, 1]} : vector<6x6x128xf32> to vector<4x4x128xf32>
    %22 = vector.shape_cast %21 : vector<4x4x128xf32> to vector<16x128xf32>
    %23 = vector.extract_strided_slice %20 {offsets = [0, 1, 0], sizes = [4, 4, 128], strides = [1, 1, 1]} : vector<6x6x128xf32> to vector<4x4x128xf32>
    %24 = vector.shape_cast %23 : vector<4x4x128xf32> to vector<16x128xf32>
    %25 = vector.extract_strided_slice %20 {offsets = [0, 2, 0], sizes = [4, 4, 128], strides = [1, 1, 1]} : vector<6x6x128xf32> to vector<4x4x128xf32>
    %26 = vector.shape_cast %25 : vector<4x4x128xf32> to vector<16x128xf32>
    %27 = vector.extract_strided_slice %20 {offsets = [1, 0, 0], sizes = [4, 4, 128], strides = [1, 1, 1]} : vector<6x6x128xf32> to vector<4x4x128xf32>
    %28 = vector.shape_cast %27 : vector<4x4x128xf32> to vector<16x128xf32>
    %29 = vector.extract_strided_slice %20 {offsets = [1, 1, 0], sizes = [4, 4, 128], strides = [1, 1, 1]} : vector<6x6x128xf32> to vector<4x4x128xf32>
    %30 = vector.shape_cast %29 : vector<4x4x128xf32> to vector<16x128xf32>
    %31 = vector.extract_strided_slice %20 {offsets = [1, 2, 0], sizes = [4, 4, 128], strides = [1, 1, 1]} : vector<6x6x128xf32> to vector<4x4x128xf32>
    %32 = vector.shape_cast %31 : vector<4x4x128xf32> to vector<16x128xf32>
    %33 = vector.extract_strided_slice %20 {offsets = [2, 0, 0], sizes = [4, 4, 128], strides = [1, 1, 1]} : vector<6x6x128xf32> to vector<4x4x128xf32>
    %34 = vector.shape_cast %33 : vector<4x4x128xf32> to vector<16x128xf32>
    %35 = vector.extract_strided_slice %20 {offsets = [2, 1, 0], sizes = [4, 4, 128], strides = [1, 1, 1]} : vector<6x6x128xf32> to vector<4x4x128xf32>
    %36 = vector.shape_cast %35 : vector<4x4x128xf32> to vector<16x128xf32>
    %37 = vector.extract_strided_slice %20 {offsets = [2, 2, 0], sizes = [4, 4, 128], strides = [1, 1, 1]} : vector<6x6x128xf32> to vector<4x4x128xf32>
    %38 = vector.shape_cast %37 : vector<4x4x128xf32> to vector<16x128xf32>
    %39 = tpu.concatenate %22, %24, %26, %28, %30, %32, %34, %36, %38 in 1 : vector<16x128xf32>, vector<16x128xf32>, vector<16x128xf32>, vector<16x128xf32>, vector<16x128xf32>, vector<16x128xf32>, vector<16x128xf32>, vector<16x128xf32>, vector<16x128xf32> -> vector<16x1152xf32>
    %c0_17 = arith.constant 0 : index
    %c0_18 = arith.constant 0 : index
    %40 = vector.load %arg6[%c0_17, %c0_18] : memref<1152x128xf32, #tpu.memory_space<vmem>>, vector<1152x128xf32>
    %cst_19 = arith.constant dense<0.000000e+00> : vector<16x128xf32>
    %41 = tpu.matmul %39, %40, %cst_19 {dimension_numbers = #tpu.dot_dimension_numbers<[1], [0], [0], [1], [0, 0, 1, 1], [], []>} : vector<16x1152xf32>, vector<1152x128xf32>, vector<16x128xf32> -> vector<16x128xf32>
    %c0_20 = arith.constant 0 : index
    %c0_21 = arith.constant 0 : index
    %42 = vector.load %arg7[%c0_20, %c0_21] : memref<1x128xf32, #tpu.memory_space<vmem>>, vector<1x128xf32>
    %43 = vector.broadcast %42 : vector<1x128xf32> to vector<16x128xf32>
    %44 = arith.addf %41, %43 : vector<16x128xf32>
    %45 = vector.extract_strided_slice %14 {offsets = [0, 0], sizes = [1, 128], strides = [1, 1]} : vector<17x128xf32> to vector<1x128xf32>
    %c512 = arith.constant 512 : index
    %c0_22 = arith.constant 0 : index
    %46 = vector.load %arg6[%c512, %c0_22] : memref<1152x128xf32, #tpu.memory_space<vmem>>, vector<128x128xf32>
    %cst_23 = arith.constant dense<0.000000e+00> : vector<1x128xf32>
    %47 = tpu.matmul %45, %46, %cst_23 {dimension_numbers = #tpu.dot_dimension_numbers<[1], [0], [0], [1], [0, 0, 1, 1], [], []>} : vector<1x128xf32>, vector<128x128xf32>, vector<1x128xf32> -> vector<1x128xf32>
    %c0_24 = arith.constant 0 : index
    %c0_25 = arith.constant 0 : index
    %48 = vector.load %arg7[%c0_24, %c0_25] : memref<1x128xf32, #tpu.memory_space<vmem>>, vector<1x128xf32>
    %49 = arith.addf %47, %48 : vector<1x128xf32>
    %50 = tpu.concatenate %49, %44 in 0 : vector<1x128xf32>, vector<16x128xf32> -> vector<17x128xf32>
    %cst_26 = arith.constant 1.702000e+00 : f32
    %51 = vector.broadcast %cst_26 : f32 to vector<17x128xf32>
    %52 = arith.mulf %51, %50 : vector<17x128xf32>
    %53 = arith.negf %52 : vector<17x128xf32>
    %54 = math.exp %53 : vector<17x128xf32>
    %cst_27 = arith.constant 1.000000e+00 : f32
    %55 = vector.broadcast %cst_27 : f32 to vector<17x128xf32>
    %56 = arith.addf %55, %54 : vector<17x128xf32>
    %57 = arith.divf %55, %56 : vector<17x128xf32>
    %58 = arith.mulf %50, %57 : vector<17x128xf32>
    %c0_28 = arith.constant 0 : index
    %c0_29 = arith.constant 0 : index
    %59 = vector.load %arg8[%c0_28, %c0_29] : memref<128x768xf32, #tpu.memory_space<vmem>>, vector<128x768xf32>
    %cst_30 = arith.constant dense<0.000000e+00> : vector<17x768xf32>
    %60 = tpu.matmul %58, %59, %cst_30 {dimension_numbers = #tpu.dot_dimension_numbers<[1], [0], [0], [1], [0, 0, 1, 1], [], []>} : vector<17x128xf32>, vector<128x768xf32>, vector<17x768xf32> -> vector<17x768xf32>
    %c0_31 = arith.constant 0 : index
    %c0_32 = arith.constant 0 : index
    %61 = vector.load %arg9[%c0_31, %c0_32] : memref<1x768xf32, #tpu.memory_space<vmem>>, vector<1x768xf32>
    %62 = vector.broadcast %61 : vector<1x768xf32> to vector<17x768xf32>
    %63 = arith.addf %60, %62 : vector<17x768xf32>
    %c0_33 = arith.constant 0 : index
    %c0_34 = arith.constant 0 : index
    %c0_35 = arith.constant 0 : index
    %64 = vector.load %arg20[%c0_33, %c0_34, %c0_35] : memref<1x17x768xf32, #tpu.memory_space<vmem>>, vector<1x17x768xf32>
    %65 = vector.shape_cast %64 : vector<1x17x768xf32> to vector<17x768xf32>
    %66 = vector.shape_cast %63 : vector<17x768xf32> to vector<1x17x768xf32>
    tpu.vector_store %arg20[%c0_33, %c0_34, %c0_35], %66 {strides = array<i32>} : memref<1x17x768xf32, #tpu.memory_space<vmem>>, vector<1x17x768xf32>,
    %c0_36 = arith.constant 0 : index
    %c0_37 = arith.constant 0 : index
    %c0_38 = arith.constant 0 : index
    %67 = vector.load %arg2[%c0_36, %c0_37, %c0_38] : memref<1x33x768xf32, #tpu.memory_space<vmem>>, vector<1x33x768xf32>
    %68 = vector.shape_cast %67 : vector<1x33x768xf32> to vector<33x768xf32>
    %c0_39 = arith.constant 0 : index
    %c0_40 = arith.constant 0 : index
    %69 = vector.load %arg10[%c0_39, %c0_40] : memref<768x128xf32, #tpu.memory_space<vmem>>, vector<768x128xf32>
    %cst_41 = arith.constant dense<0.000000e+00> : vector<33x128xf32>
    %70 = tpu.matmul %68, %69, %cst_41 {dimension_numbers = #tpu.dot_dimension_numbers<[1], [0], [0], [1], [0, 0, 1, 1], [], []>} : vector<33x768xf32>, vector<768x128xf32>, vector<33x128xf32> -> vector<33x128xf32>
    %c0_42 = arith.constant 0 : index
    %c0_43 = arith.constant 0 : index
    %71 = vector.load %arg11[%c0_42, %c0_43] : memref<1x128xf32, #tpu.memory_space<vmem>>, vector<1x128xf32>
    %72 = vector.broadcast %71 : vector<1x128xf32> to vector<33x128xf32>
    %73 = arith.addf %70, %72 : vector<33x128xf32>
    %cst_44 = arith.constant 1.702000e+00 : f32
    %74 = vector.broadcast %cst_44 : f32 to vector<33x128xf32>
    %75 = arith.mulf %74, %73 : vector<33x128xf32>
    %76 = arith.negf %75 : vector<33x128xf32>
    %77 = math.exp %76 : vector<33x128xf32>
    %cst_45 = arith.constant 1.000000e+00 : f32
    %78 = vector.broadcast %cst_45 : f32 to vector<33x128xf32>
    %79 = arith.addf %78, %77 : vector<33x128xf32>
    %80 = arith.divf %78, %79 : vector<33x128xf32>
    %81 = arith.mulf %73, %80 : vector<33x128xf32>
    %cst_46 = arith.constant 0.000000e+00 : f32
    %82 = vector.broadcast %cst_46 : f32 to vector<4x6x6x128xf32>
    %c0_47 = arith.constant 0 : index
    %c0_48 = arith.constant 0 : index
    %c0_49 = arith.constant 0 : index
    %c0_50 = arith.constant 0 : index
    %83 = vector.load %arg24[%c0_47, %c0_48, %c0_49, %c0_50] : memref<4x6x6x128xf32, #tpu.memory_space<vmem>>, vector<4x6x6x128xf32>
    tpu.vector_store %arg24[%c0_47, %c0_48, %c0_49, %c0_50], %82 {strides = array<i32>} : memref<4x6x6x128xf32, #tpu.memory_space<vmem>>, vector<4x6x6x128xf32>,
    %84 = vector.extract_strided_slice %81 {offsets = [1, 0], sizes = [32, 128], strides = [1, 1]} : vector<33x128xf32> to vector<32x128xf32>
    %85 = vector.shape_cast %84 : vector<32x128xf32> to vector<2x4x4x128xf32>
    %c1_51 = arith.constant 1 : index
    %c1_52 = arith.constant 1 : index
    %c1_53 = arith.constant 1 : index
    %c0_54 = arith.constant 0 : index
    %86 = vector.load %arg24[%c1_51, %c1_52, %c1_53, %c0_54] : memref<4x6x6x128xf32, #tpu.memory_space<vmem>>, vector<2x4x4x128xf32>
    tpu.vector_store %arg24[%c1_51, %c1_52, %c1_53, %c0_54], %85 {strides = array<i32>} : memref<4x6x6x128xf32, #tpu.memory_space<vmem>>, vector<2x4x4x128xf32>,
    %c0_55 = arith.constant 0 : index
    %c0_56 = arith.constant 0 : index
    %87 = vector.load %arg12[%c0_55, %c0_56] : memref<27x128xf32, #tpu.memory_space<vmem>>, vector<27x128xf32>
    %cst_57 = arith.constant 0.000000e+00 : f32
    %88 = vector.broadcast %cst_57 : f32 to vector<2x4x4x128xf32>
    %c0_58 = arith.constant 0 : index
    %c0_59 = arith.constant 0 : index
    %89 = vector.load %arg13[%c0_58, %c0_59] : memref<1x128xf32, #tpu.memory_space<vmem>>, vector<1x128xf32>
    %90 = vector.shape_cast %89 : vector<1x128xf32> to vector<1x1x1x128xf32>
    %91 = vector.broadcast %90 : vector<1x1x1x128xf32> to vector<2x4x4x128xf32>
    %92 = arith.addf %88, %91 : vector<2x4x4x128xf32>
    %c0_60 = arith.constant 0 : index
    %c0_61 = arith.constant 0 : index
    %c0_62 = arith.constant 0 : index
    %c0_63 = arith.constant 0 : index
    %93 = vector.load %arg24[%c0_60, %c0_61, %c0_62, %c0_63] : memref<4x6x6x128xf32, #tpu.memory_space<vmem>>, vector<2x6x6x128xf32>
    %94 = vector.extract_strided_slice %87 {offsets = [0, 0], sizes = [1, 128], strides = [1, 1]} : vector<27x128xf32> to vector<1x128xf32>
    %95 = vector.shape_cast %94 : vector<1x128xf32> to vector<128xf32>
    %96 = vector.shape_cast %95 : vector<128xf32> to vector<1x1x1x128xf32>
    %97 = vector.extract_strided_slice %93 {offsets = [0, 0, 0, 0], sizes = [2, 4, 4, 128], strides = [1, 1, 1, 1]} : vector<2x6x6x128xf32> to vector<2x4x4x128xf32>
    %98 = vector.broadcast %96 : vector<1x1x1x128xf32> to vector<2x4x4x128xf32>
    %99 = arith.mulf %97, %98 : vector<2x4x4x128xf32>
    %100 = arith.addf %92, %99 : vector<2x4x4x128xf32>
    %101 = vector.extract_strided_slice %87 {offsets = [1, 0], sizes = [1, 128], strides = [1, 1]} : vector<27x128xf32> to vector<1x128xf32>
    %102 = vector.shape_cast %101 : vector<1x128xf32> to vector<128xf32>
    %103 = vector.shape_cast %102 : vector<128xf32> to vector<1x1x1x128xf32>
    %104 = vector.extract_strided_slice %93 {offsets = [0, 0, 1, 0], sizes = [2, 4, 4, 128], strides = [1, 1, 1, 1]} : vector<2x6x6x128xf32> to vector<2x4x4x128xf32>
    %105 = vector.broadcast %103 : vector<1x1x1x128xf32> to vector<2x4x4x128xf32>
    %106 = arith.mulf %104, %105 : vector<2x4x4x128xf32>
    %107 = arith.addf %100, %106 : vector<2x4x4x128xf32>
    %108 = vector.extract_strided_slice %87 {offsets = [2, 0], sizes = [1, 128], strides = [1, 1]} : vector<27x128xf32> to vector<1x128xf32>
    %109 = vector.shape_cast %108 : vector<1x128xf32> to vector<128xf32>
    %110 = vector.shape_cast %109 : vector<128xf32> to vector<1x1x1x128xf32>
    %111 = vector.extract_strided_slice %93 {offsets = [0, 0, 2, 0], sizes = [2, 4, 4, 128], strides = [1, 1, 1, 1]} : vector<2x6x6x128xf32> to vector<2x4x4x128xf32>
    %112 = vector.broadcast %110 : vector<1x1x1x128xf32> to vector<2x4x4x128xf32>
    %113 = arith.mulf %111, %112 : vector<2x4x4x128xf32>
    %114 = arith.addf %107, %113 : vector<2x4x4x128xf32>
    %115 = vector.extract_strided_slice %87 {offsets = [3, 0], sizes = [1, 128], strides = [1, 1]} : vector<27x128xf32> to vector<1x128xf32>
    %116 = vector.shape_cast %115 : vector<1x128xf32> to vector<128xf32>
    %117 = vector.shape_cast %116 : vector<128xf32> to vector<1x1x1x128xf32>
    %118 = vector.extract_strided_slice %93 {offsets = [0, 1, 0, 0], sizes = [2, 4, 4, 128], strides = [1, 1, 1, 1]} : vector<2x6x6x128xf32> to vector<2x4x4x128xf32>
    %119 = vector.broadcast %117 : vector<1x1x1x128xf32> to vector<2x4x4x128xf32>
    %120 = arith.mulf %118, %119 : vector<2x4x4x128xf32>
    %121 = arith.addf %114, %120 : vector<2x4x4x128xf32>
    %122 = vector.extract_strided_slice %87 {offsets = [4, 0], sizes = [1, 128], strides = [1, 1]} : vector<27x128xf32> to vector<1x128xf32>
    %123 = vector.shape_cast %122 : vector<1x128xf32> to vector<128xf32>
    %124 = vector.shape_cast %123 : vector<128xf32> to vector<1x1x1x128xf32>
    %125 = vector.extract_strided_slice %93 {offsets = [0, 1, 1, 0], sizes = [2, 4, 4, 128], strides = [1, 1, 1, 1]} : vector<2x6x6x128xf32> to vector<2x4x4x128xf32>
    %126 = vector.broadcast %124 : vector<1x1x1x128xf32> to vector<2x4x4x128xf32>
    %127 = arith.mulf %125, %126 : vector<2x4x4x128xf32>
    %128 = arith.addf %121, %127 : vector<2x4x4x128xf32>
    %129 = vector.extract_strided_slice %87 {offsets = [5, 0], sizes = [1, 128], strides = [1, 1]} : vector<27x128xf32> to vector<1x128xf32>
    %130 = vector.shape_cast %129 : vector<1x128xf32> to vector<128xf32>
    %131 = vector.shape_cast %130 : vector<128xf32> to vector<1x1x1x128xf32>
    %132 = vector.extract_strided_slice %93 {offsets = [0, 1, 2, 0], sizes = [2, 4, 4, 128], strides = [1, 1, 1, 1]} : vector<2x6x6x128xf32> to vector<2x4x4x128xf32>
    %133 = vector.broadcast %131 : vector<1x1x1x128xf32> to vector<2x4x4x128xf32>
    %134 = arith.mulf %132, %133 : vector<2x4x4x128xf32>
    %135 = arith.addf %128, %134 : vector<2x4x4x128xf32>
    %136 = vector.extract_strided_slice %87 {offsets = [6, 0], sizes = [1, 128], strides = [1, 1]} : vector<27x128xf32> to vector<1x128xf32>
    %137 = vector.shape_cast %136 : vector<1x128xf32> to vector<128xf32>
    %138 = vector.shape_cast %137 : vector<128xf32> to vector<1x1x1x128xf32>
    %139 = vector.extract_strided_slice %93 {offsets = [0, 2, 0, 0], sizes = [2, 4, 4, 128], strides = [1, 1, 1, 1]} : vector<2x6x6x128xf32> to vector<2x4x4x128xf32>
    %140 = vector.broadcast %138 : vector<1x1x1x128xf32> to vector<2x4x4x128xf32>
    %141 = arith.mulf %139, %140 : vector<2x4x4x128xf32>
    %142 = arith.addf %135, %141 : vector<2x4x4x128xf32>
    %143 = vector.extract_strided_slice %87 {offsets = [7, 0], sizes = [1, 128], strides = [1, 1]} : vector<27x128xf32> to vector<1x128xf32>
    %144 = vector.shape_cast %143 : vector<1x128xf32> to vector<128xf32>
    %145 = vector.shape_cast %144 : vector<128xf32> to vector<1x1x1x128xf32>
    %146 = vector.extract_strided_slice %93 {offsets = [0, 2, 1, 0], sizes = [2, 4, 4, 128], strides = [1, 1, 1, 1]} : vector<2x6x6x128xf32> to vector<2x4x4x128xf32>
    %147 = vector.broadcast %145 : vector<1x1x1x128xf32> to vector<2x4x4x128xf32>
    %148 = arith.mulf %146, %147 : vector<2x4x4x128xf32>
    %149 = arith.addf %142, %148 : vector<2x4x4x128xf32>
    %150 = vector.extract_strided_slice %87 {offsets = [8, 0], sizes = [1, 128], strides = [1, 1]} : vector<27x128xf32> to vector<1x128xf32>
    %151 = vector.shape_cast %150 : vector<1x128xf32> to vector<128xf32>
    %152 = vector.shape_cast %151 : vector<128xf32> to vector<1x1x1x128xf32>
    %153 = vector.extract_strided_slice %93 {offsets = [0, 2, 2, 0], sizes = [2, 4, 4, 128], strides = [1, 1, 1, 1]} : vector<2x6x6x128xf32> to vector<2x4x4x128xf32>
    %154 = vector.broadcast %152 : vector<1x1x1x128xf32> to vector<2x4x4x128xf32>
    %155 = arith.mulf %153, %154 : vector<2x4x4x128xf32>
    %156 = arith.addf %149, %155 : vector<2x4x4x128xf32>
    %c1_64 = arith.constant 1 : index
    %c0_65 = arith.constant 0 : index
    %c0_66 = arith.constant 0 : index
    %c0_67 = arith.constant 0 : index
    %157 = vector.load %arg24[%c1_64, %c0_65, %c0_66, %c0_67] : memref<4x6x6x128xf32, #tpu.memory_space<vmem>>, vector<2x6x6x128xf32>
    %158 = vector.extract_strided_slice %87 {offsets = [9, 0], sizes = [1, 128], strides = [1, 1]} : vector<27x128xf32> to vector<1x128xf32>
    %159 = vector.shape_cast %158 : vector<1x128xf32> to vector<128xf32>
    %160 = vector.shape_cast %159 : vector<128xf32> to vector<1x1x1x128xf32>
    %161 = vector.extract_strided_slice %157 {offsets = [0, 0, 0, 0], sizes = [2, 4, 4, 128], strides = [1, 1, 1, 1]} : vector<2x6x6x128xf32> to vector<2x4x4x128xf32>
    %162 = vector.broadcast %160 : vector<1x1x1x128xf32> to vector<2x4x4x128xf32>
    %163 = arith.mulf %161, %162 : vector<2x4x4x128xf32>
    %164 = arith.addf %156, %163 : vector<2x4x4x128xf32>
    %165 = vector.extract_strided_slice %87 {offsets = [10, 0], sizes = [1, 128], strides = [1, 1]} : vector<27x128xf32> to vector<1x128xf32>
    %166 = vector.shape_cast %165 : vector<1x128xf32> to vector<128xf32>
    %167 = vector.shape_cast %166 : vector<128xf32> to vector<1x1x1x128xf32>
    %168 = vector.extract_strided_slice %157 {offsets = [0, 0, 1, 0], sizes = [2, 4, 4, 128], strides = [1, 1, 1, 1]} : vector<2x6x6x128xf32> to vector<2x4x4x128xf32>
    %169 = vector.broadcast %167 : vector<1x1x1x128xf32> to vector<2x4x4x128xf32>
    %170 = arith.mulf %168, %169 : vector<2x4x4x128xf32>
    %171 = arith.addf %164, %170 : vector<2x4x4x128xf32>
    %172 = vector.extract_strided_slice %87 {offsets = [11, 0], sizes = [1, 128], strides = [1, 1]} : vector<27x128xf32> to vector<1x128xf32>
    %173 = vector.shape_cast %172 : vector<1x128xf32> to vector<128xf32>
    %174 = vector.shape_cast %173 : vector<128xf32> to vector<1x1x1x128xf32>
    %175 = vector.extract_strided_slice %157 {offsets = [0, 0, 2, 0], sizes = [2, 4, 4, 128], strides = [1, 1, 1, 1]} : vector<2x6x6x128xf32> to vector<2x4x4x128xf32>
    %176 = vector.broadcast %174 : vector<1x1x1x128xf32> to vector<2x4x4x128xf32>
    %177 = arith.mulf %175, %176 : vector<2x4x4x128xf32>
    %178 = arith.addf %171, %177 : vector<2x4x4x128xf32>
    %179 = vector.extract_strided_slice %87 {offsets = [12, 0], sizes = [1, 128], strides = [1, 1]} : vector<27x128xf32> to vector<1x128xf32>
    %180 = vector.shape_cast %179 : vector<1x128xf32> to vector<128xf32>
    %181 = vector.shape_cast %180 : vector<128xf32> to vector<1x1x1x128xf32>
    %182 = vector.extract_strided_slice %157 {offsets = [0, 1, 0, 0], sizes = [2, 4, 4, 128], strides = [1, 1, 1, 1]} : vector<2x6x6x128xf32> to vector<2x4x4x128xf32>
    %183 = vector.broadcast %181 : vector<1x1x1x128xf32> to vector<2x4x4x128xf32>
    %184 = arith.mulf %182, %183 : vector<2x4x4x128xf32>
    %185 = arith.addf %178, %184 : vector<2x4x4x128xf32>
    %186 = vector.extract_strided_slice %87 {offsets = [13, 0], sizes = [1, 128], strides = [1, 1]} : vector<27x128xf32> to vector<1x128xf32>
    %187 = vector.shape_cast %186 : vector<1x128xf32> to vector<128xf32>
    %188 = vector.shape_cast %187 : vector<128xf32> to vector<1x1x1x128xf32>
    %189 = vector.extract_strided_slice %157 {offsets = [0, 1, 1, 0], sizes = [2, 4, 4, 128], strides = [1, 1, 1, 1]} : vector<2x6x6x128xf32> to vector<2x4x4x128xf32>
    %190 = vector.broadcast %188 : vector<1x1x1x128xf32> to vector<2x4x4x128xf32>
    %191 = arith.mulf %189, %190 : vector<2x4x4x128xf32>
    %192 = arith.addf %185, %191 : vector<2x4x4x128xf32>
    %193 = vector.extract_strided_slice %87 {offsets = [14, 0], sizes = [1, 128], strides = [1, 1]} : vector<27x128xf32> to vector<1x128xf32>
    %194 = vector.shape_cast %193 : vector<1x128xf32> to vector<128xf32>
    %195 = vector.shape_cast %194 : vector<128xf32> to vector<1x1x1x128xf32>
    %196 = vector.extract_strided_slice %157 {offsets = [0, 1, 2, 0], sizes = [2, 4, 4, 128], strides = [1, 1, 1, 1]} : vector<2x6x6x128xf32> to vector<2x4x4x128xf32>
    %197 = vector.broadcast %195 : vector<1x1x1x128xf32> to vector<2x4x4x128xf32>
    %198 = arith.mulf %196, %197 : vector<2x4x4x128xf32>
    %199 = arith.addf %192, %198 : vector<2x4x4x128xf32>
    %200 = vector.extract_strided_slice %87 {offsets = [15, 0], sizes = [1, 128], strides = [1, 1]} : vector<27x128xf32> to vector<1x128xf32>
    %201 = vector.shape_cast %200 : vector<1x128xf32> to vector<128xf32>
    %202 = vector.shape_cast %201 : vector<128xf32> to vector<1x1x1x128xf32>
    %203 = vector.extract_strided_slice %157 {offsets = [0, 2, 0, 0], sizes = [2, 4, 4, 128], strides = [1, 1, 1, 1]} : vector<2x6x6x128xf32> to vector<2x4x4x128xf32>
    %204 = vector.broadcast %202 : vector<1x1x1x128xf32> to vector<2x4x4x128xf32>
    %205 = arith.mulf %203, %204 : vector<2x4x4x128xf32>
    %206 = arith.addf %199, %205 : vector<2x4x4x128xf32>
    %207 = vector.extract_strided_slice %87 {offsets = [16, 0], sizes = [1, 128], strides = [1, 1]} : vector<27x128xf32> to vector<1x128xf32>
    %208 = vector.shape_cast %207 : vector<1x128xf32> to vector<128xf32>
    %209 = vector.shape_cast %208 : vector<128xf32> to vector<1x1x1x128xf32>
    %210 = vector.extract_strided_slice %157 {offsets = [0, 2, 1, 0], sizes = [2, 4, 4, 128], strides = [1, 1, 1, 1]} : vector<2x6x6x128xf32> to vector<2x4x4x128xf32>
    %211 = vector.broadcast %209 : vector<1x1x1x128xf32> to vector<2x4x4x128xf32>
    %212 = arith.mulf %210, %211 : vector<2x4x4x128xf32>
    %213 = arith.addf %206, %212 : vector<2x4x4x128xf32>
    %214 = vector.extract_strided_slice %87 {offsets = [17, 0], sizes = [1, 128], strides = [1, 1]} : vector<27x128xf32> to vector<1x128xf32>
    %215 = vector.shape_cast %214 : vector<1x128xf32> to vector<128xf32>
    %216 = vector.shape_cast %215 : vector<128xf32> to vector<1x1x1x128xf32>
    %217 = vector.extract_strided_slice %157 {offsets = [0, 2, 2, 0], sizes = [2, 4, 4, 128], strides = [1, 1, 1, 1]} : vector<2x6x6x128xf32> to vector<2x4x4x128xf32>
    %218 = vector.broadcast %216 : vector<1x1x1x128xf32> to vector<2x4x4x128xf32>
    %219 = arith.mulf %217, %218 : vector<2x4x4x128xf32>
    %220 = arith.addf %213, %219 : vector<2x4x4x128xf32>
    %c2 = arith.constant 2 : index
    %c0_68 = arith.constant 0 : index
    %c0_69 = arith.constant 0 : index
    %c0_70 = arith.constant 0 : index
    %221 = vector.load %arg24[%c2, %c0_68, %c0_69, %c0_70] : memref<4x6x6x128xf32, #tpu.memory_space<vmem>>, vector<2x6x6x128xf32>
    %222 = vector.extract_strided_slice %87 {offsets = [18, 0], sizes = [1, 128], strides = [1, 1]} : vector<27x128xf32> to vector<1x128xf32>
    %223 = vector.shape_cast %222 : vector<1x128xf32> to vector<128xf32>
    %224 = vector.shape_cast %223 : vector<128xf32> to vector<1x1x1x128xf32>
    %225 = vector.extract_strided_slice %221 {offsets = [0, 0, 0, 0], sizes = [2, 4, 4, 128], strides = [1, 1, 1, 1]} : vector<2x6x6x128xf32> to vector<2x4x4x128xf32>
    %226 = vector.broadcast %224 : vector<1x1x1x128xf32> to vector<2x4x4x128xf32>
    %227 = arith.mulf %225, %226 : vector<2x4x4x128xf32>
    %228 = arith.addf %220, %227 : vector<2x4x4x128xf32>
    %229 = vector.extract_strided_slice %87 {offsets = [19, 0], sizes = [1, 128], strides = [1, 1]} : vector<27x128xf32> to vector<1x128xf32>
    %230 = vector.shape_cast %229 : vector<1x128xf32> to vector<128xf32>
    %231 = vector.shape_cast %230 : vector<128xf32> to vector<1x1x1x128xf32>
    %232 = vector.extract_strided_slice %221 {offsets = [0, 0, 1, 0], sizes = [2, 4, 4, 128], strides = [1, 1, 1, 1]} : vector<2x6x6x128xf32> to vector<2x4x4x128xf32>
    %233 = vector.broadcast %231 : vector<1x1x1x128xf32> to vector<2x4x4x128xf32>
    %234 = arith.mulf %232, %233 : vector<2x4x4x128xf32>
    %235 = arith.addf %228, %234 : vector<2x4x4x128xf32>
    %236 = vector.extract_strided_slice %87 {offsets = [20, 0], sizes = [1, 128], strides = [1, 1]} : vector<27x128xf32> to vector<1x128xf32>
    %237 = vector.shape_cast %236 : vector<1x128xf32> to vector<128xf32>
    %238 = vector.shape_cast %237 : vector<128xf32> to vector<1x1x1x128xf32>
    %239 = vector.extract_strided_slice %221 {offsets = [0, 0, 2, 0], sizes = [2, 4, 4, 128], strides = [1, 1, 1, 1]} : vector<2x6x6x128xf32> to vector<2x4x4x128xf32>
    %240 = vector.broadcast %238 : vector<1x1x1x128xf32> to vector<2x4x4x128xf32>
    %241 = arith.mulf %239, %240 : vector<2x4x4x128xf32>
    %242 = arith.addf %235, %241 : vector<2x4x4x128xf32>
    %243 = vector.extract_strided_slice %87 {offsets = [21, 0], sizes = [1, 128], strides = [1, 1]} : vector<27x128xf32> to vector<1x128xf32>
    %244 = vector.shape_cast %243 : vector<1x128xf32> to vector<128xf32>
    %245 = vector.shape_cast %244 : vector<128xf32> to vector<1x1x1x128xf32>
    %246 = vector.extract_strided_slice %221 {offsets = [0, 1, 0, 0], sizes = [2, 4, 4, 128], strides = [1, 1, 1, 1]} : vector<2x6x6x128xf32> to vector<2x4x4x128xf32>
    %247 = vector.broadcast %245 : vector<1x1x1x128xf32> to vector<2x4x4x128xf32>
    %248 = arith.mulf %246, %247 : vector<2x4x4x128xf32>
    %249 = arith.addf %242, %248 : vector<2x4x4x128xf32>
    %250 = vector.extract_strided_slice %87 {offsets = [22, 0], sizes = [1, 128], strides = [1, 1]} : vector<27x128xf32> to vector<1x128xf32>
    %251 = vector.shape_cast %250 : vector<1x128xf32> to vector<128xf32>
    %252 = vector.shape_cast %251 : vector<128xf32> to vector<1x1x1x128xf32>
    %253 = vector.extract_strided_slice %221 {offsets = [0, 1, 1, 0], sizes = [2, 4, 4, 128], strides = [1, 1, 1, 1]} : vector<2x6x6x128xf32> to vector<2x4x4x128xf32>
    %254 = vector.broadcast %252 : vector<1x1x1x128xf32> to vector<2x4x4x128xf32>
    %255 = arith.mulf %253, %254 : vector<2x4x4x128xf32>
    %256 = arith.addf %249, %255 : vector<2x4x4x128xf32>
    %257 = vector.extract_strided_slice %87 {offsets = [23, 0], sizes = [1, 128], strides = [1, 1]} : vector<27x128xf32> to vector<1x128xf32>
    %258 = vector.shape_cast %257 : vector<1x128xf32> to vector<128xf32>
    %259 = vector.shape_cast %258 : vector<128xf32> to vector<1x1x1x128xf32>
    %260 = vector.extract_strided_slice %221 {offsets = [0, 1, 2, 0], sizes = [2, 4, 4, 128], strides = [1, 1, 1, 1]} : vector<2x6x6x128xf32> to vector<2x4x4x128xf32>
    %261 = vector.broadcast %259 : vector<1x1x1x128xf32> to vector<2x4x4x128xf32>
    %262 = arith.mulf %260, %261 : vector<2x4x4x128xf32>
    %263 = arith.addf %256, %262 : vector<2x4x4x128xf32>
    %264 = vector.extract_strided_slice %87 {offsets = [24, 0], sizes = [1, 128], strides = [1, 1]} : vector<27x128xf32> to vector<1x128xf32>
    %265 = vector.shape_cast %264 : vector<1x128xf32> to vector<128xf32>
    %266 = vector.shape_cast %265 : vector<128xf32> to vector<1x1x1x128xf32>
    %267 = vector.extract_strided_slice %221 {offsets = [0, 2, 0, 0], sizes = [2, 4, 4, 128], strides = [1, 1, 1, 1]} : vector<2x6x6x128xf32> to vector<2x4x4x128xf32>
    %268 = vector.broadcast %266 : vector<1x1x1x128xf32> to vector<2x4x4x128xf32>
    %269 = arith.mulf %267, %268 : vector<2x4x4x128xf32>
    %270 = arith.addf %263, %269 : vector<2x4x4x128xf32>
    %271 = vector.extract_strided_slice %87 {offsets = [25, 0], sizes = [1, 128], strides = [1, 1]} : vector<27x128xf32> to vector<1x128xf32>
    %272 = vector.shape_cast %271 : vector<1x128xf32> to vector<128xf32>
    %273 = vector.shape_cast %272 : vector<128xf32> to vector<1x1x1x128xf32>
    %274 = vector.extract_strided_slice %221 {offsets = [0, 2, 1, 0], sizes = [2, 4, 4, 128], strides = [1, 1, 1, 1]} : vector<2x6x6x128xf32> to vector<2x4x4x128xf32>
    %275 = vector.broadcast %273 : vector<1x1x1x128xf32> to vector<2x4x4x128xf32>
    %276 = arith.mulf %274, %275 : vector<2x4x4x128xf32>
    %277 = arith.addf %270, %276 : vector<2x4x4x128xf32>
    %278 = vector.extract_strided_slice %87 {offsets = [26, 0], sizes = [1, 128], strides = [1, 1]} : vector<27x128xf32> to vector<1x128xf32>
    %279 = vector.shape_cast %278 : vector<1x128xf32> to vector<128xf32>
    %280 = vector.shape_cast %279 : vector<128xf32> to vector<1x1x1x128xf32>
    %281 = vector.extract_strided_slice %221 {offsets = [0, 2, 2, 0], sizes = [2, 4, 4, 128], strides = [1, 1, 1, 1]} : vector<2x6x6x128xf32> to vector<2x4x4x128xf32>
    %282 = vector.broadcast %280 : vector<1x1x1x128xf32> to vector<2x4x4x128xf32>
    %283 = arith.mulf %281, %282 : vector<2x4x4x128xf32>
    %284 = arith.addf %277, %283 : vector<2x4x4x128xf32>
    %285 = vector.extract_strided_slice %81 {offsets = [0, 0], sizes = [1, 128], strides = [1, 1]} : vector<33x128xf32> to vector<1x128xf32>
    %286 = vector.extract_strided_slice %87 {offsets = [13, 0], sizes = [1, 128], strides = [1, 1]} : vector<27x128xf32> to vector<1x128xf32>
    %287 = vector.shape_cast %286 : vector<1x128xf32> to vector<128xf32>
    %288 = vector.shape_cast %287 : vector<128xf32> to vector<1x128xf32>
    %289 = arith.mulf %285, %288 : vector<1x128xf32>
    %c0_71 = arith.constant 0 : index
    %c0_72 = arith.constant 0 : index
    %290 = vector.load %arg13[%c0_71, %c0_72] : memref<1x128xf32, #tpu.memory_space<vmem>>, vector<1x128xf32>
    %291 = arith.addf %289, %290 : vector<1x128xf32>
    %292 = vector.shape_cast %284 : vector<2x4x4x128xf32> to vector<32x128xf32>
    %293 = tpu.concatenate %291, %292 in 0 : vector<1x128xf32>, vector<32x128xf32> -> vector<33x128xf32>
    %cst_73 = arith.constant 1.702000e+00 : f32
    %294 = vector.broadcast %cst_73 : f32 to vector<33x128xf32>
    %295 = arith.mulf %294, %293 : vector<33x128xf32>
    %296 = arith.negf %295 : vector<33x128xf32>
    %297 = math.exp %296 : vector<33x128xf32>
    %cst_74 = arith.constant 1.000000e+00 : f32
    %298 = vector.broadcast %cst_74 : f32 to vector<33x128xf32>
    %299 = arith.addf %298, %297 : vector<33x128xf32>
    %300 = arith.divf %298, %299 : vector<33x128xf32>
    %301 = arith.mulf %293, %300 : vector<33x128xf32>
    %c0_75 = arith.constant 0 : index
    %c0_76 = arith.constant 0 : index
    %302 = vector.load %arg14[%c0_75, %c0_76] : memref<128x768xf32, #tpu.memory_space<vmem>>, vector<128x768xf32>
    %cst_77 = arith.constant dense<0.000000e+00> : vector<33x768xf32>
    %303 = tpu.matmul %301, %302, %cst_77 {dimension_numbers = #tpu.dot_dimension_numbers<[1], [0], [0], [1], [0, 0, 1, 1], [], []>} : vector<33x128xf32>, vector<128x768xf32>, vector<33x768xf32> -> vector<33x768xf32>
    %c0_78 = arith.constant 0 : index
    %c0_79 = arith.constant 0 : index
    %304 = vector.load %arg15[%c0_78, %c0_79] : memref<1x768xf32, #tpu.memory_space<vmem>>, vector<1x768xf32>
    %305 = vector.broadcast %304 : vector<1x768xf32> to vector<33x768xf32>
    %306 = arith.addf %303, %305 : vector<33x768xf32>
    %c0_80 = arith.constant 0 : index
    %c0_81 = arith.constant 0 : index
    %c0_82 = arith.constant 0 : index
    %307 = vector.load %arg21[%c0_80, %c0_81, %c0_82] : memref<1x33x768xf32, #tpu.memory_space<vmem>>, vector<1x33x768xf32>
    %308 = vector.shape_cast %307 : vector<1x33x768xf32> to vector<33x768xf32>
    %309 = vector.shape_cast %306 : vector<33x768xf32> to vector<1x33x768xf32>
    tpu.vector_store %arg21[%c0_80, %c0_81, %c0_82], %309 {strides = array<i32>} : memref<1x33x768xf32, #tpu.memory_space<vmem>>, vector<1x33x768xf32>,
    %c0_83 = arith.constant 0 : index
    %c0_84 = arith.constant 0 : index
    %c0_85 = arith.constant 0 : index
    %310 = vector.load %arg3[%c0_83, %c0_84, %c0_85] : memref<1x8x768xf32, #tpu.memory_space<vmem>>, vector<1x8x768xf32>
    %311 = vector.shape_cast %310 : vector<1x8x768xf32> to vector<8x768xf32>
    %c0_86 = arith.constant 0 : index
    %c0_87 = arith.constant 0 : index
    %312 = vector.load %arg16[%c0_86, %c0_87] : memref<768x128xf32, #tpu.memory_space<vmem>>, vector<768x128xf32>
    %cst_88 = arith.constant dense<0.000000e+00> : vector<8x128xf32>
    %313 = tpu.matmul %311, %312, %cst_88 {dimension_numbers = #tpu.dot_dimension_numbers<[1], [0], [0], [1], [0, 0, 1, 1], [], []>} : vector<8x768xf32>, vector<768x128xf32>, vector<8x128xf32> -> vector<8x128xf32>
    %c0_89 = arith.constant 0 : index
    %c0_90 = arith.constant 0 : index
    %314 = vector.load %arg17[%c0_89, %c0_90] : memref<1x128xf32, #tpu.memory_space<vmem>>, vector<1x128xf32>
    %315 = vector.broadcast %314 : vector<1x128xf32> to vector<8x128xf32>
    %316 = arith.addf %313, %315 : vector<8x128xf32>
    %cst_91 = arith.constant 1.702000e+00 : f32
    %317 = vector.broadcast %cst_91 : f32 to vector<8x128xf32>
    %318 = arith.mulf %317, %316 : vector<8x128xf32>
    %319 = arith.negf %318 : vector<8x128xf32>
    %320 = math.exp %319 : vector<8x128xf32>
    %cst_92 = arith.constant 1.000000e+00 : f32
    %321 = vector.broadcast %cst_92 : f32 to vector<8x128xf32>
    %322 = arith.addf %321, %320 : vector<8x128xf32>
    %323 = arith.divf %321, %322 : vector<8x128xf32>
    %324 = arith.mulf %316, %323 : vector<8x128xf32>
    %cst_93 = arith.constant 1.702000e+00 : f32
    %325 = vector.broadcast %cst_93 : f32 to vector<8x128xf32>
    %326 = arith.mulf %325, %324 : vector<8x128xf32>
    %327 = arith.negf %326 : vector<8x128xf32>
    %328 = math.exp %327 : vector<8x128xf32>
    %cst_94 = arith.constant 1.000000e+00 : f32
    %329 = vector.broadcast %cst_94 : f32 to vector<8x128xf32>
    %330 = arith.addf %329, %328 : vector<8x128xf32>
    %331 = arith.divf %329, %330 : vector<8x128xf32>
    %332 = arith.mulf %324, %331 : vector<8x128xf32>
    %c0_95 = arith.constant 0 : index
    %c0_96 = arith.constant 0 : index
    %333 = vector.load %arg18[%c0_95, %c0_96] : memref<128x768xf32, #tpu.memory_space<vmem>>, vector<128x768xf32>
    %cst_97 = arith.constant dense<0.000000e+00> : vector<8x768xf32>
    %334 = tpu.matmul %332, %333, %cst_97 {dimension_numbers = #tpu.dot_dimension_numbers<[1], [0], [0], [1], [0, 0, 1, 1], [], []>} : vector<8x128xf32>, vector<128x768xf32>, vector<8x768xf32> -> vector<8x768xf32>
    %c0_98 = arith.constant 0 : index
    %c0_99 = arith.constant 0 : index
    %335 = vector.load %arg19[%c0_98, %c0_99] : memref<1x768xf32, #tpu.memory_space<vmem>>, vector<1x768xf32>
    %336 = vector.broadcast %335 : vector<1x768xf32> to vector<8x768xf32>
    %337 = arith.addf %334, %336 : vector<8x768xf32>
    %c0_100 = arith.constant 0 : index
    %c0_101 = arith.constant 0 : index
    %c0_102 = arith.constant 0 : index
    %338 = vector.load %arg22[%c0_100, %c0_101, %c0_102] : memref<1x8x768xf32, #tpu.memory_space<vmem>>, vector<1x8x768xf32>
    %339 = vector.shape_cast %338 : vector<1x8x768xf32> to vector<8x768xf32>
    %340 = vector.shape_cast %337 : vector<8x768xf32> to vector<1x8x768xf32>
    tpu.vector_store %arg22[%c0_100, %c0_101, %c0_102], %340 {strides = array<i32>} : memref<1x8x768xf32, #tpu.memory_space<vmem>>, vector<1x8x768xf32>,
    return
  }
  func.func @transform_0(%arg0: i32) -> (i32, i32, i32) {
    %c0_i32 = arith.constant 0 : i32
    %c0_i32_0 = arith.constant 0 : i32
    %c0_i32_1 = arith.constant 0 : i32
    return %arg0, %c0_i32, %c0_i32_0 : i32, i32, i32
  }
  func.func @transform_1(%arg0: i32) -> (i32, i32, i32) {
    %c0_i32 = arith.constant 0 : i32
    %c0_i32_0 = arith.constant 0 : i32
    %c0_i32_1 = arith.constant 0 : i32
    return %arg0, %c0_i32, %c0_i32_0 : i32, i32, i32
  }
  func.func @transform_2(%arg0: i32) -> (i32, i32, i32) {
    %c0_i32 = arith.constant 0 : i32
    %c0_i32_0 = arith.constant 0 : i32
    %c0_i32_1 = arith.constant 0 : i32
    return %arg0, %c0_i32, %c0_i32_0 : i32, i32, i32
  }
  func.func @transform_3(%arg0: i32) -> (i32, i32) {
    %c0_i32 = arith.constant 0 : i32
    %c0_i32_0 = arith.constant 0 : i32
    %c0_i32_1 = arith.constant 0 : i32
    return %c0_i32, %c0_i32_0 : i32, i32
  }
  func.func @transform_4(%arg0: i32) -> (i32, i32) {
    %c0_i32 = arith.constant 0 : i32
    %c0_i32_0 = arith.constant 0 : i32
    %c0_i32_1 = arith.constant 0 : i32
    return %c0_i32, %c0_i32_0 : i32, i32
  }
  func.func @transform_5(%arg0: i32) -> (i32, i32) {
    %c0_i32 = arith.constant 0 : i32
    %c0_i32_0 = arith.constant 0 : i32
    %c0_i32_1 = arith.constant 0 : i32
    return %c0_i32, %c0_i32_0 : i32, i32
  }
  func.func @transform_6(%arg0: i32) -> (i32, i32) {
    %c0_i32 = arith.constant 0 : i32
    %c0_i32_0 = arith.constant 0 : i32
    %c0_i32_1 = arith.constant 0 : i32
    return %c0_i32, %c0_i32_0 : i32, i32
  }
  func.func @transform_7(%arg0: i32) -> (i32, i32) {
    %c0_i32 = arith.constant 0 : i32
    %c0_i32_0 = arith.constant 0 : i32
    %c0_i32_1 = arith.constant 0 : i32
    return %c0_i32, %c0_i32_0 : i32, i32
  }
  func.func @transform_8(%arg0: i32) -> (i32, i32) {
    %c0_i32 = arith.constant 0 : i32
    %c0_i32_0 = arith.constant 0 : i32
    %c0_i32_1 = arith.constant 0 : i32
    return %c0_i32, %c0_i32_0 : i32, i32
  }
  func.func @transform_9(%arg0: i32) -> (i32, i32) {
    %c0_i32 = arith.constant 0 : i32
    %c0_i32_0 = arith.constant 0 : i32
    %c0_i32_1 = arith.constant 0 : i32
    return %c0_i32, %c0_i32_0 : i32, i32
  }
  func.func @transform_10(%arg0: i32) -> (i32, i32) {
    %c0_i32 = arith.constant 0 : i32
    %c0_i32_0 = arith.constant 0 : i32
    %c0_i32_1 = arith.constant 0 : i32
    return %c0_i32, %c0_i32_0 : i32, i32
  }
  func.func @transform_11(%arg0: i32) -> (i32, i32) {
    %c0_i32 = arith.constant 0 : i32
    %c0_i32_0 = arith.constant 0 : i32
    %c0_i32_1 = arith.constant 0 : i32
    return %c0_i32, %c0_i32_0 : i32, i32
  }
  func.func @transform_12(%arg0: i32) -> (i32, i32) {
    %c0_i32 = arith.constant 0 : i32
    %c0_i32_0 = arith.constant 0 : i32
    %c0_i32_1 = arith.constant 0 : i32
    return %c0_i32, %c0_i32_0 : i32, i32
  }
  func.func @transform_13(%arg0: i32) -> (i32, i32) {
    %c0_i32 = arith.constant 0 : i32
    %c0_i32_0 = arith.constant 0 : i32
    %c0_i32_1 = arith.constant 0 : i32
    return %c0_i32, %c0_i32_0 : i32, i32
  }
  func.func @transform_14(%arg0: i32) -> (i32, i32) {
    %c0_i32 = arith.constant 0 : i32
    %c0_i32_0 = arith.constant 0 : i32
    %c0_i32_1 = arith.constant 0 : i32
    return %c0_i32, %c0_i32_0 : i32, i32
  }
  func.func @transform_15(%arg0: i32) -> (i32, i32) {
    %c0_i32 = arith.constant 0 : i32
    %c0_i32_0 = arith.constant 0 : i32
    %c0_i32_1 = arith.constant 0 : i32
    return %c0_i32, %c0_i32_0 : i32, i32
  }
  func.func @transform_16(%arg0: i32) -> (i32, i32) {
    %c0_i32 = arith.constant 0 : i32
    %c0_i32_0 = arith.constant 0 : i32
    %c0_i32_1 = arith.constant 0 : i32
    return %c0_i32, %c0_i32_0 : i32, i32
  }
  func.func @transform_17(%arg0: i32) -> (i32, i32) {
    %c0_i32 = arith.constant 0 : i32
    %c0_i32_0 = arith.constant 0 : i32
    %c0_i32_1 = arith.constant 0 : i32
    return %c0_i32, %c0_i32_0 : i32, i32
  }
  func.func @transform_18(%arg0: i32) -> (i32, i32) {
    %c0_i32 = arith.constant 0 : i32
    %c0_i32_0 = arith.constant 0 : i32
    %c0_i32_1 = arith.constant 0 : i32
    return %c0_i32, %c0_i32_0 : i32, i32
  }
  func.func @transform_19(%arg0: i32) -> (i32, i32, i32) {
    %c0_i32 = arith.constant 0 : i32
    %c0_i32_0 = arith.constant 0 : i32
    %c0_i32_1 = arith.constant 0 : i32
    return %arg0, %c0_i32, %c0_i32_0 : i32, i32, i32
  }
  func.func @transform_20(%arg0: i32) -> (i32, i32, i32) {
    %c0_i32 = arith.constant 0 : i32
    %c0_i32_0 = arith.constant 0 : i32
    %c0_i32_1 = arith.constant 0 : i32
    return %arg0, %c0_i32, %c0_i32_0 : i32, i32, i32
  }
  func.func @transform_21(%arg0: i32) -> (i32, i32, i32) {
    %c0_i32 = arith.constant 0 : i32
    %c0_i32_0 = arith.constant 0 : i32
    %c0_i32_1 = arith.constant 0 : i32
    return %arg0, %c0_i32, %c0_i32_0 : i32, i32, i32
  }
}

</mosaic_0001>

<bundles_post_ra>
// kernel: t_avel_forward.1
= control target key start
LH: loop header
LB: loop body
LE: loop exit
PB: predicated region body
PF: predicated region fallthrough
CT: control target
= control target key end

     0   :  { %s8586_s0 = inlined_call_operand.vmem [shape: f32[2,17,768], index: 0, kind: input, shape index: {}]   ;;  %s8587_s1 = inlined_call_operand.vmem [shape: f32[2,33,768], index: 1, kind: input, shape index: {}]   ;;  %s8588_s2 = inlined_call_operand.vmem [shape: f32[2,8,768], index: 2, kind: input, shape index: {}]   ;;  %s8589_s3 = inlined_call_operand.hbm [shape: f32[768,128], index: 3, kind: input, shape index: {}]   ;;  %s8590_s4 = inlined_call_operand.vmem [shape: f32[1,128], index: 4, kind: input, shape index: {}]   ;;  %s8591_s5 = inlined_call_operand.vmem [shape: f32[1152,128], index: 5, kind: input, shape index: {}]   ;;  %s8592_s6 = inlined_call_operand.vmem [shape: f32[1,128], index: 6, kind: input, shape index: {}]   ;;  %s8593_s7 = inlined_call_operand.hbm [shape: f32[128,768], index: 7, kind: input, shape index: {}]   ;;  %s8594_s8 = inlined_call_operand.vmem [shape: f32[1,768], index: 8, kind: input, shape index: {}]   ;;  %s8595_s9 = inlined_call_operand.hbm [shape: f32[768,128], index: 9, kind: input, shape index: {}]   ;;  %s8596_s10 = inlined_call_operand.vmem [shape: f32[1,128], index: 10, kind: input, shape index: {}]   ;;  %s8597_s11 = inlined_call_operand.vmem [shape: f32[27,128], index: 11, kind: input, shape index: {}]   ;;  %s8598_s12 = inlined_call_operand.vmem [shape: f32[1,128], index: 12, kind: input, shape index: {}]   ;;  %s8599_s13 = inlined_call_operand.hbm [shape: f32[128,768], index: 13, kind: input, shape index: {}]   ;;  %s8600_s14 = inlined_call_operand.vmem [shape: f32[1,768], index: 14, kind: input, shape index: {}]   ;;  %s8601_s15 = inlined_call_operand.hbm [shape: f32[768,128], index: 15, kind: input, shape index: {}]   ;;  %s8602_s16 = inlined_call_operand.vmem [shape: f32[1,128], index: 16, kind: input, shape index: {}]   ;;  %s8603_s17 = inlined_call_operand.hbm [shape: f32[128,768], index: 17, kind: input, shape index: {}]   ;;  %s8604_s18 = inlined_call_operand.vmem [shape: f32[1,768], index: 18, kind: input, shape index: {}]   ;;  %s8605_s19 = inlined_call_operand.vmem [shape: f32[2,17,768], index: 19, kind: output, shape index: {0}]   ;;  %s8606_s20 = inlined_call_operand.vmem [shape: f32[2,33,768], index: 20, kind: output, shape index: {1}]   ;;  %s8607_s21 = inlined_call_operand.hbm [shape: f32[2,8,768], index: 21, kind: output, shape index: {2}]  }
   0x1   :  { %8685 = sst [smem:[#allocation80_spill]] %s8586_s0 }
   0x2   :  { %8686 = sst [smem:[#allocation81_spill]] %s8587_s1 }
   0x3   :  { %8687 = sst [smem:[#allocation82_spill]] %s8588_s2 }
   0x4   :  { %8688 = sst [smem:[#allocation83_spill]] %s8589_s3 }
   0x5   :  { %8689 = sst [smem:[#allocation84_spill]] %s8590_s4 }
   0x6   :  { %8690 = sst [smem:[#allocation85_spill]] %s8591_s5 }
   0x7   :  { %8691 = sst [smem:[#allocation86_spill]] %s8593_s7 }
   0x8   :  { %8692 = sst [smem:[#allocation87_spill]] %s8607_s21 }
   0x9   :  { %27 = vsyncpa [#allocation5], 0 }
   0xa   :  { %28 = vsyncpa [#allocation8], 0 }
   0xb   :  { %29 = vsyncpa [#allocation11], 0 }
   0xc   :  { %30 = vsyncpa [#allocation14], 0 }
   0xd   :  { %31 = vsyncpa [#allocation6], 0 }
   0xe   :  { %33 = vsyncpa [#allocation6 + $0x1], 0  ;;  %s6566_s2 = smov 0   ;;  %s6568_s25 = smov 0  }
   0xf   :  { %s6570_s26 = smov 0   ;;  %s6572_s27 = smov 0  }
  0x10 LB: > { %8693 = sst [smem:[#allocation21_spill]] %s6429_s2  ;;  %s6587_s3 = sadd.s32 4294967295, %s6441_s27   ;;  %s6441_s27 = sphi %s6572_s27, %s8871_s27   ;;  %s6437_s26 = sphi %s6570_s26, %s8873_s26   ;;  %s6433_s25 = sphi %s6568_s25, %s8875_s25   ;;  %s6429_s2 = sphi %s6566_s2, %s8874_s2  }
  0x11   : > { %8694 = sst [smem:[#allocation22_spill]] %s6437_s26  ;;  %s5328_s28 = sadd.s32 4294967294, %s6441_s27  }
  0x12   : > { %8695 = sst [smem:[#allocation23_spill]] %s6441_s27  ;;  %s6591_s29 = sadd.s32 1, %s6441_s27  }
  0x13   : > { %8696 = sst [smem:[#allocation24_spill]] %s6591_s29  ;;  %s512_s0 = sadd.s32 1, %s6437_s26 }
  0x14   : > { %s509_s4 = ssub.s32 %s6441_s27, %s6591_s29  ;;  %p522_p0 = scmp.ne.s32.totalorder %s6437_s26, %s6433_s25 }
  0x15   : > { %p510_p1 = scmp.eq.s32.totalorder %s509_s4, 0  ;;  %p523_p2 = scmp.eq.s32.totalorder %s6587_s3, 1 }
  0x16   : > { %p528_p3 = scmp.ne.s32.totalorder %s6433_s25, %s6429_s2  ;;  %p529_p4 = scmp.eq.s32.totalorder %s5328_s28, 1 }
  0x17   : > { %s6602_s30 = scalar_select %p510_p1, %s6437_s26, %s512_s0  }
  0x18   : > { %p6604_p5 = por %p523_p2, %p522_p0  ;;  %p6608_p6 = por %p529_p4, %p528_p3 }
  0x19   : > { %8697 = sst [smem:[#allocation25_spill]] %s6602_s30  ;;  %p5329_p7 = scmp.ge.s32.totalorder %s6441_s27, 1 }
  0x1a   : > { %s8699_s22 = scalar_select %p6608_p6, 1, 0 }
  0x1b   : > { %p536_p8 = scmp.lt.s32.totalorder %s6441_s27, 3  ;;  %p8616_p9 = scmp.eq.s32.totalorder %s6587_s3, 0 }
  0x1c   : > { %8700 = sst [smem:[#allocation26_spill]] %s8699_s22  ;;  %s6443_s1 = smov [#allocation7]  }
  0x1d   : > { %p6615_p10 = pnand %p5329_p7, %p536_p8  ;;  %s570_s24 = sshll.u32 %s6443_s1, 4  ;;  %s571_s24 = int_to_ptr.vmem [resolvable:$true] %s570_s24 }
  0x1e   : > { %s6444_s0 = smov [#allocation10]   ;;  %s6445_s30 = smov [#allocation4]  }
  0x1f   : > { %p6044_p11 = pneg %p6615_p10  ;;  %s608_s4 = sshll.u32 %s6444_s0, 4  ;;  %s609_s4 = int_to_ptr.vmem [resolvable:$true] %s608_s4 }
  0x20   : > { %s548_s26 = sshll.u32 %s6445_s30, 4  ;;  %s6220_s1 = scalar_lea.vmem %s571_s24, 12288  ;;  %s549_s26 = int_to_ptr.vmem [resolvable:$true] %s548_s26 }
  0x21   : > { %p6623_p12 = pnand %p8616_p9, %p6044_p11  ;;  %p6221_p0 = scmp.ne.s32.totalorder %s571_s24, %s6220_s1 }
  0x22   : > { %p6228_p3 = scmp.lt.s32.totalorder %s571_s24, %s571_s24  ;;  %p6229_p4 = scmp.lt.s32.totalorder %s6220_s1, %s6220_s1 }
  0x23   : > { %p6629_p13 = pneg %p6623_p12 }
  0x24   : > { %p6230_p7 = por %p6229_p4, %p6228_p3 }
  0x25   : > { %p6223_p1 = pnand %p6221_p0, %p6629_p13 }
  0x27   : > { %p6224_p2 = pneg %p6223_p1 }
  0x29   : > { %p6231_p8 = pnand %p6230_p7, %p6224_p2 }
  0x2b   : > { %6234 = shalt.err (!%p6231_p8)
}
  0x2c   : > { %s8617_s0 = smov 768   ;;  %s8618_s30 = smov 48  }
  0x2d   : > { %s8704_s7 = sld [smem:[#allocation86_spill]]  ;;  %s6246_s27 = scalar_lea.vmem %s609_s4, 12288 }
  0x2e   : > { %p6247_p11 = scmp.ne.s32.totalorder %s609_s4, %s6246_s27  ;;  %p6254_p3 = scmp.lt.s32.totalorder %s609_s4, %s609_s4 }
  0x2f   : > { %p6255_p2 = scmp.lt.s32.totalorder %s6246_s27, %s6246_s27 }
  0x30   : > { %p6249_p0 = pnand %p6247_p11, %p6629_p13 }
  0x31   : > { %p6256_p4 = por %p6255_p2, %p6254_p3 }
  0x32   : > { %p6250_p1 = pneg %p6249_p0 }
  0x33   : > { %6050 = dma.hbm_to_vmem [thread:$0]  (!%p6623_p12), %s8704_s7, 12288, %s571_s24, [#allocation8], %s8617_s0, %s8617_s0, %s8618_s30  }
  0x34   : > { %p6257_p7 = pnand %p6256_p4, %p6250_p1 }
  0x36   : > { %6260 = shalt.err (!%p6257_p7)
}
  0x37   : > { %6056 = dma.hbm_to_vmem [thread:$0]  (!%p6623_p12), %s8599_s13, 12288, %s609_s4, [#allocation11], %s8617_s0, %s8617_s0, %s8618_s30  }
  0x38   : > { %s6272_s2 = scalar_lea.vmem %s549_s26, 12288  ;;  %p6280_p9 = scmp.lt.s32.totalorder %s549_s26, %s549_s26 }
  0x39   : > { %p6273_p8 = scmp.ne.s32.totalorder %s549_s26, %s6272_s2  ;;  %p6281_p3 = scmp.lt.s32.totalorder %s6272_s2, %s6272_s2 }
  0x3b   : > { %p6275_p11 = pnand %p6273_p8, %p6629_p13  ;;  %p6282_p1 = por %p6281_p3, %p6280_p9 }
  0x3d   : > { %p6276_p0 = pneg %p6275_p11 }
  0x3f   : > { %p6283_p2 = pnand %p6282_p1, %p6276_p0 }
  0x41   : > { %6286 = shalt.err (!%p6283_p2)
}
  0x42   : > { %s6448_s27 = smov 128   ;;  %s6449_s22 = smov 8  }
  0x43   : > { %s8705_s4 = sld [smem:[#allocation83_spill]]  ;;  %s6450_s1 = smov [#allocation9]  }
  0x44   : > { %s586_s0 = sshll.u32 %s6450_s1, 4  ;;  %s6451_s30 = smov [#allocation12]   ;;  %s587_s0 = int_to_ptr.vmem [resolvable:$true] %s586_s0 }
  0x45   : > { %s624_s2 = sshll.u32 %s6451_s30, 4  ;;  %s6298_s7 = scalar_lea.vmem %s587_s0, 12288  ;;  %s625_s2 = int_to_ptr.vmem [resolvable:$true] %s624_s2 }
  0x46   : > { %p6299_p9 = scmp.ne.s32.totalorder %s587_s0, %s6298_s7  ;;  %p6306_p8 = scmp.lt.s32.totalorder %s587_s0, %s587_s0 }
  0x47   : > { %p6307_p11 = scmp.lt.s32.totalorder %s6298_s7, %s6298_s7 }
  0x48   : > { %p6301_p4 = pnand %p6299_p9, %p6629_p13 }
  0x49   : > { %6047 = dma.hbm_to_vmem [thread:$0]  (!%p6623_p12), %s8705_s4, 12288, %s549_s26, [#allocation5], %s6448_s27, %s6448_s27, %s6449_s22  }
  0x4a   : > { %p6302_p7 = pneg %p6301_p4  ;;  %p6308_p0 = por %p6307_p11, %p6306_p8 }
  0x4c   : > { %p6309_p3 = pnand %p6308_p0, %p6302_p7 }
  0x4e   : > { %6312 = shalt.err (!%p6309_p3)
}
  0x4f   : > { %6053 = dma.hbm_to_vmem [thread:$0]  (!%p6623_p12), %s8595_s9, 12288, %s587_s0, [#allocation8], %s6448_s27, %s6448_s27, %s6449_s22  }
  0x50   : > { %s6324_s30 = scalar_lea.vmem %s625_s2, 12288  ;;  %p6332_p4 = scmp.lt.s32.totalorder %s625_s2, %s625_s2 }
  0x51   : > { %p6325_p1 = scmp.ne.s32.totalorder %s625_s2, %s6324_s30  ;;  %p6333_p8 = scmp.lt.s32.totalorder %s6324_s30, %s6324_s30 }
  0x53   : > { %p6327_p2 = pnand %p6325_p1, %p6629_p13  ;;  %p6334_p7 = por %p6333_p8, %p6332_p4 }
  0x55   : > { %p6328_p9 = pneg %p6327_p2 }
  0x57   : > { %p6335_p11 = pnand %p6334_p7, %p6328_p9 }
  0x59   : > { %6338 = shalt.err (!%p6335_p11)
}
  0x5a   : > { %6059 = dma.hbm_to_vmem [thread:$0]  (!%p6623_p12), %s8601_s15, 12288, %s625_s2, [#allocation11], %s6448_s27, %s6448_s27, %s6449_s22  }
  0x5b   : > { %s6452_s0 = smov [#allocation13]  }
  0x5c   : > { %s640_s4 = sshll.u32 %s6452_s0, 4  ;;  %s641_s4 = int_to_ptr.vmem [resolvable:$true] %s640_s4 }
  0x5d   : > { %s6350_s1 = scalar_lea.vmem %s641_s4, 12288  ;;  %p6358_p2 = scmp.lt.s32.totalorder %s641_s4, %s641_s4 }
  0x5e   : > { %p6351_p0 = scmp.ne.s32.totalorder %s641_s4, %s6350_s1  ;;  %p6359_p9 = scmp.lt.s32.totalorder %s6350_s1, %s6350_s1 }
  0x60   : > { %p6353_p3 = pnand %p6351_p0, %p6629_p13  ;;  %p6360_p4 = por %p6359_p9, %p6358_p2 }
  0x62   : > { %p6354_p1 = pneg %p6353_p3 }
  0x64   : > { %p6361_p8 = pnand %p6360_p4, %p6354_p1 }
  0x66   : > { %6364 = shalt.err (!%p6361_p8)
}
  0x67   : > { %s8706_s26 = smov 48   ;;  %s8707_s21 = smov 768  }
  0x68   : > { %6062 = dma.hbm_to_vmem [thread:$0]  (!%p6623_p12), %s8603_s17, 12288, %s641_s4, [#allocation14], %s8707_s21, %s8707_s21, %s8706_s26  }
  0x69   : > { %683 = sbr.rel (%p6615_p10) target bundleno = 1810 (0x712), region = 96 }
  0x6e   : > { %p8708_p13 = scmp.eq.s32.totalorder %s6587_s3, 0 }
  0x70   : > { %6408 = dma.done.wait (%p8708_p13), [#allocation5], 12288   ;;  %p8709_p7 = pmov %p8708_p13 }
  0x72   : > { %6410 = vsyncadd (%p8709_p7), [#allocation5], 4294955008  ;;  %p8710_p11 = pmov %p8709_p7 }
  0x73   : > { %p8711_p0 = pmov %p8709_p7 }
  0x74   : > { %6412 = dma.done.wait (%p8710_p11), [#allocation8], 24576  }
  0x75   : > { %6414 = vsyncadd (%p8711_p0), [#allocation8], 4294942720  ;;  %p8712_p3 = pmov %p8711_p0 }
  0x76   : > { %p8713_p12 = pmov %p8711_p0 }
  0x77   : > { %6416 = dma.done.wait (%p8712_p3), [#allocation11], 24576  }
  0x78   : > { %6418 = vsyncadd (%p8713_p12), [#allocation11], 4294942720  ;;  %p8714_p10 = pmov %p8711_p0 }
  0x79   : > { %p8715_p1 = pmov %p8711_p0 }
  0x7a   : > { %6420 = dma.done.wait (%p8714_p10), [#allocation14], 12288  }
  0x7b   : > { %6422 = vsyncadd (%p8715_p1), [#allocation14], 4294955008  ;;  %v857_v0 = vld [vmem:[#allocation4 + $0xf8] sm:$0xff]  ;;  %v856_v2 = vld [vmem:[#allocation4 + $0xf0] sm:$0xff]  ;;  %p783_p2 = scmp.lt.s32.totalorder %s6587_s3, 1  ;;  %s8716_s2 = sld [smem:[#allocation80_spill]] }
  0x7c   : > { %v841_v1 = vld [vmem:[#allocation4 + $0x78] sm:$0xff]  ;;  %5387 = vmatprep.subr.mxu0 %v857_v0  ;;  %v840_v4 = vld [vmem:[#allocation4 + $0x70] sm:$0xff]  ;;  %v855_v6 = vld [vmem:[#allocation4 + $0xe8] sm:$0xff]  ;;  %s8717_s4 = sld [smem:[#allocation85_spill]]  ;;  %vm1204_vm0 = vcmask 1042432   ;;  %vm1205_vm1 = vcmask 1046532  }
  0x7d   : > { %v889_v3 = vld [vmem:[#allocation4 + $0x1f8] sm:$0xff]  ;;  %5388 = vmatpush3.msra.mxu0 %v841_v1  ;;  %v888_v7 = vld [vmem:[#allocation4 + $0x1f0] sm:$0xff]  ;;  %v839_v8 = vld [vmem:[#allocation4 + $0x68] sm:$0xff]  ;;  %s6715_s29 = scalar_select %p783_p2, %s6587_s3, 1  ;;  %vm1259_vm3 = vcmask 1041408   ;;  %vm1260_vm4 = vcmask 1045508  }
  0x7e   : > { %v873_v5 = vld [vmem:[#allocation4 + $0x178] sm:$0xff]  ;;  %5428 = vmatprep.subr.mxu1 %v889_v3  ;;  %5389 = vmatprep.subr.mxu0 %v856_v2  ;;  %v872_v9 = vld [vmem:[#allocation4 + $0x170] sm:$0xff]  ;;  %v887_v10 = vld [vmem:[#allocation4 + $0x1e8] sm:$0xff]  ;;  %s8718_s1 = sld [smem:[#allocation84_spill]]  ;;  %vm6454_vm6 = vmmov 0   ;;  %vm1942_vm7 = vcmask 1040384  }
  0x7f   : > { %5429 = vmatpush3.msra.mxu1 %v873_v5  ;;  %5390 = vmatpush3.msra.mxu0 %v840_v4  ;;  %v854_v11 = vld [vmem:[#allocation4 + $0xe0] sm:$0xff]  ;;  %v871_v12 = vld [vmem:[#allocation4 + $0x168] sm:$0xff]  ;;  %v853_v15 = vld [vmem:[#allocation4 + $0xd8] sm:$0xff]  ;;  %s6014_s23 = smul.u32 144, %s6715_s29  ;;  %s8867_s21 = sld [smem:[#allocation87_spill]] }
  0x80   : > { %5430 = vmatprep.subr.mxu1 %v888_v7  ;;  %5391 = vmatprep.subr.mxu0 %v855_v6  ;;  %v838_v13 = vld [vmem:[#allocation4 + $0x60] sm:$0xff]  ;;  %v837_v17 = vld [vmem:[#allocation4 + $0x58] sm:$0xff]  ;;  %v852_v19 = vld [vmem:[#allocation4 + $0xd0] sm:$0xff]  ;;  %s6015_s28 = smul.u32 240, %s6715_s29 }
  0x81   : > { %5431 = vmatpush3.msra.mxu1 %v872_v9  ;;  %v886_v14 = vld [vmem:[#allocation4 + $0x1e0] sm:$0xff]  ;;  %5392 = vmatpush3.msra.mxu0 %v839_v8  ;;  %v885_v18 = vld [vmem:[#allocation4 + $0x1d8] sm:$0xff]  ;;  %v836_v21 = vld [vmem:[#allocation4 + $0x50] sm:$0xff]  ;;  %s6723_s7 = scalar_lea.vmem %s8716_s2, %s6014_s23  ;;  %s7489_s30 = scalar_lea.vmem %s8605_s19, %s6014_s23 }
  0x82   : > { %5432 = vmatprep.subr.mxu1 %v887_v10  ;;  %v870_v16 = vld [vmem:[#allocation4 + $0x160] sm:$0xff]  ;;  %5393 = vmatprep.subr.mxu0 %v854_v11  ;;  %v869_v20 = vld [vmem:[#allocation4 + $0x158] sm:$0xff]  ;;  %v884_v22 = vld [vmem:[#allocation4 + $0x1d0] sm:$0xff]  ;;  %s6016_s27 = smul.u32 48, %s6715_s29  ;;  %s780_s23 = sand.u32 1, %s6433_s25  }
  0x83   : > { %5433 = vmatpush3.msra.mxu1 %v871_v12  ;;  %5394 = vmatpush3.msra.mxu0 %v838_v13  ;;  %v851_v23 = vld [vmem:[#allocation4 + $0xc8] sm:$0xff]  ;;  %v868_v24 = vld [vmem:[#allocation4 + $0x150] sm:$0xff]  ;;  %v850_v27 = vld [vmem:[#allocation4 + $0xc0] sm:$0xff]  ;;  %s6013_s2 = smul.u32 48, %s780_s23  ;;  %s5115_s29 = scalar_lea.sflag [#allocation6], %s780_s23 }
  0x84   : > { %5434 = vmatprep.subr.mxu1 %v886_v14  ;;  %5395 = vmatprep.subr.mxu0 %v853_v15  ;;  %v835_v25 = vld [vmem:[#allocation4 + $0x48] sm:$0xff]  ;;  %v834_v29 = vld [vmem:[#allocation4 + $0x40] sm:$0xff]  ;;  %v849_v31 = vld [vmem:[#allocation4 + $0xb8] sm:$0xff] }
  0x85   : > { %5435 = vmatpush3.msra.mxu1 %v870_v16  ;;  %5396 = vmatpush3.msra.mxu0 %v837_v17  ;;  %v883_v26 = vld [vmem:[#allocation4 + $0x1c8] sm:$0xff]  ;;  %v882_v30 = vld [vmem:[#allocation4 + $0x1c0] sm:$0xff]  ;;  %v833_v33 = vld [vmem:[#allocation4 + $0x38] sm:$0xff] }
  0x86   : > { %5436 = vmatprep.subr.mxu1 %v885_v18  ;;  %5397 = vmatprep.subr.mxu0 %v852_v19  ;;  %v867_v28 = vld [vmem:[#allocation4 + $0x148] sm:$0xff]  ;;  %v866_v32 = vld [vmem:[#allocation4 + $0x140] sm:$0xff]  ;;  %v881_v34 = vld [vmem:[#allocation4 + $0x1b8] sm:$0xff] }
  0x87   : > { %5437 = vmatpush3.msra.mxu1 %v869_v20  ;;  %5398 = vmatpush3.msra.mxu0 %v836_v21  ;;  %v848_v35 = vld [vmem:[#allocation4 + $0xb0] sm:$0xff]  ;;  %v865_v36 = vld [vmem:[#allocation4 + $0x138] sm:$0xff]  ;;  %v847_v39 = vld [vmem:[#allocation4 + $0xa8] sm:$0xff] }
  0x88   : > { %5438 = vmatprep.subr.mxu1 %v884_v22  ;;  %5399 = vmatprep.subr.mxu0 %v851_v23  ;;  %v832_v37 = vld [vmem:[#allocation4 + $0x30] sm:$0xff]  ;;  %v831_v41 = vld [vmem:[#allocation4 + $0x28] sm:$0xff]  ;;  %v846_v43 = vld [vmem:[#allocation4 + $0xa0] sm:$0xff] }
  0x89   : > { %5439 = vmatpush3.msra.mxu1 %v868_v24  ;;  %5400 = vmatpush3.msra.mxu0 %v835_v25  ;;  %v880_v38 = vld [vmem:[#allocation4 + $0x1b0] sm:$0xff]  ;;  %v879_v42 = vld [vmem:[#allocation4 + $0x1a8] sm:$0xff]  ;;  %v830_v45 = vld [vmem:[#allocation4 + $0x20] sm:$0xff] }
  0x8a   : > { %5440 = vmatprep.subr.mxu1 %v883_v26  ;;  %5401 = vmatprep.subr.mxu0 %v850_v27  ;;  %v864_v40 = vld [vmem:[#allocation4 + $0x130] sm:$0xff]  ;;  %v863_v44 = vld [vmem:[#allocation4 + $0x128] sm:$0xff]  ;;  %v878_v46 = vld [vmem:[#allocation4 + $0x1a0] sm:$0xff] }
  0x8b   : > { %5441 = vmatpush3.msra.mxu1 %v867_v28  ;;  %5402 = vmatpush3.msra.mxu0 %v834_v29  ;;  %v845_v47 = vld [vmem:[#allocation4 + $0x98] sm:$0xff]  ;;  %v862_v48 = vld [vmem:[#allocation4 + $0x120] sm:$0xff]  ;;  %v844_v51 = vld [vmem:[#allocation4 + $0x90] sm:$0xff] }
  0x8c   : > { %5442 = vmatprep.subr.mxu1 %v882_v30  ;;  %5403 = vmatprep.subr.mxu0 %v849_v31  ;;  %v829_v49 = vld [vmem:[#allocation4 + $0x18] sm:$0xff]  ;;  %v828_v53 = vld [vmem:[#allocation4 + $0x10] sm:$0xff]  ;;  %v843_v55 = vld [vmem:[#allocation4 + $0x88] sm:$0xff] }
  0x8d   : > { %5443 = vmatpush3.msra.mxu1 %v866_v32  ;;  %5404 = vmatpush3.msra.mxu0 %v833_v33  ;;  %v877_v50 = vld [vmem:[#allocation4 + $0x198] sm:$0xff]  ;;  %v876_v54 = vld [vmem:[#allocation4 + $0x190] sm:$0xff]  ;;  %v827_v57 = vld [vmem:[#allocation4 + $0x8] sm:$0xff] }
  0x8e   : > { %5444 = vmatprep.subr.mxu1 %v881_v34  ;;  %5405 = vmatprep.subr.mxu0 %v848_v35  ;;  %v861_v52 = vld [vmem:[#allocation4 + $0x118] sm:$0xff]  ;;  %v860_v56 = vld [vmem:[#allocation4 + $0x110] sm:$0xff]  ;;  %v875_v58 = vld [vmem:[#allocation4 + $0x188] sm:$0xff] }
  0x8f   : > { %5445 = vmatpush3.msra.mxu1 %v865_v36  ;;  %5406 = vmatpush3.msra.mxu0 %v832_v37  ;;  %v842_v59 = vld [vmem:[#allocation4 + $0x80] sm:$0xff]  ;;  %v809_v60 = vld [vmem:[%s6723_s7 + $0x8] sm:$0xff]  ;;  %v859_v62 = vld [vmem:[#allocation4 + $0x108] sm:$0xff] }
  0x90   : > { %5446 = vmatprep.subr.mxu1 %v880_v38  ;;  %5407 = vmatprep.subr.mxu0 %v847_v39  ;;  %v826_v61 = vld [vmem:[#allocation4] sm:$0xff]  ;;  %v808_v63 = vld [vmem:[%s6723_s7] sm:$0xff]  ;;  %v921_v1 = vld [vmem:[#allocation4 + $0x2f8] sm:$0xff] }
  0x91   : > { %5447 = vmatpush3.msra.mxu1 %v864_v40  ;;  %5408 = vmatpush3.msra.mxu0 %v831_v41  ;;  %v874_v0 = vld [vmem:[#allocation4 + $0x180] sm:$0xff]  ;;  %v811_v3 = vld [vmem:[%s6723_s7 + $0x18] sm:$0xff]  ;;  %v905_v4 = vld [vmem:[#allocation4 + $0x278] sm:$0xff] }
  0x92   : > { %5448 = vmatprep.subr.mxu1 %v879_v42  ;;  %5409 = vmatprep.subr.mxu0 %v846_v43  ;;  %v858_v2 = vld [vmem:[#allocation4 + $0x100] sm:$0xff]  ;;  %v920_v6 = vld [vmem:[#allocation4 + $0x2f0] sm:$0xff]  ;;  %v815_v8 = vld [vmem:[%s6723_s7 + $0x38] sm:$0xff] }
  0x93   : > { %5449 = vmatpush3.msra.mxu1 %v863_v44  ;;  %5410 = vmatpush3.msra.mxu0 %v830_v45  ;;  %v810_v5 = vld [vmem:[%s6723_s7 + $0x10] sm:$0xff]  ;;  %v904_v7 = vld [vmem:[#allocation4 + $0x270] sm:$0xff]  ;;  %v919_v9 = vld [vmem:[#allocation4 + $0x2e8] sm:$0xff] }
  0x94   : > { %5450 = vmatprep.subr.mxu1 %v878_v46  ;;  %5411 = vmatprep.subr.mxu0 %v845_v47  ;;  %v814_v10 = vld [vmem:[%s6723_s7 + $0x30] sm:$0xff]  ;;  %v903_v11 = vld [vmem:[#allocation4 + $0x268] sm:$0xff]  ;;  %v817_v12 = vld [vmem:[%s6723_s7 + $0x48] sm:$0xff] }
  0x95   : > { %5451 = vmatpush3.msra.mxu1 %v862_v48  ;;  %5412 = vmatpush3.msra.mxu0 %v829_v49  ;;  %v918_v13 = vld [vmem:[#allocation4 + $0x2e0] sm:$0xff]  ;;  %v816_v14 = vld [vmem:[%s6723_s7 + $0x40] sm:$0xff]  ;;  %v821_v16 = vld [vmem:[%s6723_s7 + $0x68] sm:$0x1] }
  0x96   : > { %5452 = vmatprep.subr.mxu1 %v877_v50  ;;  %5413 = vmatprep.subr.mxu0 %v844_v51  ;;  %v902_v15 = vld [vmem:[#allocation4 + $0x260] sm:$0xff]  ;;  %v917_v17 = vld [vmem:[#allocation4 + $0x2d8] sm:$0xff]  ;;  %v820_v18 = vld [vmem:[%s6723_s7 + $0x60] sm:$0x1] }
  0x97   : > { %5453 = vmatpush3.msra.mxu1 %v861_v52  ;;  %5414 = vmatpush3.msra.mxu0 %v828_v53  ;;  %v901_v19 = vld [vmem:[#allocation4 + $0x258] sm:$0xff]  ;;  %v823_v20 = vld [vmem:[%s6723_s7 + $0x78] sm:$0x1]  ;;  %v916_v21 = vld [vmem:[#allocation4 + $0x2d0] sm:$0xff] }
  0x98   : > { %5454 = vmatprep.subr.mxu1 %v876_v54  ;;  %5415 = vmatprep.subr.mxu0 %v843_v55  ;;  %v822_v22 = vld [vmem:[%s6723_s7 + $0x70] sm:$0x1]  ;;  %v900_v23 = vld [vmem:[#allocation4 + $0x250] sm:$0xff]  ;;  %v813_v24 = vld [vmem:[%s6723_s7 + $0x28] sm:$0xff] }
  0x99   : > { %5455 = vmatpush3.msra.mxu1 %v860_v56  ;;  %5416 = vmatpush3.msra.mxu0 %v827_v57  ;;  %v915_v25 = vld [vmem:[#allocation4 + $0x2c8] sm:$0xff]  ;;  %v914_v27 = vld [vmem:[#allocation4 + $0x2c0] sm:$0xff]  ;;  %v913_v29 = vld [vmem:[#allocation4 + $0x2b8] sm:$0xff] }
  0x9a   : > { %5456 = vmatprep.subr.mxu1 %v875_v58  ;;  %5417 = vmatprep.subr.mxu0 %v842_v59  ;;  %v899_v26 = vld [vmem:[#allocation4 + $0x248] sm:$0xff]  ;;  %v898_v28 = vld [vmem:[#allocation4 + $0x240] sm:$0xff]  ;;  %v897_v30 = vld [vmem:[#allocation4 + $0x238] sm:$0xff] }
  0x9b   : > { %993 = vmatprep.mubr.f32.mxu0 %v809_v60  ;;  %5418 = vmatpush3.msra.mxu0 %v826_v61  ;;  %v912_v31 = vld [vmem:[#allocation4 + $0x2b0] sm:$0xff]  ;;  %v911_v33 = vld [vmem:[#allocation4 + $0x2a8] sm:$0xff]  ;;  %v910_v35 = vld [vmem:[#allocation4 + $0x2a0] sm:$0xff] }
  0x9c   : > { %5457 = vmatpush3.msra.mxu1 %v859_v62  ;;  %994 = vmatmul.mubr.f32.vlgmr.msra.gmra.mxu0 %v808_v63  ;;  %v896_v32 = vld [vmem:[#allocation4 + $0x230] sm:$0xff]  ;;  %v895_v34 = vld [vmem:[#allocation4 + $0x228] sm:$0xff]  ;;  %v894_v36 = vld [vmem:[#allocation4 + $0x220] sm:$0xff] }
  0x9d   : > { %5458 = vmatprep.subr.mxu1 %v874_v0  ;;  %5469 = vmatprep.subr.mxu0 %v921_v1  ;;  %v909_v37 = vld [vmem:[#allocation4 + $0x298] sm:$0xff]  ;;  %v908_v39 = vld [vmem:[#allocation4 + $0x290] sm:$0xff]  ;;  %v907_v41 = vld [vmem:[#allocation4 + $0x288] sm:$0xff] }
  0x9e   : > { %5459 = vmatpush3.msra.mxu1 %v858_v2  ;;  %1073 = vmatprep.mubr.f32.mxu1 %v811_v3  ;;  %v893_v38 = vld [vmem:[#allocation4 + $0x218] sm:$0xff]  ;;  %v892_v40 = vld [vmem:[#allocation4 + $0x210] sm:$0xff]  ;;  %v891_v42 = vld [vmem:[#allocation4 + $0x208] sm:$0xff] }
  0x9f   : > { %5470 = vmatpush3.msra.mxu0 %v905_v4  ;;  %1074 = vmatmul.mubr.f32.vlgmr.msra.gmra.mxu1 %v810_v5  ;;  %v906_v43 = vld [vmem:[#allocation4 + $0x280] sm:$0xff]  ;;  %v812_v45 = vld [vmem:[%s6723_s7 + $0x20] sm:$0xff]  ;;  %v819_v46 = vld [vmem:[%s6723_s7 + $0x58] sm:$0xff] }
  0xa0   : > { %5471 = vmatprep.subr.mxu0 %v920_v6  ;;  %998 = vmatprep.mubr.f32.mxu0 %v815_v8  ;;  %v890_v44 = vld [vmem:[#allocation4 + $0x200] sm:$0xff]  ;;  %v825_v48 = vld [vmem:[%s6723_s7 + $0x88] sm:$0x1]  ;;  %v824_v49 = vld [vmem:[%s6723_s7 + $0x80] sm:$0x1] }
  0xa1   : > { %5472 = vmatpush3.msra.mxu0 %v904_v7  ;;  %1078 = vmatprep.mubr.f32.mxu1 %v817_v12  ;;  %v818_v47 = vld [vmem:[%s6723_s7 + $0x50] sm:$0xff]  ;;  %v1391_v50 = vld [vmem:[%s8717_s4 + $0x1f8] sm:$0xff]  ;;  %v1389_v58 = vld [vmem:[%s8717_s4 + $0x1e8] sm:$0xff]  ;;  %s8724_s7 = sld [smem:[#allocation81_spill]] }
  0xa2   : > { %5473 = vmatprep.subr.mxu0 %v919_v9  ;;  %999 = vmatmul.mubr.f32.gmra.mxu0 %v814_v10  ;;  %v1359_v51 = vld [vmem:[%s8717_s4 + $0xf8] sm:$0xff]  ;;  %v1390_v54 = vld [vmem:[%s8717_s4 + $0x1f0] sm:$0xff]  ;;  %v1357_v59 = vld [vmem:[%s8717_s4 + $0xe8] sm:$0xff] }
  0xa3   : > { %5474 = vmatpush3.msra.mxu0 %v903_v11  ;;  %1079 = vmatmul.mubr.f32.gmra.mxu1 %v816_v14  ;;  %v1375_v52 = vld [vmem:[%s8717_s4 + $0x178] sm:$0xff]  ;;  %v1358_v55 = vld [vmem:[%s8717_s4 + $0xf0] sm:$0xff]  ;;  %v1373_v60 = vld [vmem:[%s8717_s4 + $0x168] sm:$0xff]  ;;  %v8619_v11 = vmov 0.0  }
  0xa4   : > { %5475 = vmatprep.subr.mxu0 %v918_v13  ;;  %1003 = vmatprep.mubr.f32.mxu0 %v821_v16  ;;  %v1343_v53 = vld [vmem:[%s8717_s4 + $0x78] sm:$0xff]  ;;  %v1374_v56 = vld [vmem:[%s8717_s4 + $0x170] sm:$0xff]  ;;  %v1341_v61 = vld [vmem:[%s8717_s4 + $0x68] sm:$0xff]  ;;  %1194 = vst [vmem:[#allocation2 + $0x8] sm:$0x3f] %v8619_v11 }
  0xa5   : > { %5476 = vmatpush3.msra.mxu0 %v902_v15  ;;  %1083 = vmatprep.mubr.f32.mxu1 %v823_v20  ;;  %v1342_v57 = vld [vmem:[%s8717_s4 + $0x70] sm:$0xff]  ;;  %v1388_v62 = vld [vmem:[%s8717_s4 + $0x1e0] sm:$0xff]  ;;  %v1387_v2 = vld [vmem:[%s8717_s4 + $0x1d8] sm:$0xff]  ;;  %1193 = vst [vmem:[#allocation2] sm:$0x3f] %v8619_v11 }
  0xa6   : > { %5477 = vmatprep.subr.mxu0 %v917_v17  ;;  %1004 = vmatmul.mubr.f32.gmra.mxu0 %v820_v18  ;;  %v1356_v63 = vld [vmem:[%s8717_s4 + $0xe0] sm:$0xff]  ;;  %v1355_v3 = vld [vmem:[%s8717_s4 + $0xd8] sm:$0xff]  ;;  %v1386_v6 = vld [vmem:[%s8717_s4 + $0x1d0] sm:$0xff]  ;;  %1195 = vst [vmem:[#allocation2 + $0x10] sm:$0x3f] %v8619_v11 }
  0xa7   : > { %5478 = vmatpush3.msra.mxu0 %v901_v19  ;;  %1084 = vmatmul.mubr.f32.gmra.mxu1 %v822_v22  ;;  %v1372_v0 = vld [vmem:[%s8717_s4 + $0x160] sm:$0xff]  ;;  %v1371_v4 = vld [vmem:[%s8717_s4 + $0x158] sm:$0xff]  ;;  %v1354_v7 = vld [vmem:[%s8717_s4 + $0xd0] sm:$0xff]  ;;  %1196 = vst [vmem:[#allocation2 + $0x18] sm:$0x3f] %v8619_v11  ;;  %s7422_s24 = scalar_lea.vmem %s8724_s7, %s6015_s28  ;;  %s8860_s7 = sld [smem:[#allocation82_spill]] }
  0xa8   : > { %5479 = vmatprep.subr.mxu0 %v916_v21  ;;  %1153 = vmatprep.mubr.f32.mxu0 %v813_v24  ;;  %v1340_v1 = vld [vmem:[%s8717_s4 + $0x60] sm:$0xff]  ;;  %v1339_v5 = vld [vmem:[%s8717_s4 + $0x58] sm:$0xff]  ;;  %v1370_v8 = vld [vmem:[%s8717_s4 + $0x150] sm:$0xff]  ;;  %1197 = vst [vmem:[#allocation2 + $0x20] sm:$0x3f] %v8619_v11 }
  0xa9   : > { %5480 = vmatpush3.msra.mxu0 %v900_v23  ;;  %5510 = vmatprep.subr.mxu1 %v1359_v51  ;;  %v1338_v9 = vld [vmem:[%s8717_s4 + $0x50] sm:$0xff]  ;;  %v1385_v10 = vld [vmem:[%s8717_s4 + $0x1c8] sm:$0xff]  ;;  %1198 = vst [vmem:[#allocation2 + $0x28] sm:$0x3f] %v8619_v11  ;;  %2812 = vst [vmem:[#allocation3] sm:$0x3f] %v8619_v11 }
  0xaa   : > { %5481 = vmatprep.subr.mxu0 %v915_v25  ;;  %5511 = vmatpush3.msra.mxu1 %v1343_v53  ;;  %2813 = vst [vmem:[#allocation3 + $0x8] sm:$0x3f] %v8619_v11  ;;  %2814 = vst [vmem:[#allocation3 + $0x10] sm:$0x3f] %v8619_v11  ;;  %v1353_v12 = vld [vmem:[%s8717_s4 + $0xc8] sm:$0xff]  ;;  %v1384_v15 = vld [vmem:[%s8717_s4 + $0x1c0] sm:$0xff] }
  0xab   : > { %5482 = vmatpush3.msra.mxu0 %v899_v26  ;;  %5512 = vmatprep.subr.mxu1 %v1358_v55  ;;  %2815 = vst [vmem:[#allocation3 + $0x18] sm:$0x3f] %v8619_v11  ;;  %2816 = vst [vmem:[#allocation3 + $0x20] sm:$0x3f] %v8619_v11  ;;  %v1369_v13 = vld [vmem:[%s8717_s4 + $0x148] sm:$0xff]  ;;  %v1352_v16 = vld [vmem:[%s8717_s4 + $0xc0] sm:$0xff] }
  0xac   : > { %5483 = vmatprep.subr.mxu0 %v914_v27  ;;  %5513 = vmatpush3.msra.mxu1 %v1342_v57  ;;  %2817 = vst [vmem:[#allocation3 + $0x28] sm:$0x3f] %v8619_v11  ;;  %2818 = vst [vmem:[#allocation3 + $0x30] sm:$0x3f] %v8619_v11  ;;  %v1337_v14 = vld [vmem:[%s8717_s4 + $0x48] sm:$0xff]  ;;  %v1368_v17 = vld [vmem:[%s8717_s4 + $0x140] sm:$0xff] }
  0xad   : > { %5484 = vmatpush3.msra.mxu0 %v898_v28  ;;  %5514 = vmatprep.subr.mxu1 %v1357_v59  ;;  %2819 = vst [vmem:[#allocation3 + $0x38] sm:$0x3f] %v8619_v11  ;;  %2820 = vst [vmem:[#allocation3 + $0x40] sm:$0x3f] %v8619_v11  ;;  %v1336_v18 = vld [vmem:[%s8717_s4 + $0x40] sm:$0xff]  ;;  %v1383_v19 = vld [vmem:[%s8717_s4 + $0x1b8] sm:$0xff] }
  0xae   : > { %5485 = vmatprep.subr.mxu0 %v913_v29  ;;  %5515 = vmatpush3.msra.mxu1 %v1341_v61  ;;  %2821 = vst [vmem:[#allocation3 + $0x48] sm:$0x3f] %v8619_v11  ;;  %2822 = vst [vmem:[#allocation3 + $0x50] sm:$0x3f] %v8619_v11  ;;  %v1351_v20 = vld [vmem:[%s8717_s4 + $0xb8] sm:$0xff]  ;;  %v1382_v23 = vld [vmem:[%s8717_s4 + $0x1b0] sm:$0xff] }
  0xaf   : > { %5486 = vmatpush3.msra.mxu0 %v897_v30  ;;  %5516 = vmatprep.subr.mxu1 %v1356_v63  ;;  %2823 = vst [vmem:[#allocation3 + $0x58] sm:$0x3f] %v8619_v11  ;;  %2824 = vst [vmem:[#allocation3 + $0x60] sm:$0x3f] %v8619_v11  ;;  %v1367_v21 = vld [vmem:[%s8717_s4 + $0x138] sm:$0xff]  ;;  %v1350_v24 = vld [vmem:[%s8717_s4 + $0xb0] sm:$0xff] }
  0xb0   : > { %5487 = vmatprep.subr.mxu0 %v912_v31  ;;  %5517 = vmatpush3.msra.mxu1 %v1340_v1  ;;  %2825 = vst [vmem:[#allocation3 + $0x68] sm:$0x3f] %v8619_v11  ;;  %2826 = vst [vmem:[#allocation3 + $0x70] sm:$0x3f] %v8619_v11  ;;  %v1335_v22 = vld [vmem:[%s8717_s4 + $0x38] sm:$0xff]  ;;  %v1366_v25 = vld [vmem:[%s8717_s4 + $0x130] sm:$0xff] }
  0xb1   : > { %5488 = vmatpush3.msra.mxu0 %v896_v32  ;;  %5518 = vmatprep.subr.mxu1 %v1355_v3  ;;  %2827 = vst [vmem:[#allocation3 + $0x78] sm:$0x3f] %v8619_v11  ;;  %2828 = vst [vmem:[#allocation3 + $0x80] sm:$0x3f] %v8619_v11  ;;  %v1334_v26 = vld [vmem:[%s8717_s4 + $0x30] sm:$0xff]  ;;  %v1381_v27 = vld [vmem:[%s8717_s4 + $0x1a8] sm:$0xff] }
  0xb2   : > { %5489 = vmatprep.subr.mxu0 %v911_v33  ;;  %5519 = vmatpush3.msra.mxu1 %v1339_v5  ;;  %2829 = vst [vmem:[#allocation3 + $0x88] sm:$0x3f] %v8619_v11  ;;  %2830 = vst [vmem:[#allocation3 + $0x90] sm:$0x3f] %v8619_v11  ;;  %v1349_v28 = vld [vmem:[%s8717_s4 + $0xa8] sm:$0xff]  ;;  %v1380_v31 = vld [vmem:[%s8717_s4 + $0x1a0] sm:$0xff] }
  0xb3   : > { %5490 = vmatpush3.msra.mxu0 %v895_v34  ;;  %5520 = vmatprep.subr.mxu1 %v1354_v7  ;;  %2831 = vst [vmem:[#allocation3 + $0x98] sm:$0x3f] %v8619_v11  ;;  %2832 = vst [vmem:[#allocation3 + $0xa0] sm:$0x3f] %v8619_v11  ;;  %v1365_v29 = vld [vmem:[%s8717_s4 + $0x128] sm:$0xff]  ;;  %v1348_v32 = vld [vmem:[%s8717_s4 + $0xa0] sm:$0xff] }
  0xb4   : > { %5491 = vmatprep.subr.mxu0 %v910_v35  ;;  %2833 = vst [vmem:[#allocation3 + $0xa8] sm:$0x3f] %v8619_v11  ;;  %2834 = vst [vmem:[#allocation3 + $0xb0] sm:$0x3f] %v8619_v11  ;;  %5521 = vmatpush3.msra.mxu1 %v1338_v9  ;;  %v1333_v30 = vld [vmem:[%s8717_s4 + $0x28] sm:$0xff]  ;;  %v1364_v33 = vld [vmem:[%s8717_s4 + $0x120] sm:$0xff] }
  0xb5   : > { %5492 = vmatpush3.msra.mxu0 %v894_v36  ;;  %2835 = vst [vmem:[#allocation3 + $0xb8] sm:$0x3f] %v8619_v11  ;;  %5522 = vmatprep.subr.mxu1 %v1353_v12  ;;  %v1332_v34 = vld [vmem:[%s8717_s4 + $0x20] sm:$0xff]  ;;  %v1379_v35 = vld [vmem:[%s8717_s4 + $0x198] sm:$0xff]  ;;  %vm6978_vm2 = vmor %vm1204_vm0, %vm1205_vm1 }
  0xb6   : > { %5493 = vmatprep.subr.mxu0 %v909_v37  ;;  %5523 = vmatpush3.msra.mxu1 %v1337_v14  ;;  %v1347_v36 = vld [vmem:[%s8717_s4 + $0x98] sm:$0xff]  ;;  %vm6991_vm5 = vmor %vm1259_vm3, %vm1260_vm4 }
  0xb7   : > { %5494 = vmatpush3.msra.mxu0 %v893_v38  ;;  %5524 = vmatprep.subr.mxu1 %v1352_v16  ;;  %v1363_v37 = vld [vmem:[%s8717_s4 + $0x118] sm:$0xff] }
  0xb8   : > { %5495 = vmatprep.subr.mxu0 %v908_v39  ;;  %5525 = vmatpush3.msra.mxu1 %v1336_v18  ;;  %v1331_v38 = vld [vmem:[%s8717_s4 + $0x18] sm:$0xff]  ;;  %v1378_v39 = vld [vmem:[%s8717_s4 + $0x190] sm:$0xff] }
  0xb9   : > { %5496 = vmatpush3.msra.mxu0 %v892_v40  ;;  %5526 = vmatprep.subr.mxu1 %v1351_v20  ;;  %v1346_v40 = vld [vmem:[%s8717_s4 + $0x90] sm:$0xff]  ;;  %v1455_v51 = vld [vmem:[%s8717_s4 + $0x3f8] sm:$0xff] }
  0xba   : > { %5497 = vmatprep.subr.mxu0 %v907_v41  ;;  %5527 = vmatpush3.msra.mxu1 %v1335_v22  ;;  %v1362_v41 = vld [vmem:[%s8717_s4 + $0x110] sm:$0xff] }
  0xbb   : > { %5498 = vmatpush3.msra.mxu0 %v891_v42  ;;  %5528 = vmatprep.subr.mxu1 %v1350_v24  ;;  %v1330_v42 = vld [vmem:[%s8717_s4 + $0x10] sm:$0xff] }
  0xbc   : > { %5499 = vmatprep.subr.mxu0 %v906_v43  ;;  %5529 = vmatpush3.msra.mxu1 %v1334_v26  ;;  %v1377_v43 = vld [vmem:[%s8717_s4 + $0x188] sm:$0xff] }
  0xbd   : > { %5500 = vmatpush3.msra.mxu0 %v890_v44  ;;  %5530 = vmatprep.subr.mxu1 %v1349_v28  ;;  %v1345_v44 = vld [vmem:[%s8717_s4 + $0x88] sm:$0xff] }
  0xbe   : > { %1154 = vmatmul.mubr.f32.vlgmr.msra.gmra.mxu0 %v812_v45  ;;  %5548 = vmatprep.subr.mxu0 %v1391_v50  ;;  %v1361_v45 = vld [vmem:[%s8717_s4 + $0x108] sm:$0xff]  ;;  %v1328_v50 = vld [vmem:[%s8717_s4] sm:$0xff] }
  0xbf   : > { %1158 = vmatprep.mubr.f32.mxu0 %v819_v46  ;;  %5549 = vmatpush3.msra.mxu0 %v1375_v52  ;;  %v1329_v46 = vld [vmem:[%s8717_s4 + $0x8] sm:$0xff]  ;;  %v1423_v52 = vld [vmem:[%s8717_s4 + $0x2f8] sm:$0xff] }
  0xc0   : > { %5550 = vmatprep.subr.mxu0 %v1390_v54  ;;  %5531 = vmatpush3.msra.mxu1 %v1333_v30 }
  0xc1   : > { %5551 = vmatpush3.msra.mxu0 %v1374_v56  ;;  %5532 = vmatprep.subr.mxu1 %v1348_v32 }
  0xc2   : > { %1159 = vmatmul.mubr.f32.gmra.mxu0 %v818_v47  ;;  %5552 = vmatprep.subr.mxu0 %v1389_v58  ;;  %v1376_v47 = vld [vmem:[%s8717_s4 + $0x180] sm:$0xff] }
  0xc3   : > { %1163 = vmatprep.mubr.f32.mxu0 %v825_v48  ;;  %5553 = vmatpush3.msra.mxu0 %v1373_v60  ;;  %v1344_v48 = vld [vmem:[%s8717_s4 + $0x80] sm:$0xff] }
  0xc4   : > { %5554 = vmatprep.subr.mxu0 %v1388_v62  ;;  %5533 = vmatpush3.msra.mxu1 %v1332_v34  ;;  %v5349_v62 = vld [vmem:[%s8718_s1] ss:$0 sm:$0xff] }
  0xc5   : > { %5555 = vmatpush3.msra.mxu0 %v1372_v0  ;;  %5534 = vmatprep.subr.mxu1 %v1347_v36 }
  0xc6   : > { %1164 = vmatmul.mubr.f32.gmra.mxu0 %v824_v49  ;;  %5556 = vmatprep.subr.mxu0 %v1387_v2  ;;  %v1360_v49 = vld [vmem:[%s8717_s4 + $0x100] sm:$0xff] }
  0xc7   : > { %5557 = vmatpush3.msra.mxu0 %v1371_v4  ;;  %5535 = vmatpush3.msra.mxu1 %v1331_v38 }
  0xc8   : > { %5558 = vmatprep.subr.mxu0 %v1386_v6  ;;  %5536 = vmatprep.subr.mxu1 %v1346_v40 }
  0xc9   : > { %5559 = vmatpush3.msra.mxu0 %v1370_v8  ;;  %5537 = vmatpush3.msra.mxu1 %v1330_v42 }
  0xca   : > { %5560 = vmatprep.subr.mxu0 %v1385_v10  ;;  %5538 = vmatprep.subr.mxu1 %v1345_v44 }
  0xcb   : > { %5561 = vmatpush3.msra.mxu0 %v1369_v13  ;;  %5539 = vmatpush3.msra.mxu1 %v1329_v46 }
  0xcc   : > { %5562 = vmatprep.subr.mxu0 %v1384_v15  ;;  %5540 = vmatprep.subr.mxu1 %v1344_v48 }
  0xcd   : > { %5563 = vmatpush3.msra.mxu0 %v1368_v17  ;;  %5541 = vmatpush3.msra.mxu1 %v1328_v50 }
  0xce   : > { %5564 = vmatprep.subr.mxu0 %v1383_v19  ;;  %5586 = vmatprep.subr.mxu1 %v1423_v52 }
  0xcf   : > { %5565 = vmatpush3.msra.mxu0 %v1367_v21 }
  0xd0   : > { %5566 = vmatprep.subr.mxu0 %v1382_v23 }
  0xd1   : > { %5567 = vmatpush3.msra.mxu0 %v1366_v25 }
  0xd2   : > { %5568 = vmatprep.subr.mxu0 %v1381_v27 }
  0xd3   : > { %5569 = vmatpush3.msra.mxu0 %v1365_v29 }
  0xd4   : > { %5570 = vmatprep.subr.mxu0 %v1380_v31 }
  0xd5   : > { %5571 = vmatpush3.msra.mxu0 %v1364_v33 }
  0xd6   : > { %5572 = vmatprep.subr.mxu0 %v1379_v35 }
  0xd7   : > { %5573 = vmatpush3.msra.mxu0 %v1363_v37 }
  0xd8   : > { %5574 = vmatprep.subr.mxu0 %v1378_v39 }
  0xd9   : > { %5575 = vmatpush3.msra.mxu0 %v1362_v41 }
  0xda   : > { %5576 = vmatprep.subr.mxu0 %v1377_v43 }
  0xdb   : > { %5577 = vmatpush3.msra.mxu0 %v1361_v45 }
  0xdc   : > { %5578 = vmatprep.subr.mxu0 %v1376_v47  ;;  %v1229_v47 = vld [vmem:[#allocation2] sm:$0x3f] }
  0xdd   : > { %5579 = vmatpush3.msra.mxu0 %v1360_v49 }
  0xde   : > { %5624 = vmatprep.subr.mxu0 %v1455_v51 }
 0x15c   : > { %v5419_v53 = vpop.f32.mrf.mxu0 }
 0x15e   : > { %v5420_v54 = vpop.f32.mrf.mxu0 }
 0x15f   : > { %v5460_v55 = vpop.f32.mrf.mxu1  ;;  %v5421_v61 = vadd.f32 %v5420_v54, %v5419_v53  ;;  %v1239_v53 = vcombine.high %v1229_v47, %v1229_v47 }
 0x161   : > { %v5461_v57 = vpop.f32.mrf.mxu1  ;;  %v996_v2 = vadd.f32 %v5421_v61, %v5349_v62  ;;  %v5354_v61 = vrot.slane %v1229_v47, 9 }
 0x162   : > { %v5422_v56 = vpop.f32.mrf.mxu0  ;;  %v5462_v3 = vadd.f32 %v5461_v57, %v5460_v55 }
 0x163   : > { %v5463_v59 = vpop.f32.mrf.mxu1 }
 0x164   : > { %v5423_v58 = vpop.f32.mrf.mxu0  ;;  %v1076_v9 = vadd.f32 %v5462_v3, %v996_v2  ;;  %v2065_v2 = vld [vmem:[#allocation7 + $0x2d8] sm:$0xff] }
 0x165   : > { %v5464_v63 = vpop.f32.mrf.mxu1  ;;  %v5424_v0 = vadd.f32 %v5423_v58, %v5422_v56 }
 0x166   : > { %v5425_v60 = vpop.f32.mrf.mxu0  ;;  %v5465_v7 = vadd.f32 %v5464_v63, %v5463_v59  ;;  %v1245_v63 = vrot.slane %v1239_v53, 5 }
 0x167   : > { %v5466_v4 = vpop.f32.mrf.mxu1  ;;  %v1001_v6 = vadd.f32 %v5424_v0, %v5349_v62  ;;  %v1264_v0 = vrot.slane %v1239_v53, 6  ;;  %v1436_v53 = vld [vmem:[%s8717_s4 + $0x360] sm:$0xff] }
 0x168   : > { %v5426_v1 = vpop.f32.mrf.mxu0 }
 0x169   : > { %v5427_v10 = vadd.f32 %v5426_v1, %v5425_v60  ;;  %v5467_v13 = vpop.f32.mrf.mxu1  ;;  %v1081_v16 = vadd.f32 %v5465_v7, %v1001_v6  ;;  %v5358_v1 = vrot.slane %v1229_v47, 10  ;;  %v1246_v7 = vsel %vm6978_vm2, %v5354_v61, %v1245_v63  ;;  %v1418_v61 = vld [vmem:[%s8717_s4 + $0x2d0] sm:$0xff] }
 0x16a   : > { %v5468_v19 = vadd.f32 %v5467_v13, %v5466_v4  ;;  %v7112_v63 = vld [vmem:[%s8717_s4 + $0x250] sm:$0xff] }
 0x16b   : > { %v1006_v18 = vadd.f32 %v5427_v10, %v5349_v62 }
 0x16d   : > { %v1086_v26 = vadd.f32 %v5468_v19, %v1006_v18 }
 0x17e   : > { %v5501_v5 = vpop.f32.mrf.mxu0 }
 0x180   : > { %v5502_v8 = vpop.f32.mrf.mxu0 }
 0x181   : > { %v5503_v12 = vadd.f32 %v5502_v8, %v5501_v5 }
 0x182   : > { %v5504_v14 = vpop.f32.mrf.mxu0 }
 0x183   : > { %v1156_v15 = vadd.f32 %v5503_v12, %v1076_v9  ;;  %v1265_v9 = vsel %vm6991_vm5, %v5358_v1, %v1264_v0  ;;  %v1449_v0 = vld [vmem:[%s8717_s4 + $0x3c8] sm:$0xff] }
 0x184   : > { %v5505_v17 = vpop.f32.mrf.mxu0  ;;  %v1417_v1 = vld [vmem:[%s8717_s4 + $0x2c8] sm:$0xff] }
 0x185   : > { %v5350_v20 = vmul.f32 -1.702, %v1156_v15  ;;  %v5506_v21 = vadd.f32 %v5505_v17, %v5504_v14 }
 0x186   : > { %v5507_v22 = vpop.f32.mrf.mxu0 }
 0x187   : > { %v1175_v23 = vmul.f32 1.442695, %v5350_v20  ;;  %v1161_v24 = vadd.f32 %v5506_v21, %v1081_v16 }
 0x188   : > { %v5508_v25 = vpop.f32.mrf.mxu0 }
 0x189   : > { %6135 = vpow2.f32 %v1175_v23  ;;  %v5351_v27 = vmul.f32 -1.702, %v1161_v24  ;;  %v5509_v28 = vadd.f32 %v5508_v25, %v5507_v22  ;;  %v1439_v22 = vld [vmem:[%s8717_s4 + $0x378] sm:$0xff] }
 0x18b   : > { %v1177_v29 = vmul.f32 1.442695, %v5351_v27  ;;  %v1166_v30 = vadd.f32 %v5509_v28, %v1086_v26  ;;  %v7015_v27 = vld [vmem:[%s8717_s4 + $0x278] sm:$0xff] }
 0x18d   : > { %6137 = vpow2.f32 %v1177_v29  ;;  %v5352_v31 = vmul.f32 -1.702, %v1166_v30 }
 0x18f   : > { %v1179_v32 = vmul.f32 1.442695, %v5352_v31  ;;  %v1454_v31 = vld [vmem:[%s8717_s4 + $0x3f0] sm:$0xff] }
 0x191   : > { %6139 = vpow2.f32 %v1179_v32  ;;  %v1422_v32 = vld [vmem:[%s8717_s4 + $0x2f0] sm:$0xff] }
 0x196   : > { %v6136_v33 = vpop.eup %6135 }
 0x197   : > { %v1181_v34 = vadd.f32 1.0, %v6136_v33 }
 0x199   : > { %6141 = vrcp.f32 %v1181_v34 }
 0x19a   : > { %v6138_v35 = vpop.eup %6137 }
 0x19b   : > { %v1182_v36 = vadd.f32 1.0, %v6138_v35 }
 0x19d   : > { %6143 = vrcp.f32 %v1182_v36  ;;  %v1438_v36 = vld [vmem:[%s8717_s4 + $0x370] sm:$0xff] }
 0x19e   : > { %v6140_v37 = vpop.eup %6139 }
 0x19f   : > { %v1183_v38 = vadd.f32 1.0, %v6140_v37  ;;  %v7029_v37 = vld [vmem:[%s8717_s4 + $0x270] sm:$0xff] }
 0x1a1   : > { %6145 = vrcp.f32 %v1183_v38 }
 0x1a6   : > { %v6142_v39 = vpop.eup %6141 }
 0x1a7   : > { %v6974_v40 = vmul.f32 %v6142_v39, %v1156_v15 }
 0x1a9   : > { %v1202_v41 = vcombine.high %v6974_v40, %v6974_v40  ;;  %v5353_v44 = vrot.slane %v6974_v40, 9 }
 0x1aa   : > { %v6144_v42 = vpop.eup %6143 }
 0x1ab   : > { %v1209_v45 = vrot.slane %v1202_v41, 5  ;;  %v1191_v46 = vmul.f32 %v6144_v42, %v1161_v24  ;;  %v1453_v41 = vld [vmem:[%s8717_s4 + $0x3e8] sm:$0xff] }
 0x1ad   : > { %v1210_v48 = vsel %vm6978_vm2, %v5353_v44, %v1209_v45  ;;  %v1211_v49 = vrot.slane %v1209_v45, 4  ;;  %v1203_v50 = vcombine.high %v1191_v46, %v1191_v46  ;;  %v1212_v51 = vrot.slane %v1191_v46, 5 }
 0x1ae   : > { %v6146_v52 = vpop.eup %6145  ;;  %1225 = vst [vmem:[#allocation2 + $0x9] sm:$0xf] %v1210_v48  ;;  %v1437_v48 = vld [vmem:[%s8717_s4 + $0x368] sm:$0xff] }
 0x1af   : > { %v1213_v54 = vsel %vm6978_vm2, %v1211_v49, %v1212_v51  ;;  %v1214_v55 = vrot.slane %v1212_v51, 4  ;;  %v1215_v56 = vrot.slane %v1203_v50, 5  ;;  %v1192_v57 = vmul.f32 %v6146_v52, %v1166_v30  ;;  %v7066_v50 = vld [vmem:[%s8717_s4 + $0x268] sm:$0xff]  ;;  %v1452_v51 = vld [vmem:[%s8717_s4 + $0x3e0] sm:$0xff] }
 0x1b0   : > { %1226 = vst [vmem:[#allocation2 + $0x11] sm:$0xf] %v1213_v54  ;;  %v1420_v52 = vld [vmem:[%s8717_s4 + $0x2e0] sm:$0xff] }
 0x1b1   : > { %v1216_v58 = vsel %vm6978_vm2, %v1214_v55, %v1215_v56  ;;  %v1217_v59 = vrot.slane %v1215_v56, 4  ;;  %v1218_v60 = vrot.slane %v1192_v57, 5  ;;  %v7083_v55 = vld [vmem:[%s8717_s4 + $0x260] sm:$0xff]  ;;  %v1451_v56 = vld [vmem:[%s8717_s4 + $0x3d8] sm:$0xff] }
 0x1b2   : > { %1227 = vst [vmem:[#allocation2 + $0x19] sm:$0xf] %v1216_v58  ;;  %v1419_v57 = vld [vmem:[%s8717_s4 + $0x2d8] sm:$0xff] }
 0x1b3   : > { %v1219_v62 = vsel %vm6978_vm2, %v1217_v59, %v1218_v60  ;;  %v1435_v58 = vld [vmem:[%s8717_s4 + $0x358] sm:$0xff]  ;;  %v1450_v60 = vld [vmem:[%s8717_s4 + $0x3d0] sm:$0xff] }
 0x1b4   : > { %1228 = vst [vmem:[#allocation2 + $0x21] sm:$0xf] %v1219_v62  ;;  %v7097_v59 = vld [vmem:[%s8717_s4 + $0x258] sm:$0xff]  ;;  %v1434_v62 = vld [vmem:[%s8717_s4 + $0x350] sm:$0xff] }
 0x1b5   : > { %v1230_v3 = vld [vmem:[#allocation2 + $0x8] sm:$0x3f] }
 0x1b6   : > { %v1240_v4 = vcombine.high %v1230_v3, %v1230_v3  ;;  %v5359_v6 = vrot.slane %v1230_v3, 10  ;;  %v5355_v8 = vrot.slane %v1230_v3, 9  ;;  %v1298_v23 = vcombine.low %v1229_v47, %v1230_v3  ;;  %v1421_v47 = vld [vmem:[%s8717_s4 + $0x2e8] sm:$0xff] }
 0x1b7   : > { %v1231_v5 = vld [vmem:[#allocation2 + $0x10] sm:$0x3f] }
 0x1b8   : > { %v1310_v10 = vcombine.low %v1230_v3, %v1231_v5  ;;  %v1249_v12 = vrot.slane %v1240_v4, 5  ;;  %v1268_v13 = vrot.slane %v1240_v4, 6  ;;  %v1241_v14 = vcombine.high %v1231_v5, %v1231_v5  ;;  %v1433_v3 = vld [vmem:[%s8717_s4 + $0x348] sm:$0xff] }
 0x1b9   : > { %v1232_v15 = vld [vmem:[#allocation2 + $0x18] sm:$0x3f]  ;;  %v5356_v28 = vrot.slane %v1231_v5, 9  ;;  %v5360_v33 = vrot.slane %v1231_v5, 10  ;;  %v7127_v4 = vld [vmem:[%s8717_s4 + $0x248] sm:$0xff] }
 0x1ba   : > { %1618 = vmatprep.mubr.f32.mxu0 %v1310_v10  ;;  %v7001_v16 = vsel %vm6978_vm2, %v5355_v8, %v1249_v12  ;;  %v1269_v17 = vsel %vm6991_vm5, %v5359_v6, %v1268_v13  ;;  %v1242_v18 = vcombine.high %v1232_v15, %v1232_v15  ;;  %v1253_v19 = vrot.slane %v1241_v14, 5  ;;  %v1416_v6 = vld [vmem:[%s8717_s4 + $0x2c0] sm:$0xff]  ;;  %v1415_v10 = vld [vmem:[%s8717_s4 + $0x2b8] sm:$0xff] }
 0x1bb   : > { %v1302_v20 = vcombine.low %v1246_v7, %v7001_v16  ;;  %v1306_v21 = vcombine.low %v1265_v9, %v1269_v17  ;;  %v7009_v24 = vld [vmem:[#allocation2 + $0x20] sm:$0x3f]  ;;  %v1272_v25 = vrot.slane %v1241_v14, 6  ;;  %v5357_v29 = vrot.slane %v1232_v15, 9  ;;  %v1447_v9 = vld [vmem:[%s8717_s4 + $0x3b8] sm:$0xff]  ;;  %v1446_v14 = vld [vmem:[%s8717_s4 + $0x3b0] sm:$0xff] }
 0x1bc   : > { %v1311_v26 = vcombine.low %v1232_v15, %v7009_v24  ;;  %v1257_v30 = vrot.slane %v1242_v18, 5  ;;  %v5361_v34 = vrot.slane %v1232_v15, 10  ;;  %v1276_v35 = vrot.slane %v1242_v18, 6  ;;  %v1432_v7 = vld [vmem:[%s8717_s4 + $0x340] sm:$0xff]  ;;  %v1431_v12 = vld [vmem:[%s8717_s4 + $0x338] sm:$0xff]  ;;  %v7172_v18 = vld [vmem:[%s8717_s4 + $0x230] sm:$0xff] }
 0x1bd   : > { %1543 = vmatprep.mubr.f32.mxu1 %v1302_v20  ;;  %1619 = vmatmul.mubr.f32.vlgmr.msra.gmra.mxu0 %v1306_v21  ;;  %v7033_v38 = vsel %vm6978_vm2, %v5356_v28, %v1253_v19  ;;  %v1273_v44 = vsel %vm6991_vm5, %v5360_v33, %v1272_v25  ;;  %v7061_v49 = vcombine.low %v1231_v5, %v1232_v15  ;;  %v1448_v5 = vld [vmem:[%s8717_s4 + $0x3c0] sm:$0xff]  ;;  %v7157_v13 = vld [vmem:[%s8717_s4 + $0x238] sm:$0xff]  ;;  %v1414_v15 = vld [vmem:[%s8717_s4 + $0x2b0] sm:$0xff] }
 0x1be   : > { %5625 = vmatpush3.msra.mxu0 %v1439_v22  ;;  %1544 = vmatmul.mubr.f32.vlgmr.msra.gmra.mxu1 %v1298_v23  ;;  %v7037_v39 = vsel %vm6978_vm2, %v5357_v29, %v1257_v30  ;;  %v7049_v45 = vsel %vm6991_vm5, %v5361_v34, %v1276_v35  ;;  %v1318_v54 = vcombine.low %v1269_v17, %v1273_v44  ;;  %v7142_v8 = vld [vmem:[%s8717_s4 + $0x240] sm:$0xff]  ;;  %v1430_v17 = vld [vmem:[%s8717_s4 + $0x330] sm:$0xff]  ;;  %v1445_v19 = vld [vmem:[%s8717_s4 + $0x3a8] sm:$0xff] }
 0x1bf   : > { %1623 = vmatprep.mubr.f32.mxu0 %v1311_v26  ;;  %5587 = vmatpush3.msra.mxu1 %v7015_v27  ;;  %v1303_v42 = vcombine.low %v7033_v38, %v7037_v39  ;;  %v7052_v46 = vcombine.low %v1273_v44, %v7049_v45  ;;  %v1413_v20 = vld [vmem:[%s8717_s4 + $0x2a8] sm:$0xff]  ;;  %v1444_v25 = vld [vmem:[%s8717_s4 + $0x3a0] sm:$0xff]  ;;  %v1443_v30 = vld [vmem:[%s8717_s4 + $0x398] sm:$0xff] }
 0x1c0   : > { %5626 = vmatprep.subr.mxu0 %v1454_v31  ;;  %5588 = vmatprep.subr.mxu1 %v1422_v32  ;;  %v1429_v21 = vld [vmem:[%s8717_s4 + $0x328] sm:$0xff]  ;;  %v1412_v26 = vld [vmem:[%s8717_s4 + $0x2a0] sm:$0xff]  ;;  %v1279_v31 = vcombine.high %v7009_v24, %v7009_v24  ;;  %v1411_v33 = vld [vmem:[%s8717_s4 + $0x298] sm:$0xff] }
 0x1c1   : > { %5627 = vmatpush3.msra.mxu0 %v1438_v36  ;;  %5589 = vmatpush3.msra.mxu1 %v7029_v37  ;;  %v7184_v22 = vld [vmem:[#allocation2 + $0x28] sm:$0x3f]  ;;  %v1428_v28 = vld [vmem:[%s8717_s4 + $0x320] sm:$0xff]  ;;  %v1427_v34 = vld [vmem:[%s8717_s4 + $0x318] sm:$0xff] }
 0x1c2   : > { %5628 = vmatprep.subr.mxu0 %v1453_v41  ;;  %1548 = vmatprep.mubr.f32.mxu1 %v1303_v42  ;;  %v7189_v23 = vld [vmem:[%s8717_s4 + $0x228] sm:$0xff]  ;;  %v7204_v29 = vld [vmem:[%s8717_s4 + $0x220] sm:$0xff]  ;;  %v7213_v32 = vcombine.high %v7184_v22, %v7184_v22  ;;  %v7225_v35 = vld [vmem:[%s8717_s4 + $0x218] sm:$0xff] }
 0x1c3   : > { %1624 = vmatmul.mubr.f32.gmra.mxu0 %v7052_v46  ;;  %5590 = vmatprep.subr.mxu1 %v1421_v47  ;;  %v1442_v36 = vld [vmem:[%s8717_s4 + $0x390] sm:$0xff]  ;;  %v1441_v47 = vld [vmem:[%s8717_s4 + $0x388] sm:$0xff] }
 0x1c4   : > { %5629 = vmatpush3.msra.mxu0 %v1437_v48  ;;  %1549 = vmatmul.mubr.f32.gmra.mxu1 %v7061_v49  ;;  %v1410_v41 = vld [vmem:[%s8717_s4 + $0x290] sm:$0xff]  ;;  %v1282_v48 = vrot.slane %v1279_v31, 5 }
 0x1c5   : > { %5591 = vmatpush3.msra.mxu1 %v7066_v50  ;;  %5630 = vmatprep.subr.mxu0 %v1452_v51  ;;  %v7240_v44 = vld [vmem:[%s8717_s4 + $0x210] sm:$0xff]  ;;  %v5364_v51 = vrot.slane %v7184_v22, 9 }
 0x1c6   : > { %1768 = vmatprep.mubr.f32.mxu0 %v1303_v42  ;;  %5592 = vmatprep.subr.mxu1 %v1420_v52  ;;  %v1426_v42 = vld [vmem:[%s8717_s4 + $0x310] sm:$0xff]  ;;  %v1292_v52 = vrot.slane %v7213_v32, 5 }
 0x1c7   : > { %1693 = vmatprep.mubr.f32.mxu1 %v1318_v54  ;;  %5631 = vmatpush3.msra.mxu0 %v1436_v53  ;;  %v1409_v53 = vld [vmem:[%s8717_s4 + $0x288] sm:$0xff] }
 0x1c8   : > { %5593 = vmatpush3.msra.mxu1 %v7083_v55  ;;  %5632 = vmatprep.subr.mxu0 %v1451_v56  ;;  %v1425_v54 = vld [vmem:[%s8717_s4 + $0x308] sm:$0xff]  ;;  %v1286_v56 = vrot.slane %v1279_v31, 6  ;;  %v2054_v31 = vld [vmem:[#allocation7 + $0x280] sm:$0xff] }
 0x1c9   : > { %5594 = vmatprep.subr.mxu1 %v1419_v57  ;;  %5633 = vmatpush3.msra.mxu0 %v1435_v58  ;;  %v7257_v57 = vld [vmem:[%s8717_s4 + $0x208] sm:$0xff]  ;;  %v1440_v58 = vld [vmem:[%s8717_s4 + $0x380] sm:$0xff] }
 0x1ca   : > { %5595 = vmatpush3.msra.mxu1 %v7097_v59  ;;  %5634 = vmatprep.subr.mxu0 %v1450_v60  ;;  %v5362_v60 = vrot.slane %v7009_v24, 9 }
 0x1cb   : > { %5596 = vmatprep.subr.mxu1 %v1418_v61  ;;  %5635 = vmatpush3.msra.mxu0 %v1434_v62  ;;  %v1408_v61 = vld [vmem:[%s8717_s4 + $0x280] sm:$0xff] }
 0x1cc   : > { %5597 = vmatpush3.msra.mxu1 %v7112_v63  ;;  %5636 = vmatprep.subr.mxu0 %v1449_v0  ;;  %v1424_v62 = vld [vmem:[%s8717_s4 + $0x300] sm:$0xff]  ;;  %v5363_v0 = vrot.slane %v7009_v24, 10 }
 0x1cd   : > { %5598 = vmatprep.subr.mxu1 %v1417_v1  ;;  %5637 = vmatpush3.msra.mxu0 %v1433_v3  ;;  %v7274_v1 = vld [vmem:[%s8717_s4 + $0x200] sm:$0xff]  ;;  %v1283_v3 = vsel %vm6978_vm2, %v5362_v60, %v1282_v48  ;;  %v2037_v48 = vld [vmem:[#allocation7 + $0x1f8] sm:$0xff] }
 0x1ce   : > { %5599 = vmatpush3.msra.mxu1 %v7127_v4  ;;  %5638 = vmatprep.subr.mxu0 %v1448_v5  ;;  %v1293_v5 = vsel %vm6978_vm2, %v5364_v51, %v1292_v52  ;;  %v2034_v51 = vld [vmem:[#allocation7 + $0x1e0] sm:$0xff]  ;;  %v2036_v52 = vld [vmem:[#allocation7 + $0x1f0] sm:$0xff]  ;;  %v2025_v60 = vld [vmem:[#allocation7 + $0x198] sm:$0xff] }
 0x1cf   : > { %5600 = vmatprep.subr.mxu1 %v1416_v6  ;;  %5639 = vmatpush3.msra.mxu0 %v1432_v7  ;;  %v7283_v6 = vsel %vm6991_vm5, %v5363_v0, %v1286_v56  ;;  %v1314_v7 = vcombine.low %v7001_v16, %v7033_v38  ;;  %v1470_v16 = vld [vmem:[%s8717_s4 + $0x470] sm:$0xff]  ;;  %v1322_v38 = vcombine.low %v7009_v24, %v7184_v22  ;;  %v1467_v24 = vld [vmem:[%s8717_s4 + $0x458] sm:$0xff]  ;;  %v2028_v56 = vld [vmem:[#allocation7 + $0x1b0] sm:$0xff] }
 0x1d0   : > { %5601 = vmatpush3.msra.mxu1 %v7142_v8  ;;  %5640 = vmatprep.subr.mxu0 %v1447_v9  ;;  %v1471_v9 = vld [vmem:[%s8717_s4 + $0x478] sm:$0xff]  ;;  %v2017_v0 = vld [vmem:[#allocation7 + $0x158] sm:$0xff] }
 0x1d1   : > { %5602 = vmatprep.subr.mxu1 %v1415_v10  ;;  %5641 = vmatpush3.msra.mxu0 %v1431_v12  ;;  %v1324_v10 = vcombine.low %v1283_v3, %v1293_v5  ;;  %v1319_v12 = vcombine.low %v7049_v45, %v7283_v6  ;;  %v1315_v45 = vcombine.low %v7037_v39, %v1283_v3  ;;  %v1465_v39 = vld [vmem:[%s8717_s4 + $0x448] sm:$0xff]  ;;  %v2016_v3 = vld [vmem:[#allocation7 + $0x150] sm:$0xff]  ;;  %v2018_v5 = vld [vmem:[#allocation7 + $0x160] sm:$0xff] }
 0x1d2   : > { %5603 = vmatpush3.msra.mxu1 %v7157_v13  ;;  %5642 = vmatprep.subr.mxu0 %v1446_v14  ;;  %v1296_v14 = vrot.slane %v7213_v32, 6  ;;  %v2047_v32 = vld [vmem:[#allocation7 + $0x248] sm:$0xff] }
 0x1d3   : > { %5604 = vmatprep.subr.mxu1 %v1414_v15  ;;  %5643 = vmatpush3.msra.mxu0 %v1430_v17  ;;  %v1457_v15 = vld [vmem:[%s8717_s4 + $0x408] sm:$0xff]  ;;  %v1456_v17 = vld [vmem:[%s8717_s4 + $0x400] sm:$0xff] }
 0x1d4   : > { %5605 = vmatpush3.msra.mxu1 %v7172_v18  ;;  %5644 = vmatprep.subr.mxu0 %v1445_v19 }
 0x1d5   : > { %5606 = vmatprep.subr.mxu1 %v1413_v20  ;;  %5645 = vmatpush3.msra.mxu0 %v1429_v21  ;;  %v2067_v20 = vld [vmem:[#allocation7 + $0x2e8] sm:$0xff]  ;;  %v2064_v21 = vld [vmem:[#allocation7 + $0x2d0] sm:$0xff] }
 0x1d6   : > { %5607 = vmatpush3.msra.mxu1 %v7189_v23  ;;  %5646 = vmatprep.subr.mxu0 %v1444_v25  ;;  %v2061_v25 = vld [vmem:[#allocation7 + $0x2b8] sm:$0xff] }
 0x1d7   : > { %5608 = vmatprep.subr.mxu1 %v1412_v26  ;;  %5647 = vmatpush3.msra.mxu0 %v1428_v28  ;;  %v2058_v26 = vld [vmem:[#allocation7 + $0x2a0] sm:$0xff]  ;;  %v2060_v28 = vld [vmem:[#allocation7 + $0x2b0] sm:$0xff] }
 0x1d8   : > { %5609 = vmatpush3.msra.mxu1 %v7204_v29  ;;  %5648 = vmatprep.subr.mxu0 %v1443_v30  ;;  %v2052_v30 = vld [vmem:[#allocation7 + $0x270] sm:$0xff] }
 0x1d9   : > { %5610 = vmatprep.subr.mxu1 %v1411_v33  ;;  %5649 = vmatpush3.msra.mxu0 %v1427_v34  ;;  %v2049_v33 = vld [vmem:[#allocation7 + $0x258] sm:$0xff]  ;;  %v2046_v34 = vld [vmem:[#allocation7 + $0x240] sm:$0xff] }
 0x1da   : > { %5611 = vmatpush3.msra.mxu1 %v7225_v35  ;;  %5650 = vmatprep.subr.mxu0 %v1442_v36  ;;  %v2041_v36 = vld [vmem:[#allocation7 + $0x218] sm:$0xff] }
 0x1db   : > { %5612 = vmatprep.subr.mxu1 %v1410_v41  ;;  %5651 = vmatpush3.msra.mxu0 %v1426_v42  ;;  %v2043_v41 = vld [vmem:[#allocation7 + $0x228] sm:$0xff]  ;;  %v2040_v42 = vld [vmem:[#allocation7 + $0x210] sm:$0xff] }
 0x1dc   : > { %5613 = vmatpush3.msra.mxu1 %v7240_v44  ;;  %5652 = vmatprep.subr.mxu0 %v1441_v47  ;;  %v2035_v47 = vld [vmem:[#allocation7 + $0x1e8] sm:$0xff] }
 0x1dd   : > { %5614 = vmatprep.subr.mxu1 %v1409_v53  ;;  %5653 = vmatpush3.msra.mxu0 %v1425_v54  ;;  %v2029_v53 = vld [vmem:[#allocation7 + $0x1b8] sm:$0xff]  ;;  %v2031_v54 = vld [vmem:[#allocation7 + $0x1c8] sm:$0xff] }
 0x1de   : > { %5615 = vmatpush3.msra.mxu1 %v7257_v57  ;;  %5654 = vmatprep.subr.mxu0 %v1440_v58  ;;  %v2023_v58 = vld [vmem:[#allocation7 + $0x188] sm:$0xff] }
 0x1df   : > { %5616 = vmatprep.subr.mxu1 %v1408_v61  ;;  %5655 = vmatpush3.msra.mxu0 %v1424_v62  ;;  %v2022_v61 = vld [vmem:[#allocation7 + $0x180] sm:$0xff]  ;;  %v2024_v62 = vld [vmem:[#allocation7 + $0x190] sm:$0xff] }
 0x1e0   : > { %5617 = vmatpush3.msra.mxu1 %v7274_v1  ;;  %1769 = vmatmul.mubr.f32.vlgmr.msra.gmra.mxu0 %v7061_v49  ;;  %v1469_v49 = vld [vmem:[%s8717_s4 + $0x468] sm:$0xff] }
 0x1e1   : > { %5978 = vmatprep.subr.mxu0 %v8619_v11  ;;  %1694 = vmatmul.mubr.f32.vlgmr.msra.gmra.mxu1 %v1314_v7  ;;  %v2013_v7 = vld [vmem:[#allocation7 + $0x138] sm:$0xff] }
 0x1e2   : > { %1773 = vmatprep.mubr.f32.mxu0 %v1324_v10  ;;  %5943 = vmatprep.subr.mxu1 %v1471_v9  ;;  %v2012_v10 = vld [vmem:[#allocation7 + $0x130] sm:$0xff] }
 0x1e3   : > { %5979 = vmatpush3.msra.mxu0 %v7015_v27  ;;  %1698 = vmatprep.mubr.f32.mxu1 %v1319_v12  ;;  %v1468_v27 = vld [vmem:[%s8717_s4 + $0x460] sm:$0xff]  ;;  %v2005_v12 = vld [vmem:[#allocation7 + $0xf8] sm:$0xff] }
 0x1e4   : > { %5944 = vmatpush3.msra.mxu1 %v1471_v9  ;;  %5980 = vmatprep.subr.mxu0 %v8619_v11  ;;  %v2010_v9 = vld [vmem:[#allocation7 + $0x120] sm:$0xff] }
 0x1e5   : > { %5945 = vmatprep.subr.mxu1 %v1470_v16  ;;  %5981 = vmatpush3.msra.mxu0 %v7029_v37  ;;  %v1466_v37 = vld [vmem:[%s8717_s4 + $0x450] sm:$0xff] }
 0x1e6   : > { %1774 = vmatmul.mubr.f32.gmra.mxu0 %v1322_v38  ;;  %5946 = vmatpush3.msra.mxu1 %v1470_v16  ;;  %v2007_v16 = vld [vmem:[#allocation7 + $0x108] sm:$0xff]  ;;  %v2004_v38 = vld [vmem:[#allocation7 + $0xf0] sm:$0xff] }
 0x1e7   : > { %5982 = vmatprep.subr.mxu0 %v8619_v11  ;;  %1699 = vmatmul.mubr.f32.gmra.mxu1 %v1315_v45  ;;  %v2006_v45 = vld [vmem:[#allocation7 + $0x100] sm:$0xff] }
 0x1e8   : > { %5947 = vmatprep.subr.mxu1 %v1469_v49  ;;  %5983 = vmatpush3.msra.mxu0 %v7066_v50  ;;  %v1463_v50 = vld [vmem:[%s8717_s4 + $0x438] sm:$0xff] }
 0x1e9   : > { %5948 = vmatpush3.msra.mxu1 %v1469_v49  ;;  %5975 = vmatprep.mubr.f32.mxu1 %v7052_v46  ;;  %v1464_v46 = vld [vmem:[%s8717_s4 + $0x440] sm:$0xff]  ;;  %v1999_v49 = vld [vmem:[#allocation7 + $0xc8] sm:$0xff] }
 0x1ea   : > { %5984 = vmatprep.subr.mxu0 %v8619_v11  ;;  %5949 = vmatprep.subr.mxu1 %v1468_v27 }
 0x1eb   : > { %5985 = vmatpush3.msra.mxu0 %v7083_v55  ;;  %5950 = vmatpush3.msra.mxu1 %v1468_v27  ;;  %v1462_v55 = vld [vmem:[%s8717_s4 + $0x430] sm:$0xff]  ;;  %v2001_v27 = vld [vmem:[#allocation7 + $0xd8] sm:$0xff] }
 0x1ec   : > { %5986 = vmatprep.subr.mxu0 %v8619_v11  ;;  %5951 = vmatprep.subr.mxu1 %v1467_v24 }
 0x1ed   : > { %5987 = vmatpush3.msra.mxu0 %v7097_v59  ;;  %5952 = vmatpush3.msra.mxu1 %v1467_v24  ;;  %v1461_v59 = vld [vmem:[%s8717_s4 + $0x428] sm:$0xff]  ;;  %v1998_v24 = vld [vmem:[#allocation7 + $0xc0] sm:$0xff] }
 0x1ee   : > { %5988 = vmatprep.subr.mxu0 %v8619_v11  ;;  %5953 = vmatprep.subr.mxu1 %v1466_v37 }
 0x1ef   : > { %5989 = vmatpush3.msra.mxu0 %v7112_v63  ;;  %5954 = vmatpush3.msra.mxu1 %v1466_v37  ;;  %v1460_v63 = vld [vmem:[%s8717_s4 + $0x420] sm:$0xff] }
 0x1f0   : > { %5990 = vmatprep.subr.mxu0 %v8619_v11  ;;  %5955 = vmatprep.subr.mxu1 %v1465_v39  ;;  %v2000_v37 = vld [vmem:[#allocation7 + $0xd0] sm:$0xff] }
 0x1f1   : > { %5991 = vmatpush3.msra.mxu0 %v7127_v4  ;;  %5956 = vmatpush3.msra.mxu1 %v1465_v39  ;;  %v1459_v4 = vld [vmem:[%s8717_s4 + $0x418] sm:$0xff]  ;;  %v1993_v39 = vld [vmem:[#allocation7 + $0x98] sm:$0xff] }
 0x1f2   : > { %5992 = vmatprep.subr.mxu0 %v8619_v11  ;;  %5957 = vmatprep.subr.mxu1 %v1464_v46 }
 0x1f3   : > { %5993 = vmatpush3.msra.mxu0 %v7142_v8  ;;  %5958 = vmatpush3.msra.mxu1 %v1464_v46  ;;  %v1458_v8 = vld [vmem:[%s8717_s4 + $0x410] sm:$0xff]  ;;  %v1995_v46 = vld [vmem:[#allocation7 + $0xa8] sm:$0xff] }
 0x1f4   : > { %5994 = vmatprep.subr.mxu0 %v8619_v11  ;;  %5959 = vmatprep.subr.mxu1 %v1463_v50 }
 0x1f5   : > { %5995 = vmatpush3.msra.mxu0 %v7157_v13  ;;  %5960 = vmatpush3.msra.mxu1 %v1463_v50  ;;  %v5365_v13 = vrot.slane %v7184_v22, 10  ;;  %v2066_v22 = vld [vmem:[#allocation7 + $0x2e0] sm:$0xff]  ;;  %v1992_v50 = vld [vmem:[#allocation7 + $0x90] sm:$0xff] }
 0x1f6   : > { %5996 = vmatprep.subr.mxu0 %v8619_v11  ;;  %5961 = vmatprep.subr.mxu1 %v1462_v55 }
 0x1f7   : > { %5997 = vmatpush3.msra.mxu0 %v7172_v18  ;;  %5962 = vmatpush3.msra.mxu1 %v1462_v55  ;;  %v1297_v18 = vsel %vm6991_vm5, %v5365_v13, %v1296_v14  ;;  %v1994_v55 = vld [vmem:[#allocation7 + $0xa0] sm:$0xff]  ;;  %v1981_v13 = vld [vmem:[#allocation7 + $0x38] sm:$0xff]  ;;  %v1983_v14 = vld [vmem:[#allocation7 + $0x48] sm:$0xff] }
 0x1f8   : > { %5998 = vmatprep.subr.mxu0 %v8619_v11  ;;  %5963 = vmatprep.subr.mxu1 %v1461_v59  ;;  %v1326_v19 = vcombine.low %v7283_v6, %v1297_v18  ;;  %v2011_v6 = vld [vmem:[#allocation7 + $0x128] sm:$0xff] }
 0x1f9   : > { %5999 = vmatpush3.msra.mxu0 %v7189_v23  ;;  %5964 = vmatpush3.msra.mxu1 %v1461_v59  ;;  %v2059_v23 = vld [vmem:[#allocation7 + $0x2a8] sm:$0xff] }
 0x1fa   : > { %6000 = vmatprep.subr.mxu0 %v8619_v11  ;;  %5965 = vmatprep.subr.mxu1 %v1460_v63  ;;  %v1987_v59 = vld [vmem:[#allocation7 + $0x68] sm:$0xff] }
 0x1fb   : > { %6001 = vmatpush3.msra.mxu0 %v7204_v29  ;;  %5966 = vmatpush3.msra.mxu1 %v1460_v63  ;;  %v2055_v29 = vld [vmem:[#allocation7 + $0x288] sm:$0xff]  ;;  %v1989_v63 = vld [vmem:[#allocation7 + $0x78] sm:$0xff] }
 0x1fc   : > { %6002 = vmatprep.subr.mxu0 %v8619_v11  ;;  %5967 = vmatprep.subr.mxu1 %v1459_v4  ;;  %v1975_v18 = vld [vmem:[#allocation7 + $0x8] sm:$0xff] }
 0x1fd   : > { %6003 = vmatpush3.msra.mxu0 %v7225_v35  ;;  %5968 = vmatpush3.msra.mxu1 %v1459_v4  ;;  %v2048_v35 = vld [vmem:[#allocation7 + $0x250] sm:$0xff]  ;;  %v1986_v4 = vld [vmem:[#allocation7 + $0x60] sm:$0xff] }
 0x1fe   : > { %6004 = vmatprep.subr.mxu0 %v8619_v11  ;;  %5969 = vmatprep.subr.mxu1 %v1458_v8 }
 0x1ff   : > { %6005 = vmatpush3.msra.mxu0 %v7240_v44  ;;  %5970 = vmatpush3.msra.mxu1 %v1458_v8  ;;  %v2042_v44 = vld [vmem:[#allocation7 + $0x220] sm:$0xff]  ;;  %v1988_v8 = vld [vmem:[#allocation7 + $0x70] sm:$0xff] }
 0x200   : > { %6006 = vmatprep.subr.mxu0 %v8619_v11  ;;  %5971 = vmatprep.subr.mxu1 %v1457_v15 }
 0x201   : > { %6007 = vmatpush3.msra.mxu0 %v7257_v57  ;;  %5972 = vmatpush3.msra.mxu1 %v1457_v15  ;;  %v2030_v57 = vld [vmem:[#allocation7 + $0x1c0] sm:$0xff]  ;;  %v1980_v15 = vld [vmem:[#allocation7 + $0x30] sm:$0xff] }
 0x202   : > { %6008 = vmatprep.subr.mxu0 %v8619_v11  ;;  %5973 = vmatprep.subr.mxu1 %v1456_v17 }
 0x203   : > { %6009 = vmatpush3.msra.mxu0 %v7274_v1  ;;  %6010 = vmatprep.mubr.msk.f32.mxu0 %vm6454_vm6, %v8619_v11  ;;  %v2019_v1 = vld [vmem:[#allocation7 + $0x168] sm:$0xff] }
 0x204   : > { %5974 = vmatpush3.msra.mxu1 %v1456_v17  ;;  %6011 = vmatmul.mubr.f32.vlgmr.msra.gmra.mxu0 %v6974_v40  ;;  %v2053_v40 = vld [vmem:[#allocation7 + $0x278] sm:$0xff]  ;;  %v1982_v17 = vld [vmem:[#allocation7 + $0x40] sm:$0xff] }
 0x205   : > { %5976 = vmatmul.mubr.f32.vlgmr.msra.gmra.mxu1 %v1326_v19  ;;  %2249 = vmatprep.mubr.f32.mxu0 %v8619_v11  ;;  %v1977_v19 = vld [vmem:[#allocation7 + $0x18] sm:$0xff] }
 0x206   : > { %2166 = vmatprep.mubr.f32.mxu1 %v8619_v11  ;;  %2102 = vmatprep.subr.mxu1 %v2065_v2  ;;  %v1974_v2 = vld [vmem:[#allocation7] sm:$0xff] }
 0x207   : > { %2185 = vmatprep.subr.mxu0 %v2067_v20  ;;  %2103 = vmatpush1.msra.mxu1 %v2064_v21  ;;  %v1976_v20 = vld [vmem:[#allocation7 + $0x10] sm:$0xff]  ;;  %v2069_v21 = vld [vmem:[#allocation7 + $0x2f8] sm:$0xff] }
 0x208   : > { %2186 = vmatpush1.msra.mxu0 %v2066_v22  ;;  %2104 = vmatprep.subr.mxu1 %v2059_v23  ;;  %v2430_v22 = vld [vmem:[#allocation9 + $0xf8] sm:$0xff] }
 0x209   : > { %2187 = vmatprep.subr.mxu0 %v2061_v25  ;;  %2105 = vmatpush1.msra.mxu1 %v2058_v26 }
 0x20a   : > { %2188 = vmatpush1.msra.mxu0 %v2060_v28  ;;  %2106 = vmatprep.subr.mxu1 %v2053_v40 }
 0x20b   : > { %2189 = vmatprep.subr.mxu0 %v2055_v29  ;;  %2107 = vmatpush1.msra.mxu1 %v2052_v30  ;;  %v1474_v30 = vlaneseq }
 0x20c   : > { %2190 = vmatpush1.msra.mxu0 %v2054_v31  ;;  %2108 = vmatprep.subr.mxu1 %v2047_v32 }
 0x20d   : > { %2191 = vmatprep.subr.mxu0 %v2049_v33  ;;  %2109 = vmatpush1.msra.mxu1 %v2046_v34  ;;  %v7384_v33 = vshrl.u32 %v1474_v30, 7 }
 0x20e   : > { %2192 = vmatpush1.msra.mxu0 %v2048_v35  ;;  %2110 = vmatprep.subr.mxu1 %v2041_v36 }
 0x20f   : > { %2193 = vmatprep.subr.mxu0 %v2043_v41  ;;  %2111 = vmatpush1.msra.mxu1 %v2040_v42  ;;  %v7387_v41 = vsub.s32 0, %v7384_v33 }
 0x210   : > { %2194 = vmatpush1.msra.mxu0 %v2042_v44  ;;  %2112 = vmatprep.subr.mxu1 %v2035_v47  ;;  %v1472_v44 = vld [vmem:[%s8592_s6] sm:$0x1] }
 0x211   : > { %2195 = vmatprep.subr.mxu0 %v2037_v48  ;;  %2113 = vmatpush1.msra.mxu1 %v2034_v51  ;;  %8723 = vst [vmem:[#allocation27_spill] sm:$0xff] %v7387_v41 }
 0x212   : > { %2196 = vmatpush1.msra.mxu0 %v2036_v52  ;;  %2114 = vmatprep.subr.mxu1 %v2029_v53  ;;  %v1477_v52 = vrot.slane %v1472_v44, %v7387_v41 }
 0x213   : > { %2197 = vmatprep.subr.mxu0 %v2031_v54  ;;  %2115 = vmatpush1.msra.mxu1 %v2028_v56 }
 0x214   : > { %2198 = vmatpush1.msra.mxu0 %v2030_v57  ;;  %2116 = vmatprep.subr.mxu1 %v2023_v58 }
 0x215   : > { %2199 = vmatprep.subr.mxu0 %v2025_v60  ;;  %2117 = vmatpush1.msra.mxu1 %v2022_v61 }
 0x216   : > { %2200 = vmatpush1.msra.mxu0 %v2024_v62  ;;  %2118 = vmatprep.subr.mxu1 %v2017_v0 }
 0x217   : > { %2201 = vmatprep.subr.mxu0 %v2019_v1  ;;  %2119 = vmatpush1.msra.mxu1 %v2016_v3 }
 0x218   : > { %2202 = vmatpush1.msra.mxu0 %v2018_v5  ;;  %2120 = vmatprep.subr.mxu1 %v2011_v6 }
 0x219   : > { %2203 = vmatprep.subr.mxu0 %v2013_v7  ;;  %2121 = vmatpush1.msra.mxu1 %v2010_v9 }
 0x21a   : > { %2204 = vmatpush1.msra.mxu0 %v2012_v10  ;;  %2122 = vmatprep.subr.mxu1 %v2005_v12 }
 0x21b   : > { %2205 = vmatprep.subr.mxu0 %v2007_v16  ;;  %2123 = vmatpush1.msra.mxu1 %v2004_v38 }
 0x21c   : > { %2206 = vmatpush1.msra.mxu0 %v2006_v45  ;;  %2124 = vmatprep.subr.mxu1 %v1999_v49 }
 0x21d   : > { %2207 = vmatprep.subr.mxu0 %v2001_v27  ;;  %2125 = vmatpush1.msra.mxu1 %v1998_v24 }
 0x21e   : > { %2208 = vmatpush1.msra.mxu0 %v2000_v37  ;;  %2126 = vmatprep.subr.mxu1 %v1993_v39 }
 0x21f   : > { %2209 = vmatprep.subr.mxu0 %v1995_v46  ;;  %2127 = vmatpush1.msra.mxu1 %v1992_v50 }
 0x220   : > { %2210 = vmatpush1.msra.mxu0 %v1994_v55  ;;  %2128 = vmatprep.subr.mxu1 %v1987_v59 }
 0x221   : > { %2211 = vmatprep.subr.mxu0 %v1989_v63  ;;  %2129 = vmatpush1.msra.mxu1 %v1986_v4 }
 0x222   : > { %2212 = vmatpush1.msra.mxu0 %v1988_v8  ;;  %2130 = vmatprep.subr.mxu1 %v1981_v13 }
 0x223   : > { %2213 = vmatprep.subr.mxu0 %v1983_v14  ;;  %2131 = vmatpush1.msra.mxu1 %v1980_v15 }
 0x224   : > { %2214 = vmatpush1.msra.mxu0 %v1982_v17  ;;  %2132 = vmatprep.subr.mxu1 %v1975_v18 }
 0x225   : > { %2215 = vmatprep.subr.mxu0 %v1977_v19  ;;  %2133 = vmatpush1.msra.mxu1 %v1974_v2 }
 0x226   : > { %2216 = vmatpush1.msra.mxu0 %v1976_v20  ;;  %2268 = vmatprep.subr.mxu1 %v2069_v21 }
 0x227   : > { %5697 = vmatprep.subr.mxu0 %v2430_v22 }
 0x27d   : > { %v5580_v26 = vpop.f32.mrf.mxu0 }
 0x27e   : > { %v5542_v23 = vpop.f32.mrf.mxu1 }
 0x27f   : > { %v5581_v40 = vpop.f32.mrf.mxu0 }
 0x280   : > { %v5543_v25 = vpop.f32.mrf.mxu1  ;;  %v5582_v61 = vadd.f32 %v5581_v40, %v5580_v26  ;;  %v2063_v26 = vld [vmem:[#allocation7 + $0x2c8] sm:$0xff]  ;;  %v2062_v40 = vld [vmem:[#allocation7 + $0x2c0] sm:$0xff] }
 0x281   : > { %v5544_v51 = vadd.f32 %v5543_v25, %v5542_v23  ;;  %v2068_v23 = vld [vmem:[#allocation7 + $0x2f0] sm:$0xff]  ;;  %v2414_v25 = vld [vmem:[#allocation9 + $0x78] sm:$0xff] }
 0x283   : > { %v5583_v31 = vpop.f32.mrf.mxu0  ;;  %v1546_v60 = vadd.f32 %v5544_v51, %v1477_v52 }
 0x284   : > { %v5545_v28 = vpop.f32.mrf.mxu1 }
 0x285   : > { %v5584_v34 = vpop.f32.mrf.mxu0  ;;  %v1621_v5 = vadd.f32 %v5582_v61, %v1546_v60  ;;  %v2425_v60 = vld [vmem:[#allocation9 + $0xd0] sm:$0xff]  ;;  %v2038_v61 = vld [vmem:[#allocation7 + $0x200] sm:$0xff] }
 0x286   : > { %v5546_v29 = vpop.f32.mrf.mxu1  ;;  %v5585_v57 = vadd.f32 %v5584_v34, %v5583_v31  ;;  %v2057_v31 = vld [vmem:[#allocation7 + $0x298] sm:$0xff] }
 0x287   : > { %v5547_v47 = vadd.f32 %v5546_v29, %v5545_v28  ;;  %v2429_v28 = vld [vmem:[#allocation9 + $0xf0] sm:$0xff] }
 0x288   : > { %v2413_v29 = vld [vmem:[#allocation9 + $0x70] sm:$0xff] }
 0x289   : > { %v1551_v54 = vadd.f32 %v5547_v47, %v1477_v52  ;;  %v2050_v47 = vld [vmem:[#allocation7 + $0x260] sm:$0xff]  ;;  %v2045_v52 = vld [vmem:[#allocation7 + $0x238] sm:$0xff] }
 0x28b   : > { %v1626_v0 = vadd.f32 %v5585_v57, %v1551_v54  ;;  %v2410_v57 = vld [vmem:[#allocation9 + $0x58] sm:$0xff] }
 0x2a0   : > { %v5656_v36 = vpop.f32.mrf.mxu0 }
 0x2a1   : > { %v5618_v32 = vpop.f32.mrf.mxu1 }
 0x2a2   : > { %v5657_v48 = vpop.f32.mrf.mxu0 }
 0x2a3   : > { %v5619_v35 = vpop.f32.mrf.mxu1  ;;  %v5658_v9 = vadd.f32 %v5657_v48, %v5656_v36  ;;  %v2412_v36 = vld [vmem:[#allocation9 + $0x68] sm:$0xff]  ;;  %v2411_v48 = vld [vmem:[#allocation9 + $0x60] sm:$0xff] }
 0x2a4   : > { %v5620_v62 = vadd.f32 %v5619_v35, %v5618_v32  ;;  %v2428_v32 = vld [vmem:[#allocation9 + $0xe8] sm:$0xff]  ;;  %v2056_v35 = vld [vmem:[#allocation7 + $0x290] sm:$0xff] }
 0x2a6   : > { %v5659_v56 = vpop.f32.mrf.mxu0  ;;  %v1696_v7 = vadd.f32 %v5620_v62, %v1621_v5  ;;  %v2409_v62 = vld [vmem:[#allocation9 + $0x50] sm:$0xff]  ;;  %v2408_v5 = vld [vmem:[#allocation9 + $0x48] sm:$0xff] }
 0x2a7   : > { %v5621_v42 = vpop.f32.mrf.mxu1 }
 0x2a8   : > { %v5660_v1 = vpop.f32.mrf.mxu0  ;;  %v1771_v49 = vadd.f32 %v5658_v9, %v1696_v7  ;;  %v2423_v7 = vld [vmem:[#allocation9 + $0xc0] sm:$0xff] }
 0x2a9   : > { %v5622_v53 = vpop.f32.mrf.mxu1  ;;  %v5661_v6 = vadd.f32 %v5660_v1, %v5659_v56  ;;  %v2044_v56 = vld [vmem:[#allocation7 + $0x230] sm:$0xff]  ;;  %v2424_v1 = vld [vmem:[#allocation9 + $0xc8] sm:$0xff]  ;;  %v2026_v9 = vld [vmem:[#allocation7 + $0x1a0] sm:$0xff] }
 0x2aa   : > { %v5623_v58 = vadd.f32 %v5622_v53, %v5621_v42  ;;  %v2051_v42 = vld [vmem:[#allocation7 + $0x268] sm:$0xff]  ;;  %v2426_v53 = vld [vmem:[#allocation9 + $0xd8] sm:$0xff] }
 0x2ac   : > { %v1701_v3 = vadd.f32 %v5623_v58, %v1626_v0  ;;  %v2039_v58 = vld [vmem:[#allocation7 + $0x208] sm:$0xff]  ;;  %v2033_v0 = vld [vmem:[#allocation7 + $0x1d8] sm:$0xff] }
 0x2ae   : > { %v1776_v12 = vadd.f32 %v5661_v6, %v1701_v3  ;;  %v2032_v3 = vld [vmem:[#allocation7 + $0x1d0] sm:$0xff]  ;;  %v2027_v6 = vld [vmem:[#allocation7 + $0x1a8] sm:$0xff] }
 0x2c4   : > { %v1936_v10 = vpop.f32.mrf.mxu0 }
 0x2c5   : > { %v5977_v16 = vpop.f32.mrf.mxu1  ;;  %v1937_v37 = vadd.f32 %v1936_v10, %v1472_v44  ;;  %v2427_v44 = vld [vmem:[#allocation9 + $0xe0] sm:$0xff] }
 0x2c6   : > { %v1851_v38 = vadd.f32 %v5977_v16, %v1776_v12  ;;  %v6012_v45 = vpop.f32.mrf.mxu0  ;;  %v2407_v10 = vld [vmem:[#allocation9 + $0x40] sm:$0xff]  ;;  %v2021_v12 = vld [vmem:[#allocation7 + $0x178] sm:$0xff] }
 0x2c7   : > { %v1845_v27 = vpop.f32.mrf.mxu1  ;;  %v2422_v16 = vld [vmem:[#allocation9 + $0xb8] sm:$0xff] }
 0x2c8   : > { %v1846_v24 = vadd.f32 %v1845_v27, %v1771_v49  ;;  %v7393_v39 = vrot.slane %v1851_v38, 7  ;;  %v2020_v38 = vld [vmem:[#allocation7 + $0x170] sm:$0xff]  ;;  %v2406_v45 = vld [vmem:[#allocation9 + $0x38] sm:$0xff]  ;;  %v2015_v49 = vld [vmem:[#allocation7 + $0x148] sm:$0xff] }
 0x2c9   : > { %v2421_v27 = vld [vmem:[#allocation9 + $0xb0] sm:$0xff] }
 0x2ca   : > { %v1943_v46 = vrot.slane %v1846_v24, 7  ;;  %v5368_v4 = vmul.f32 -1.702, %v7393_v39  ;;  %v2014_v24 = vld [vmem:[#allocation7 + $0x140] sm:$0xff] }
 0x2cc   : > { %v1949_v50 = vsel %vm1942_vm7, %v1937_v37, %v1943_v46  ;;  %v1945_v55 = vsel %vm1942_vm7, %v1943_v46, %v7393_v39  ;;  %v1960_v14 = vmul.f32 1.442695, %v5368_v4  ;;  %v2405_v37 = vld [vmem:[#allocation9 + $0x30] sm:$0xff]  ;;  %v2420_v46 = vld [vmem:[#allocation9 + $0xa8] sm:$0xff]  ;;  %v2002_v4 = vld [vmem:[#allocation7 + $0xe0] sm:$0xff] }
 0x2cd   : > { %v5366_v59 = vmul.f32 -1.702, %v1949_v50  ;;  %v5367_v63 = vmul.f32 -1.702, %v1945_v55 }
 0x2cf   : > { %v1956_v8 = vmul.f32 1.442695, %v5366_v59  ;;  %v1958_v13 = vmul.f32 1.442695, %v5367_v63  ;;  %v2003_v59 = vld [vmem:[#allocation7 + $0xe8] sm:$0xff]  ;;  %v2419_v63 = vld [vmem:[#allocation9 + $0xa0] sm:$0xff] }
 0x2d1   : > { %6147 = vpow2.f32 %v1956_v8  ;;  %v2403_v8 = vld [vmem:[#allocation9 + $0x20] sm:$0xff] }
 0x2d2   : > { %6149 = vpow2.f32 %v1958_v13  ;;  %v1997_v13 = vld [vmem:[#allocation7 + $0xb8] sm:$0xff] }
 0x2d3   : > { %6151 = vpow2.f32 %v1960_v14  ;;  %v2418_v14 = vld [vmem:[#allocation9 + $0x98] sm:$0xff] }
 0x2de   : > { %v6148_v15 = vpop.eup %6147 }
 0x2df   : > { %v6150_v17 = vpop.eup %6149  ;;  %v1962_v18 = vadd.f32 1.0, %v6148_v15  ;;  %v1996_v15 = vld [vmem:[#allocation7 + $0xb0] sm:$0xff] }
 0x2e0   : > { %v1963_v19 = vadd.f32 1.0, %v6150_v17  ;;  %v6152_v2 = vpop.eup %6151  ;;  %v2402_v17 = vld [vmem:[#allocation9 + $0x18] sm:$0xff] }
 0x2e1   : > { %6153 = vrcp.f32 %v1962_v18  ;;  %v1964_v20 = vadd.f32 1.0, %v6152_v2  ;;  %v1991_v18 = vld [vmem:[#allocation7 + $0x88] sm:$0xff]  ;;  %v1990_v2 = vld [vmem:[#allocation7 + $0x80] sm:$0xff] }
 0x2e2   : > { %6155 = vrcp.f32 %v1963_v19  ;;  %v2417_v19 = vld [vmem:[#allocation9 + $0x90] sm:$0xff] }
 0x2e3   : > { %6157 = vrcp.f32 %v1964_v20  ;;  %v2401_v20 = vld [vmem:[#allocation9 + $0x10] sm:$0xff] }
 0x2ee   : > { %v6154_v21 = vpop.eup %6153 }
 0x2ef   : > { %v7399_v22 = vmul.f32 %v6154_v21, %v1949_v50  ;;  %v6156_v30 = vpop.eup %6155  ;;  %v2008_v50 = vld [vmem:[#allocation7 + $0x110] sm:$0xff]  ;;  %v1985_v21 = vld [vmem:[#allocation7 + $0x58] sm:$0xff] }
 0x2f0   : > { %v7405_v34 = vmul.f32 %v6156_v30, %v1945_v55  ;;  %v6158_v51 = vpop.eup %6157  ;;  %v2404_v55 = vld [vmem:[#allocation9 + $0x28] sm:$0xff]  ;;  %v2399_v30 = vld [vmem:[#allocation9] sm:$0xff] }
 0x2f1   : > { %2167 = vmatmul.mubr.f32.vlgmr.msra.gmra.mxu1 %v7399_v22  ;;  %2250 = vmatmul.mubr.f32.vlgmr.msra.gmra.mxu0 %v7399_v22  ;;  %v7412_v54 = vmul.f32 %v6158_v51, %v7393_v39  ;;  %v2009_v39 = vld [vmem:[#allocation7 + $0x118] sm:$0xff]  ;;  %v2445_v51 = vld [vmem:[#allocation9 + $0x170] sm:$0xff] }
 0x2f2   : > { %2269 = vmatpush1.msra.mxu1 %v2068_v23  ;;  %5698 = vmatpush3.msra.mxu0 %v2414_v25  ;;  %v2416_v23 = vld [vmem:[#allocation9 + $0x88] sm:$0xff]  ;;  %v1984_v25 = vld [vmem:[#allocation7 + $0x50] sm:$0xff] }
 0x2f3   : > { %2270 = vmatprep.subr.mxu1 %v2063_v26  ;;  %5699 = vmatprep.subr.mxu0 %v2429_v28  ;;  %v2400_v26 = vld [vmem:[#allocation9 + $0x8] sm:$0xff] }
 0x2f4   : > { %2271 = vmatpush1.msra.mxu1 %v2062_v40  ;;  %5700 = vmatpush3.msra.mxu0 %v2413_v29  ;;  %v1979_v28 = vld [vmem:[#allocation7 + $0x28] sm:$0xff]  ;;  %v2415_v40 = vld [vmem:[#allocation9 + $0x80] sm:$0xff] }
 0x2f5   : > { %2172 = vmatprep.mubr.f32.mxu1 %v8619_v11  ;;  %2255 = vmatprep.mubr.f32.mxu0 %v8619_v11  ;;  %v1978_v29 = vld [vmem:[#allocation7 + $0x20] sm:$0xff] }
 0x2f6   : > { %2272 = vmatprep.subr.mxu1 %v2057_v31  ;;  %5701 = vmatprep.subr.mxu0 %v2428_v32  ;;  %v2370_v31 = vld [vmem:[%s7422_s24 + $0x8] sm:$0xff] }
 0x2f7   : > { %2173 = vmatmul.mubr.f32.gmra.mxu1 %v7405_v34  ;;  %2256 = vmatmul.mubr.f32.gmra.mxu0 %v7405_v34  ;;  %v2462_v32 = vld [vmem:[#allocation9 + $0x1f8] sm:$0xff] }
 0x2f8   : > { %2273 = vmatpush1.msra.mxu1 %v2056_v35  ;;  %5702 = vmatpush3.msra.mxu0 %v2412_v36  ;;  %v2494_v35 = vld [vmem:[#allocation9 + $0x2f8] sm:$0xff]  ;;  %v2369_v36 = vld [vmem:[%s7422_s24] sm:$0xff] }
 0x2f9   : > { %2274 = vmatprep.subr.mxu1 %v2051_v42  ;;  %5703 = vmatprep.subr.mxu0 %v2427_v44  ;;  %v2446_v42 = vld [vmem:[#allocation9 + $0x178] sm:$0xff] }
 0x2fa   : > { %2275 = vmatpush1.msra.mxu1 %v2050_v47  ;;  %5704 = vmatpush3.msra.mxu0 %v2411_v48  ;;  %v2478_v44 = vld [vmem:[#allocation9 + $0x278] sm:$0xff]  ;;  %v2461_v47 = vld [vmem:[#allocation9 + $0x1f0] sm:$0xff] }
 0x2fb   : > { %2178 = vmatprep.mubr.f32.mxu1 %v8619_v11  ;;  %2261 = vmatprep.mubr.f32.mxu0 %v8619_v11  ;;  %v2493_v48 = vld [vmem:[#allocation9 + $0x2f0] sm:$0xff] }
 0x2fc   : > { %2276 = vmatprep.subr.mxu1 %v2045_v52  ;;  %5705 = vmatprep.subr.mxu0 %v2426_v53  ;;  %v2477_v52 = vld [vmem:[#allocation9 + $0x270] sm:$0xff]  ;;  %v2460_v53 = vld [vmem:[#allocation9 + $0x1e8] sm:$0xff] }
 0x2fd   : > { %2179 = vmatmul.mubr.f32.gmra.mxu1 %v7412_v54  ;;  %2262 = vmatmul.mubr.f32.gmra.mxu0 %v7412_v54 }
 0x2fe   : > { %2277 = vmatpush1.msra.mxu1 %v2044_v56  ;;  %5706 = vmatpush3.msra.mxu0 %v2410_v57  ;;  %v2492_v56 = vld [vmem:[#allocation9 + $0x2e8] sm:$0xff] }
 0x2ff   : > { %2278 = vmatprep.subr.mxu1 %v2039_v58  ;;  %5707 = vmatprep.subr.mxu0 %v2425_v60  ;;  %v2476_v57 = vld [vmem:[#allocation9 + $0x268] sm:$0xff]  ;;  %v2459_v58 = vld [vmem:[#allocation9 + $0x1e0] sm:$0xff] }
 0x300   : > { %2279 = vmatpush1.msra.mxu1 %v2038_v61  ;;  %5708 = vmatpush3.msra.mxu0 %v2409_v62  ;;  %v2491_v60 = vld [vmem:[#allocation9 + $0x2e0] sm:$0xff] }
 0x301   : > { %2280 = vmatprep.subr.mxu1 %v2033_v0  ;;  %5709 = vmatprep.subr.mxu0 %v2424_v1  ;;  %v2443_v61 = vld [vmem:[#allocation9 + $0x160] sm:$0xff]  ;;  %v2458_v0 = vld [vmem:[#allocation9 + $0x1d8] sm:$0xff] }
 0x302   : > { %2281 = vmatpush1.msra.mxu1 %v2032_v3  ;;  %5710 = vmatpush3.msra.mxu0 %v2408_v5  ;;  %v2475_v62 = vld [vmem:[#allocation9 + $0x260] sm:$0xff]  ;;  %v2490_v1 = vld [vmem:[#allocation9 + $0x2d8] sm:$0xff] }
 0x303   : > { %2282 = vmatprep.subr.mxu1 %v2027_v6  ;;  %5711 = vmatprep.subr.mxu0 %v2423_v7  ;;  %v2442_v3 = vld [vmem:[#allocation9 + $0x158] sm:$0xff]  ;;  %v2489_v6 = vld [vmem:[#allocation9 + $0x2d0] sm:$0xff] }
 0x304   : > { %2283 = vmatpush1.msra.mxu1 %v2026_v9  ;;  %5712 = vmatpush3.msra.mxu0 %v2407_v10  ;;  %v2474_v5 = vld [vmem:[#allocation9 + $0x258] sm:$0xff]  ;;  %v2441_v7 = vld [vmem:[#allocation9 + $0x150] sm:$0xff]  ;;  %v2456_v10 = vld [vmem:[#allocation9 + $0x1c8] sm:$0xff] }
 0x305   : > { %2284 = vmatprep.subr.mxu1 %v2021_v12  ;;  %5713 = vmatprep.subr.mxu0 %v2422_v16  ;;  %v2473_v9 = vld [vmem:[#allocation9 + $0x250] sm:$0xff]  ;;  %v2488_v12 = vld [vmem:[#allocation9 + $0x2c8] sm:$0xff] }
 0x306   : > { %2285 = vmatpush1.msra.mxu1 %v2020_v38  ;;  %5714 = vmatpush3.msra.mxu0 %v2406_v45  ;;  %v2440_v16 = vld [vmem:[#allocation9 + $0x148] sm:$0xff]  ;;  %v2455_v45 = vld [vmem:[#allocation9 + $0x1c0] sm:$0xff] }
 0x307   : > { %2286 = vmatprep.subr.mxu1 %v2015_v49  ;;  %5715 = vmatprep.subr.mxu0 %v2421_v27  ;;  %v2472_v38 = vld [vmem:[#allocation9 + $0x248] sm:$0xff]  ;;  %v2439_v27 = vld [vmem:[#allocation9 + $0x140] sm:$0xff] }
 0x308   : > { %2287 = vmatpush1.msra.mxu1 %v2014_v24  ;;  %5716 = vmatpush3.msra.mxu0 %v2405_v37  ;;  %v2376_v49 = vld [vmem:[%s7422_s24 + $0x38] sm:$0xff]  ;;  %v2471_v24 = vld [vmem:[#allocation9 + $0x240] sm:$0xff]  ;;  %v2454_v37 = vld [vmem:[#allocation9 + $0x1b8] sm:$0xff] }
 0x309   : > { %2288 = vmatprep.subr.mxu1 %v2009_v39  ;;  %5717 = vmatprep.subr.mxu0 %v2420_v46  ;;  %v2375_v39 = vld [vmem:[%s7422_s24 + $0x30] sm:$0xff]  ;;  %v2486_v46 = vld [vmem:[#allocation9 + $0x2b8] sm:$0xff] }
 0x30a   : > { %2289 = vmatpush1.msra.mxu1 %v2008_v50  ;;  %5718 = vmatpush3.msra.mxu0 %v2404_v55  ;;  %v2438_v50 = vld [vmem:[#allocation9 + $0x138] sm:$0xff] }
 0x30b   : > { %2290 = vmatprep.subr.mxu1 %v2003_v59  ;;  %5719 = vmatprep.subr.mxu0 %v2419_v63  ;;  %v2470_v55 = vld [vmem:[#allocation9 + $0x238] sm:$0xff]  ;;  %v2453_v59 = vld [vmem:[#allocation9 + $0x1b0] sm:$0xff] }
 0x30c   : > { %2291 = vmatpush1.msra.mxu1 %v2002_v4  ;;  %5720 = vmatpush3.msra.mxu0 %v2403_v8  ;;  %v2485_v63 = vld [vmem:[#allocation9 + $0x2b0] sm:$0xff]  ;;  %v2382_v4 = vld [vmem:[%s7422_s24 + $0x68] sm:$0xff] }
 0x30d   : > { %2292 = vmatprep.subr.mxu1 %v1997_v13  ;;  %5721 = vmatprep.subr.mxu0 %v2418_v14  ;;  %v2437_v8 = vld [vmem:[#allocation9 + $0x130] sm:$0xff]  ;;  %v2452_v14 = vld [vmem:[#allocation9 + $0x1a8] sm:$0xff] }
 0x30e   : > { %2293 = vmatpush1.msra.mxu1 %v1996_v15  ;;  %5722 = vmatpush3.msra.mxu0 %v2402_v17  ;;  %v2469_v13 = vld [vmem:[#allocation9 + $0x230] sm:$0xff]  ;;  %v2484_v17 = vld [vmem:[#allocation9 + $0x2a8] sm:$0xff] }
 0x30f   : > { %2294 = vmatprep.subr.mxu1 %v1991_v18  ;;  %5723 = vmatprep.subr.mxu0 %v2417_v19  ;;  %v2381_v15 = vld [vmem:[%s7422_s24 + $0x60] sm:$0xff]  ;;  %v2436_v18 = vld [vmem:[#allocation9 + $0x128] sm:$0xff] }
 0x310   : > { %2295 = vmatpush1.msra.mxu1 %v1990_v2  ;;  %5724 = vmatpush3.msra.mxu0 %v2401_v20  ;;  %v2468_v19 = vld [vmem:[#allocation9 + $0x228] sm:$0xff]  ;;  %v2451_v2 = vld [vmem:[#allocation9 + $0x1a0] sm:$0xff] }
 0x311   : > { %2296 = vmatprep.subr.mxu1 %v1985_v21  ;;  %5725 = vmatprep.subr.mxu0 %v2416_v23  ;;  %v2483_v20 = vld [vmem:[#allocation9 + $0x2a0] sm:$0xff]  ;;  %v2388_v21 = vld [vmem:[%s7422_s24 + $0x98] sm:$0xff] }
 0x312   : > { %2297 = vmatpush1.msra.mxu1 %v1984_v25  ;;  %5726 = vmatpush3.msra.mxu0 %v2400_v26  ;;  %v2435_v23 = vld [vmem:[#allocation9 + $0x120] sm:$0xff]  ;;  %v2450_v26 = vld [vmem:[#allocation9 + $0x198] sm:$0xff] }
 0x313   : > { %2298 = vmatprep.subr.mxu1 %v1979_v28  ;;  %5727 = vmatprep.subr.mxu0 %v2415_v40  ;;  %v2467_v25 = vld [vmem:[#allocation9 + $0x220] sm:$0xff]  ;;  %v2482_v40 = vld [vmem:[#allocation9 + $0x298] sm:$0xff] }
 0x314   : > { %2299 = vmatpush1.msra.mxu1 %v1978_v29  ;;  %2332 = vmatprep.mubr.f32.mxu1 %v8619_v11  ;;  %v2387_v28 = vld [vmem:[%s7422_s24 + $0x90] sm:$0xff]  ;;  %v2434_v29 = vld [vmem:[#allocation9 + $0x118] sm:$0xff] }
 0x315   : > { %5728 = vmatpush3.msra.mxu0 %v2399_v30  ;;  %2333 = vmatmul.mubr.f32.vlgmr.msra.gmra.mxu1 %v7399_v22  ;;  %v2444_v22 = vld [vmem:[#allocation9 + $0x168] sm:$0xff]  ;;  %v2466_v30 = vld [vmem:[#allocation9 + $0x218] sm:$0xff] }
 0x316   : > { %2566 = vmatprep.mubr.f32.mxu0 %v2370_v31  ;;  %5744 = vmatprep.subr.mxu1 %v2462_v32  ;;  %v2449_v31 = vld [vmem:[#allocation9 + $0x190] sm:$0xff] }
 0x317   : > { %5791 = vmatprep.subr.mxu0 %v2494_v35  ;;  %2567 = vmatmul.mubr.f32.vlgmr.msra.gmra.mxu0 %v2369_v36  ;;  %v2481_v32 = vld [vmem:[#allocation9 + $0x290] sm:$0xff]  ;;  %v2394_v35 = vld [vmem:[%s7422_s24 + $0xc8] sm:$0x1] }
 0x318   : > { %5745 = vmatpush3.msra.mxu1 %v2446_v42  ;;  %5792 = vmatpush3.msra.mxu0 %v2478_v44  ;;  %v2433_v36 = vld [vmem:[#allocation9 + $0x110] sm:$0xff]  ;;  %v2448_v44 = vld [vmem:[#allocation9 + $0x188] sm:$0xff] }
 0x319   : > { %5746 = vmatprep.subr.mxu1 %v2461_v47  ;;  %5793 = vmatprep.subr.mxu0 %v2493_v48  ;;  %v2465_v42 = vld [vmem:[#allocation9 + $0x210] sm:$0xff]  ;;  %v2480_v48 = vld [vmem:[#allocation9 + $0x288] sm:$0xff] }
 0x31a   : > { %2338 = vmatprep.mubr.f32.mxu1 %v8619_v11  ;;  %5747 = vmatpush3.msra.mxu1 %v2445_v51  ;;  %v2393_v47 = vld [vmem:[%s7422_s24 + $0xc0] sm:$0x1]  ;;  %v2432_v51 = vld [vmem:[#allocation9 + $0x108] sm:$0xff] }
 0x31b   : > { %5794 = vmatpush3.msra.mxu0 %v2477_v52  ;;  %2339 = vmatmul.mubr.f32.gmra.mxu1 %v7405_v34  ;;  %v2457_v34 = vld [vmem:[#allocation9 + $0x1d0] sm:$0xff]  ;;  %v2464_v52 = vld [vmem:[#allocation9 + $0x208] sm:$0xff] }
 0x31c   : > { %5748 = vmatprep.subr.mxu1 %v2460_v53  ;;  %5795 = vmatprep.subr.mxu0 %v2492_v56  ;;  %v2447_v53 = vld [vmem:[#allocation9 + $0x180] sm:$0xff] }
 0x31d   : > { %5749 = vmatpush3.msra.mxu1 %v2444_v22  ;;  %5796 = vmatpush3.msra.mxu0 %v2476_v57  ;;  %v2479_v56 = vld [vmem:[#allocation9 + $0x280] sm:$0xff]  ;;  %v2372_v57 = vld [vmem:[%s7422_s24 + $0x18] sm:$0xff] }
 0x31e   : > { %5750 = vmatprep.subr.mxu1 %v2459_v58  ;;  %5797 = vmatprep.subr.mxu0 %v2491_v60  ;;  %v2431_v22 = vld [vmem:[#allocation9 + $0x100] sm:$0xff]  ;;  %v2374_v60 = vld [vmem:[%s7422_s24 + $0x28] sm:$0xff] }
 0x31f   : > { %2344 = vmatprep.mubr.f32.mxu1 %v8619_v11  ;;  %5751 = vmatpush3.msra.mxu1 %v2443_v61  ;;  %v2463_v58 = vld [vmem:[#allocation9 + $0x200] sm:$0xff] }
 0x320   : > { %5798 = vmatpush3.msra.mxu0 %v2475_v62  ;;  %2345 = vmatmul.mubr.f32.gmra.mxu1 %v7412_v54  ;;  %v2487_v54 = vld [vmem:[#allocation9 + $0x2c0] sm:$0xff]  ;;  %v2373_v62 = vld [vmem:[%s7422_s24 + $0x20] sm:$0xff] }
 0x321   : > { %5752 = vmatprep.subr.mxu1 %v2458_v0  ;;  %5799 = vmatprep.subr.mxu0 %v2490_v1  ;;  %v2371_v61 = vld [vmem:[%s7422_s24 + $0x10] sm:$0xff]  ;;  %v2378_v0 = vld [vmem:[%s7422_s24 + $0x48] sm:$0xff]  ;;  %v2380_v1 = vld [vmem:[%s7422_s24 + $0x58] sm:$0xff] }
 0x322   : > { %5753 = vmatpush3.msra.mxu1 %v2442_v3  ;;  %5800 = vmatpush3.msra.mxu0 %v2474_v5  ;;  %v2377_v3 = vld [vmem:[%s7422_s24 + $0x40] sm:$0xff]  ;;  %v2379_v5 = vld [vmem:[%s7422_s24 + $0x50] sm:$0xff] }
 0x323   : > { %5754 = vmatprep.subr.mxu1 %v2457_v34  ;;  %5801 = vmatprep.subr.mxu0 %v2489_v6  ;;  %v2384_v34 = vld [vmem:[%s7422_s24 + $0x78] sm:$0xff]  ;;  %v2386_v6 = vld [vmem:[%s7422_s24 + $0x88] sm:$0xff] }
 0x324   : > { %5755 = vmatpush3.msra.mxu1 %v2441_v7  ;;  %5802 = vmatpush3.msra.mxu0 %v2473_v9  ;;  %v2383_v7 = vld [vmem:[%s7422_s24 + $0x70] sm:$0xff]  ;;  %v2385_v9 = vld [vmem:[%s7422_s24 + $0x80] sm:$0xff] }
 0x325   : > { %5756 = vmatprep.subr.mxu1 %v2456_v10  ;;  %5803 = vmatprep.subr.mxu0 %v2488_v12  ;;  %v2390_v10 = vld [vmem:[%s7422_s24 + $0xa8] sm:$0xff]  ;;  %v2392_v12 = vld [vmem:[%s7422_s24 + $0xb8] sm:$0xff] }
 0x326   : > { %5757 = vmatpush3.msra.mxu1 %v2440_v16  ;;  %5804 = vmatpush3.msra.mxu0 %v2472_v38  ;;  %v2389_v16 = vld [vmem:[%s7422_s24 + $0xa0] sm:$0xff]  ;;  %v2391_v38 = vld [vmem:[%s7422_s24 + $0xb0] sm:$0xff] }
 0x327   : > { %5758 = vmatprep.subr.mxu1 %v2455_v45  ;;  %5805 = vmatprep.subr.mxu0 %v2487_v54  ;;  %v2396_v45 = vld [vmem:[%s7422_s24 + $0xd8] sm:$0x1]  ;;  %v2398_v54 = vld [vmem:[%s7422_s24 + $0xe8] sm:$0x1] }
 0x328   : > { %2571 = vmatprep.mubr.f32.mxu0 %v2376_v49  ;;  %5759 = vmatpush3.msra.mxu1 %v2439_v27  ;;  %v2395_v49 = vld [vmem:[%s7422_s24 + $0xd0] sm:$0x1]  ;;  %v2397_v27 = vld [vmem:[%s7422_s24 + $0xe0] sm:$0x1]  ;;  %s8420_s24 = scalar_lea.vmem %s8860_s7, %s6016_s27  ;;  %s782_s7 = scalar_lea.vmem [#allocation15], %s6013_s2 }
 0x329   : > { %5806 = vmatpush3.msra.mxu0 %v2471_v24  ;;  %5760 = vmatprep.subr.mxu1 %v2454_v37  ;;  %v7463_v24 = vsub.s32 2, %v7384_v33  ;;  %v7468_v37 = vld [vmem:[%s8594_s8] sm:$0x3f]  ;;  %s5135_s0 = sshll.u32 %s782_s7, 4  ;;  %s5136_s0 = int_to_ptr.vmem [resolvable:$true] %s5135_s0 }
 0x32a   : > { %2572 = vmatmul.mubr.f32.gmra.mxu0 %v2375_v39  ;;  %5807 = vmatprep.subr.mxu0 %v2486_v46  ;;  %v7471_v39 = vsub.s32 1, %v7384_v33  ;;  %v7474_v46 = vsub.s32 3, %v7384_v33 }
 0x32b   : > { %5761 = vmatpush3.msra.mxu1 %v2438_v50  ;;  %5808 = vmatpush3.msra.mxu0 %v2470_v55  ;;  %8725 = vst [vmem:[#allocation28_spill] sm:$0xff] %v7463_v24  ;;  %v2075_v50 = vrot.slane %v7468_v37, %v7387_v41  ;;  %v2083_v55 = vrot.slane %v7468_v37, %v7463_v24 }
 0x32c   : > { %5762 = vmatprep.subr.mxu1 %v2453_v59  ;;  %5809 = vmatprep.subr.mxu0 %v2485_v63  ;;  %8726 = vst [vmem:[#allocation29_spill] sm:$0xff] %v7471_v39  ;;  %8727 = vst [vmem:[#allocation30_spill] sm:$0xff] %v7474_v46  ;;  %v2079_v59 = vrot.slane %v7468_v37, %v7471_v39  ;;  %v2087_v63 = vrot.slane %v7468_v37, %v7474_v46 }
 0x32d   : > { %2576 = vmatprep.mubr.f32.mxu0 %v2382_v4  ;;  %5763 = vmatpush3.msra.mxu1 %v2437_v8 }
 0x32e   : > { %5810 = vmatpush3.msra.mxu0 %v2469_v13  ;;  %5764 = vmatprep.subr.mxu1 %v2452_v14 }
 0x32f   : > { %2577 = vmatmul.mubr.f32.gmra.mxu0 %v2381_v15  ;;  %5811 = vmatprep.subr.mxu0 %v2484_v17 }
 0x330   : > { %5765 = vmatpush3.msra.mxu1 %v2436_v18  ;;  %5812 = vmatpush3.msra.mxu0 %v2468_v19 }
 0x331   : > { %5766 = vmatprep.subr.mxu1 %v2451_v2  ;;  %5813 = vmatprep.subr.mxu0 %v2483_v20 }
 0x332   : > { %2581 = vmatprep.mubr.f32.mxu0 %v2388_v21  ;;  %5767 = vmatpush3.msra.mxu1 %v2435_v23 }
 0x333   : > { %5814 = vmatpush3.msra.mxu0 %v2467_v25  ;;  %5768 = vmatprep.subr.mxu1 %v2450_v26 }
 0x334   : > { %2582 = vmatmul.mubr.f32.gmra.mxu0 %v2387_v28  ;;  %5815 = vmatprep.subr.mxu0 %v2482_v40 }
 0x335   : > { %5769 = vmatpush3.msra.mxu1 %v2434_v29  ;;  %5816 = vmatpush3.msra.mxu0 %v2466_v30 }
 0x336   : > { %5770 = vmatprep.subr.mxu1 %v2449_v31  ;;  %5817 = vmatprep.subr.mxu0 %v2481_v32 }
 0x337   : > { %2586 = vmatprep.mubr.f32.mxu0 %v2394_v35  ;;  %5771 = vmatpush3.msra.mxu1 %v2433_v36 }
 0x338   : > { %5818 = vmatpush3.msra.mxu0 %v2465_v42  ;;  %5772 = vmatprep.subr.mxu1 %v2448_v44 }
 0x339   : > { %2587 = vmatmul.mubr.f32.gmra.mxu0 %v2393_v47  ;;  %5819 = vmatprep.subr.mxu0 %v2480_v48  ;;  %v4070_v47 = vld [vmem:[#allocation10 + $0x2d8] sm:$0xff]  ;;  %v4072_v48 = vld [vmem:[#allocation10 + $0x2e8] sm:$0xff] }
 0x33a   : > { %5773 = vmatpush3.msra.mxu1 %v2432_v51  ;;  %5820 = vmatpush3.msra.mxu0 %v2464_v52  ;;  %v4069_v51 = vld [vmem:[#allocation10 + $0x2d0] sm:$0xff]  ;;  %v4071_v52 = vld [vmem:[#allocation10 + $0x2e0] sm:$0xff] }
 0x33b   : > { %5774 = vmatprep.subr.mxu1 %v2447_v53  ;;  %5821 = vmatprep.subr.mxu0 %v2479_v56  ;;  %v4064_v53 = vld [vmem:[#allocation10 + $0x2a8] sm:$0xff]  ;;  %v4066_v56 = vld [vmem:[#allocation10 + $0x2b8] sm:$0xff] }
 0x33c   : > { %5775 = vmatpush3.msra.mxu1 %v2431_v22  ;;  %2656 = vmatprep.mubr.f32.mxu1 %v2372_v57  ;;  %v4063_v22 = vld [vmem:[#allocation10 + $0x2a0] sm:$0xff]  ;;  %v4065_v57 = vld [vmem:[#allocation10 + $0x2b0] sm:$0xff] }
 0x33d   : > { %5822 = vmatpush3.msra.mxu0 %v2463_v58  ;;  %2746 = vmatprep.mubr.f32.mxu0 %v2374_v60  ;;  %v4058_v58 = vld [vmem:[#allocation10 + $0x278] sm:$0xff]  ;;  %v4060_v60 = vld [vmem:[#allocation10 + $0x288] sm:$0xff] }
 0x33e   : > { %2657 = vmatmul.mubr.f32.vlgmr.msra.gmra.mxu1 %v2371_v61  ;;  %2747 = vmatmul.mubr.f32.vlgmr.msra.gmra.mxu0 %v2373_v62  ;;  %v4057_v61 = vld [vmem:[#allocation10 + $0x270] sm:$0xff]  ;;  %v4059_v62 = vld [vmem:[#allocation10 + $0x280] sm:$0xff] }
 0x33f   : > { %2661 = vmatprep.mubr.f32.mxu1 %v2378_v0  ;;  %2751 = vmatprep.mubr.f32.mxu0 %v2380_v1  ;;  %v4052_v0 = vld [vmem:[#allocation10 + $0x248] sm:$0xff]  ;;  %v4054_v1 = vld [vmem:[#allocation10 + $0x258] sm:$0xff] }
 0x340   : > { %4107 = vmatprep.subr.mxu1 %v4070_v47  ;;  %4202 = vmatprep.subr.mxu0 %v4072_v48  ;;  %v4000_v47 = vld [vmem:[#allocation10 + $0xa8] sm:$0xff] }
 0x341   : > { %4108 = vmatpush1.msra.mxu1 %v4069_v51  ;;  %4203 = vmatpush1.msra.mxu0 %v4071_v52  ;;  %v3997_v51 = vld [vmem:[#allocation10 + $0x90] sm:$0xff]  ;;  %v3999_v52 = vld [vmem:[#allocation10 + $0xa0] sm:$0xff] }
 0x342   : > { %2662 = vmatmul.mubr.f32.gmra.mxu1 %v2377_v3  ;;  %2752 = vmatmul.mubr.f32.gmra.mxu0 %v2379_v5  ;;  %v4051_v3 = vld [vmem:[#allocation10 + $0x240] sm:$0xff]  ;;  %v4053_v5 = vld [vmem:[#allocation10 + $0x250] sm:$0xff] }
 0x343   : > { %2666 = vmatprep.mubr.f32.mxu1 %v2384_v34  ;;  %2756 = vmatprep.mubr.f32.mxu0 %v2386_v6  ;;  %v4046_v34 = vld [vmem:[#allocation10 + $0x218] sm:$0xff]  ;;  %v4048_v6 = vld [vmem:[#allocation10 + $0x228] sm:$0xff] }
 0x344   : > { %4109 = vmatprep.subr.mxu1 %v4064_v53  ;;  %4204 = vmatprep.subr.mxu0 %v4066_v56  ;;  %v3992_v56 = vld [vmem:[#allocation10 + $0x68] sm:$0xff] }
 0x345   : > { %4110 = vmatpush1.msra.mxu1 %v4063_v22  ;;  %4205 = vmatpush1.msra.mxu0 %v4065_v57  ;;  %v3994_v22 = vld [vmem:[#allocation10 + $0x78] sm:$0xff] }
 0x346   : > { %2667 = vmatmul.mubr.f32.gmra.mxu1 %v2383_v7  ;;  %2757 = vmatmul.mubr.f32.gmra.mxu0 %v2385_v9  ;;  %v4045_v7 = vld [vmem:[#allocation10 + $0x210] sm:$0xff]  ;;  %v4047_v9 = vld [vmem:[#allocation10 + $0x220] sm:$0xff] }
 0x347   : > { %2671 = vmatprep.mubr.f32.mxu1 %v2390_v10  ;;  %2761 = vmatprep.mubr.f32.mxu0 %v2392_v12  ;;  %v4040_v10 = vld [vmem:[#allocation10 + $0x1e8] sm:$0xff]  ;;  %v4042_v12 = vld [vmem:[#allocation10 + $0x1f8] sm:$0xff] }
 0x348   : > { %4111 = vmatprep.subr.mxu1 %v4058_v58  ;;  %4206 = vmatprep.subr.mxu0 %v4060_v60  ;;  %v3991_v58 = vld [vmem:[#allocation10 + $0x60] sm:$0xff]  ;;  %v3993_v60 = vld [vmem:[#allocation10 + $0x70] sm:$0xff] }
 0x349   : > { %4112 = vmatpush1.msra.mxu1 %v4057_v61  ;;  %4207 = vmatpush1.msra.mxu0 %v4059_v62  ;;  %v3986_v62 = vld [vmem:[#allocation10 + $0x38] sm:$0xff] }
 0x34a   : > { %2672 = vmatmul.mubr.f32.gmra.mxu1 %v2389_v16  ;;  %2762 = vmatmul.mubr.f32.gmra.mxu0 %v2391_v38  ;;  %v4039_v16 = vld [vmem:[#allocation10 + $0x1e0] sm:$0xff]  ;;  %v4041_v38 = vld [vmem:[#allocation10 + $0x1f0] sm:$0xff] }
 0x34b   : > { %2676 = vmatprep.mubr.f32.mxu1 %v2396_v45  ;;  %2766 = vmatprep.mubr.f32.mxu0 %v2398_v54  ;;  %v7504_v45 = vsub.s32 4, %v7384_v33  ;;  %v4034_v54 = vld [vmem:[#allocation10 + $0x1b8] sm:$0xff] }
 0x34c   : > { %4113 = vmatprep.subr.mxu1 %v4052_v0  ;;  %4208 = vmatprep.subr.mxu0 %v4054_v1  ;;  %v3988_v0 = vld [vmem:[#allocation10 + $0x48] sm:$0xff]  ;;  %v3985_v1 = vld [vmem:[#allocation10 + $0x30] sm:$0xff] }
 0x34d   : > { %4114 = vmatpush1.msra.mxu1 %v4051_v3  ;;  %4209 = vmatpush1.msra.mxu0 %v4053_v5  ;;  %8728 = vst [vmem:[#allocation31_spill] sm:$0xff] %v7504_v45  ;;  %v3987_v3 = vld [vmem:[#allocation10 + $0x40] sm:$0xff] }
 0x34e   : > { %2677 = vmatmul.mubr.f32.gmra.mxu1 %v2395_v49  ;;  %2767 = vmatmul.mubr.f32.gmra.mxu0 %v2397_v27  ;;  %v4036_v49 = vld [vmem:[#allocation10 + $0x1c8] sm:$0xff]  ;;  %v4033_v27 = vld [vmem:[#allocation10 + $0x1b0] sm:$0xff] }
 0x34f   : > { %4171 = vmatprep.mubr.f32.mxu1 %v8619_v11  ;;  %4266 = vmatprep.mubr.f32.mxu0 %v8619_v11 }
 0x350   : > { %4115 = vmatprep.subr.mxu1 %v4046_v34  ;;  %4210 = vmatprep.subr.mxu0 %v4048_v6  ;;  %v3980_v34 = vld [vmem:[#allocation10 + $0x8] sm:$0xff]  ;;  %v3982_v6 = vld [vmem:[#allocation10 + $0x18] sm:$0xff] }
 0x351   : > { %4116 = vmatpush1.msra.mxu1 %v4045_v7  ;;  %4211 = vmatpush1.msra.mxu0 %v4047_v9  ;;  %v3979_v9 = vld [vmem:[#allocation10] sm:$0xff] }
 0x352   : > { %4117 = vmatprep.subr.mxu1 %v4040_v10  ;;  %4212 = vmatprep.subr.mxu0 %v4042_v12  ;;  %v3981_v10 = vld [vmem:[#allocation10 + $0x10] sm:$0xff] }
 0x353   : > { %4118 = vmatpush1.msra.mxu1 %v4039_v16  ;;  %4213 = vmatpush1.msra.mxu0 %v4041_v38  ;;  %v4074_v16 = vld [vmem:[#allocation10 + $0x2f8] sm:$0xff] }
 0x354   : > { %4119 = vmatprep.subr.mxu1 %v4034_v54  ;;  %4214 = vmatprep.subr.mxu0 %v4036_v49  ;;  %v4459_v38 = vld [vmem:[#allocation12 + $0xf8] sm:$0xff]  ;;  %v7531_v49 = vld [vmem:[%s8597_s11] sm:$0xff] }
 0x355   : > { %4120 = vmatpush1.msra.mxu1 %v4033_v27 }
 0x3b1   : > { %v2168_v4 = vpop.f32.mrf.mxu1  ;;  %v2251_v8 = vpop.f32.mrf.mxu0 }
 0x3b2   : > { %v2169_v13 = vadd.f32 %v2168_v4, %v2075_v50  ;;  %v2252_v14 = vadd.f32 %v2251_v8, %v2083_v55  ;;  %v4027_v4 = vld [vmem:[#allocation10 + $0x180] sm:$0xff]  ;;  %v4029_v8 = vld [vmem:[#allocation10 + $0x190] sm:$0xff] }
 0x3b3   : > { %v2170_v15 = vpop.f32.mrf.mxu1  ;;  %v2253_v17 = vpop.f32.mrf.mxu0 }
 0x3b4   : > { %2351 = vst [vmem:[%s7489_s30] sm:$0xff] %v2169_v13  ;;  %2353 = vst [vmem:[%s7489_s30 + $0x10] sm:$0xff] %v2252_v14  ;;  %v2171_v18 = vadd.f32 %v2170_v15, %v2079_v59  ;;  %v2254_v19 = vadd.f32 %v2253_v17, %v2087_v63  ;;  %v7511_v13 = vrot.slane %v7468_v37, %v7504_v45  ;;  %v4022_v14 = vld [vmem:[#allocation10 + $0x158] sm:$0xff]  ;;  %v4024_v15 = vld [vmem:[#allocation10 + $0x168] sm:$0xff] }
 0x3b5   : > { %v4021_v17 = vld [vmem:[#allocation10 + $0x150] sm:$0xff] }
 0x3b6   : > { %2352 = vst [vmem:[%s7489_s30 + $0x8] sm:$0xff] %v2171_v18  ;;  %2354 = vst [vmem:[%s7489_s30 + $0x18] sm:$0xff] %v2254_v19  ;;  %v4023_v18 = vld [vmem:[#allocation10 + $0x160] sm:$0xff] }
 0x3b7   : > { %v2174_v2 = vpop.f32.mrf.mxu1  ;;  %v2257_v20 = vpop.f32.mrf.mxu0 }
 0x3b8   : > { %v2175_v21 = vadd.f32 %v2174_v2, %v2075_v50  ;;  %v2258_v23 = vadd.f32 %v2257_v20, %v2083_v55  ;;  %v4016_v2 = vld [vmem:[#allocation10 + $0x128] sm:$0xff]  ;;  %v4018_v20 = vld [vmem:[#allocation10 + $0x138] sm:$0xff] }
 0x3b9   : > { %v2176_v25 = vpop.f32.mrf.mxu1  ;;  %v2259_v26 = vpop.f32.mrf.mxu0 }
 0x3ba   : > { %2357 = vst [vmem:[%s7489_s30 + $0x30] sm:$0xff] %v2175_v21  ;;  %2359 = vst [vmem:[%s7489_s30 + $0x40] sm:$0xff] %v2258_v23  ;;  %v2177_v28 = vadd.f32 %v2176_v25, %v2079_v59  ;;  %v2260_v40 = vadd.f32 %v2259_v26, %v2087_v63  ;;  %v4015_v23 = vld [vmem:[#allocation10 + $0x120] sm:$0xff]  ;;  %v4017_v25 = vld [vmem:[#allocation10 + $0x130] sm:$0xff] }
 0x3bc   : > { %2358 = vst [vmem:[%s7489_s30 + $0x38] sm:$0xff] %v2177_v28  ;;  %2360 = vst [vmem:[%s7489_s30 + $0x48] sm:$0xff] %v2260_v40  ;;  %v4010_v28 = vld [vmem:[#allocation10 + $0xf8] sm:$0xff]  ;;  %v4012_v40 = vld [vmem:[#allocation10 + $0x108] sm:$0xff] }
 0x3bd   : > { %v2180_v29 = vpop.f32.mrf.mxu1  ;;  %v2263_v30 = vpop.f32.mrf.mxu0 }
 0x3be   : > { %v2181_v31 = vadd.f32 %v2180_v29, %v2075_v50  ;;  %v2264_v32 = vadd.f32 %v2263_v30, %v2083_v55  ;;  %v4035_v50 = vld [vmem:[#allocation10 + $0x1c0] sm:$0xff]  ;;  %v7507_v55 = vsub.s32 5, %v7384_v33 }
 0x3bf   : > { %v2182_v35 = vpop.f32.mrf.mxu1  ;;  %v2265_v36 = vpop.f32.mrf.mxu0  ;;  %4215 = vmatpush1.msra.mxu0 %v4035_v50  ;;  %v4011_v30 = vld [vmem:[#allocation10 + $0x100] sm:$0xff]  ;;  %v7536_v50 = vrot.slane %v7531_v49, %v7471_v39 }
 0x3c0   : > { %2363 = vst [vmem:[%s7489_s30 + $0x60] sm:$0x1] %v2181_v31  ;;  %2365 = vst [vmem:[%s7489_s30 + $0x70] sm:$0x1] %v2264_v32  ;;  %v2183_v42 = vadd.f32 %v2182_v35, %v2079_v59  ;;  %v2266_v44 = vadd.f32 %v2265_v36, %v2087_v63  ;;  %v4028_v59 = vld [vmem:[#allocation10 + $0x188] sm:$0xff]  ;;  %v4030_v63 = vld [vmem:[#allocation10 + $0x198] sm:$0xff]  ;;  %v7515_v19 = vrot.slane %v7468_v37, %v7507_v55 }
 0x3c1   : > { %8729 = vst [vmem:[#allocation32_spill] sm:$0xff] %v7507_v55  ;;  %4121 = vmatprep.subr.mxu1 %v4028_v59  ;;  %4216 = vmatprep.subr.mxu0 %v4030_v63  ;;  %v4009_v37 = vld [vmem:[#allocation10 + $0xf0] sm:$0xff]  ;;  %v4004_v32 = vld [vmem:[#allocation10 + $0xc8] sm:$0xff]  ;;  %v4006_v35 = vld [vmem:[#allocation10 + $0xd8] sm:$0xff]  ;;  %v7540_v59 = vrot.slane %v7531_v49, %v7387_v41 }
 0x3c2   : > { %2364 = vst [vmem:[%s7489_s30 + $0x68] sm:$0x1] %v2183_v42  ;;  %2366 = vst [vmem:[%s7489_s30 + $0x78] sm:$0x1] %v2266_v44  ;;  %4122 = vmatpush1.msra.mxu1 %v4027_v4  ;;  %4217 = vmatpush1.msra.mxu0 %v4029_v8  ;;  %v4003_v36 = vld [vmem:[#allocation10 + $0xc0] sm:$0xff]  ;;  %v4005_v42 = vld [vmem:[#allocation10 + $0xd0] sm:$0xff] }
 0x3c3   : > { %4123 = vmatprep.subr.mxu1 %v4022_v14  ;;  %4218 = vmatprep.subr.mxu0 %v4024_v15  ;;  %v3998_v44 = vld [vmem:[#allocation10 + $0x98] sm:$0xff]  ;;  %8730 = vst [vmem:[#allocation33_spill] sm:$0xff] %v7536_v50  ;;  %8731 = vst [vmem:[#allocation34_spill] sm:$0xff] %v7540_v59  ;;  %v7545_v4 = vld [vmem:[%s8598_s12] sm:$0x1]  ;;  %v7551_v14 = vrot.slane %v7531_v49, %v7463_v24 }
 0x3c4   : > { %4124 = vmatpush1.msra.mxu1 %v4021_v17  ;;  %4219 = vmatpush1.msra.mxu0 %v4023_v18  ;;  %8732 = vst [vmem:[#allocation35_spill] sm:$0xff] %v7545_v4  ;;  %v2899_v8 = vld [vmem:[#allocation3] sm:$0x3f]  ;;  %v7555_v15 = vrot.slane %v7545_v4, %v7387_v41 }
 0x3c5   : > { %4125 = vmatprep.subr.mxu1 %v4016_v2  ;;  %4220 = vmatprep.subr.mxu0 %v4018_v20  ;;  %8733 = vst [vmem:[#allocation36_spill] sm:$0xff] %v7551_v14  ;;  %v2915_v17 = vmul.f32 %v7540_v59, %v2899_v8  ;;  %v2935_v18 = vmul.f32 %v7536_v50, %v2899_v8  ;;  %v2900_v2 = vld [vmem:[#allocation3 + $0x8] sm:$0x3f] }
 0x3c6   : > { %4126 = vmatpush1.msra.mxu1 %v4015_v23  ;;  %4221 = vmatpush1.msra.mxu0 %v4017_v25  ;;  %8734 = vst [vmem:[#allocation37_spill] sm:$0xff] %v7555_v15  ;;  %v2979_v25 = vmul.f32 %v7551_v14, %v2899_v8 }
 0x3c7   : > { %4127 = vmatprep.subr.mxu1 %v4010_v28  ;;  %4222 = vmatprep.subr.mxu0 %v4012_v40  ;;  %v2951_v23 = vrot.slane %v2935_v18, 1  ;;  %v7567_v28 = vld [vmem:[#allocation3 + $0x10] sm:$0x3f]  ;;  %v2916_v40 = vmul.f32 %v7540_v59, %v2900_v2 }
 0x3c8   : > { %4128 = vmatpush1.msra.mxu1 %v4009_v37  ;;  %4223 = vmatpush1.msra.mxu0 %v4011_v30  ;;  %v7573_v37 = vrot.slane %v7531_v49, %v7474_v46 }
 0x3c9   : > { %4129 = vmatprep.subr.mxu1 %v4004_v32  ;;  %4224 = vmatprep.subr.mxu0 %v4006_v35  ;;  %v7577_v32 = vrot.slane %v7531_v49, %v7504_v45 }
 0x3ca   : > { %4130 = vmatpush1.msra.mxu1 %v4003_v36  ;;  %4225 = vmatpush1.msra.mxu0 %v4005_v42  ;;  %8735 = vst [vmem:[#allocation38_spill] sm:$0xff] %v7573_v37  ;;  %v7581_v36 = vld [vmem:[#allocation3 + $0x18] sm:$0x3f]  ;;  %v2917_v42 = vmul.f32 %v7540_v59, %v7567_v28 }
 0x3cb   : > { %4131 = vmatprep.subr.mxu1 %v3998_v44  ;;  %4226 = vmatprep.subr.mxu0 %v4000_v47  ;;  %8736 = vst [vmem:[#allocation39_spill] sm:$0xff] %v7577_v32  ;;  %v2937_v44 = vmul.f32 %v7536_v50, %v7567_v28  ;;  %v2924_v47 = vadd.f32 %v2916_v40, %v7555_v15 }
 0x3cc   : > { %4132 = vmatpush1.msra.mxu1 %v3997_v51  ;;  %4227 = vmatpush1.msra.mxu0 %v3999_v52  ;;  %v2980_v51 = vmul.f32 %v7551_v14, %v2900_v2 }
 0x3cd   : > { %4133 = vmatprep.subr.mxu1 %v3992_v56  ;;  %4228 = vmatprep.subr.mxu0 %v3994_v22  ;;  %v2938_v56 = vmul.f32 %v7536_v50, %v7581_v36 }
 0x3ce   : > { %4134 = vmatpush1.msra.mxu1 %v3991_v58  ;;  %4229 = vmatpush1.msra.mxu0 %v3993_v60  ;;  %v2925_v58 = vadd.f32 %v2917_v42, %v7555_v15  ;;  %v2953_v60 = vrot.slane %v2937_v44, 1 }
 0x3cf   : > { %4135 = vmatprep.subr.mxu1 %v3986_v62  ;;  %4230 = vmatprep.subr.mxu0 %v3988_v0  ;;  %v3043_v62 = vmul.f32 %v7577_v32, %v2900_v2 }
 0x3d0   : > { %4136 = vmatpush1.msra.mxu1 %v3985_v1  ;;  %4231 = vmatpush1.msra.mxu0 %v3987_v3  ;;  %v2996_v3 = vrot.slane %v2980_v51, 2 }
 0x3d1   : > { %4137 = vmatprep.subr.mxu1 %v3980_v34  ;;  %4232 = vmatprep.subr.mxu0 %v3982_v6  ;;  %v7610_v34 = vld [vmem:[%s8597_s11 + $0x18] sm:$0x7]  ;;  %v7614_v6 = vrot.slane %v7531_v49, %v7507_v55  ;;  %v3059_v8 = vrot.slane %v3043_v62, 1 }
 0x3d2   : > { %4138 = vmatpush1.msra.mxu1 %v3979_v9  ;;  %4233 = vmatpush1.msra.mxu0 %v3981_v10  ;;  %v2954_v10 = vrot.slane %v2938_v56, 1 }
 0x3d3   : > { %4297 = vmatprep.subr.mxu1 %v4074_v16  ;;  %5838 = vmatprep.subr.mxu0 %v4459_v38  ;;  %v2969_v16 = vadd.f32 %v2953_v60, %v2925_v58 }
 0x3d5   : > { %v2334_v21 = vpop.f32.mrf.mxu1 }
 0x3d6   : > { %v2335_v26 = vadd.f32 %v2334_v21, %v7511_v13  ;;  %v2923_v21 = vadd.f32 %v2915_v17, %v7555_v15 }
 0x3d7   : > { %v2336_v29 = vpop.f32.mrf.mxu1  ;;  %v5729_v27 = vpop.f32.mrf.mxu0 }
 0x3d8   : > { %2355 = vst [vmem:[%s7489_s30 + $0x20] sm:$0xff] %v2335_v26  ;;  %v2337_v31 = vadd.f32 %v2336_v29, %v7515_v19  ;;  %v2936_v29 = vmul.f32 %v7536_v50, %v2900_v2  ;;  %v2967_v30 = vadd.f32 %v2951_v23, %v2923_v21  ;;  %v3024_v21 = vmul.f32 %v7573_v37, %v7567_v28 }
 0x3d9   : > { %v5730_v63 = vpop.f32.mrf.mxu0 }
 0x3da   : > { %2356 = vst [vmem:[%s7489_s30 + $0x28] sm:$0xff] %v2337_v31  ;;  %v2995_v31 = vrot.slane %v2979_v25, 2  ;;  %v5731_v17 = vadd.f32 %v5730_v63, %v5729_v27  ;;  %v7629_v25 = vrot.slane %v7610_v34, %v7463_v24  ;;  %v7638_v27 = vld [vmem:[%s8596_s10] ss:$0 sm:$0xff] }
 0x3db   : > { %v2340_v48 = vpop.f32.mrf.mxu1 }
 0x3dc   : > { %v2341_v53 = vadd.f32 %v2340_v48, %v7511_v13  ;;  %v2952_v48 = vrot.slane %v2936_v29, 1  ;;  %v3011_v22 = vadd.f32 %v2995_v31, %v2967_v30  ;;  %8737 = vst [vmem:[#allocation40_spill] sm:$0xff] %v7629_v25  ;;  %v3044_v30 = vmul.f32 %v7577_v32, %v7567_v28 }
 0x3dd   : > { %v2342_v57 = vpop.f32.mrf.mxu1  ;;  %v7644_v31 = vrot.slane %v7610_v34, %v7471_v39  ;;  %v2569_v60 = vadd.f32 %v5731_v17, %v7638_v27  ;;  %v2905_v17 = vld [vmem:[#allocation3 + $0x30] sm:$0x3f] }
 0x3de   : > { %2361 = vst [vmem:[%s7489_s30 + $0x50] sm:$0xff] %v2341_v53  ;;  %v2343_v61 = vadd.f32 %v2342_v57, %v7515_v19  ;;  %v2918_v53 = vmul.f32 %v7540_v59, %v7581_v36  ;;  %v3023_v57 = vmul.f32 %v7573_v37, %v2900_v2  ;;  %v2968_v1 = vadd.f32 %v2952_v48, %v2924_v47 }
 0x3df   : > { %v3087_v47 = vmul.f32 %v7614_v6, %v2900_v2  ;;  %v3060_v2 = vrot.slane %v3044_v30, 1 }
 0x3e0   : > { %2362 = vst [vmem:[%s7489_s30 + $0x58] sm:$0xff] %v2343_v61  ;;  %v2346_v5 = vpop.f32.mrf.mxu1  ;;  %v2981_v61 = vmul.f32 %v7551_v14, %v7567_v28  ;;  %v2926_v9 = vadd.f32 %v2918_v53, %v7555_v15  ;;  %v3012_v18 = vadd.f32 %v2996_v3, %v2968_v1  ;;  %v7647_v53 = vld [vmem:[#allocation3 + $0x20] sm:$0x3f]  ;;  %v7658_v3 = vmul.f32 %v7614_v6, %v7567_v28 }
 0x3e1   : > { %v2347_v7 = vadd.f32 %v2346_v5, %v7511_v13  ;;  %v7605_v5 = vld [vmem:[%s8597_s11 + $0x10] sm:$0xff] }
 0x3e2   : > { %v2348_v12 = vpop.f32.mrf.mxu1  ;;  %v2997_v38 = vrot.slane %v2981_v61, 2  ;;  %v7625_v23 = vrot.slane %v7605_v5, %v7463_v24  ;;  %v7633_v40 = vrot.slane %v7605_v5, %v7471_v39  ;;  %v2970_v42 = vadd.f32 %v2954_v10, %v2926_v9 }
 0x3e3   : > { %2367 = vst [vmem:[%s7489_s30 + $0x80] sm:$0x1] %v2347_v7  ;;  %v2349_v54 = vadd.f32 %v2348_v12, %v7515_v19  ;;  %v2982_v12 = vmul.f32 %v7551_v14, %v7581_v36  ;;  %v3032_v1 = vadd.f32 %v3024_v21, %v3012_v18  ;;  %v7661_v9 = vsub.s32 6, %v7384_v33 }
 0x3e4   : > { %v3013_v56 = vadd.f32 %v2997_v38, %v2969_v16  ;;  %v7664_v10 = vsub.s32 7, %v7384_v33  ;;  %v3046_v21 = vmul.f32 %v7577_v32, %v7647_v53 }
 0x3e5   : > { %2368 = vst [vmem:[%s7489_s30 + $0x88] sm:$0x1] %v2349_v54  ;;  %v3031_v54 = vadd.f32 %v3023_v57, %v3011_v22  ;;  %v2998_v44 = vrot.slane %v2982_v12, 2  ;;  %v3025_v22 = vmul.f32 %v7573_v37, %v7581_v36  ;;  %v3045_v57 = vmul.f32 %v7577_v32, %v7581_v36  ;;  %s8474_s30 = scalar_lea.vmem %s8606_s20, %s6015_s28  ;;  %s6365_s28 = scalar_lea.vmem %s5136_s0, 768 }
 0x3e6   : > { %p6366_p9 = scmp.ne.s32.totalorder %s5136_s0, %s6365_s28 }
 0x3e7   : > { %v3075_v58 = vadd.f32 %v3059_v8, %v3031_v54  ;;  %v3014_v8 = vadd.f32 %v2998_v44, %v2970_v42  ;;  %v3033_v18 = vadd.f32 %v3025_v22, %v3013_v56  ;;  %v3061_v44 = vrot.slane %v3045_v57, 1 }
 0x3e8   : > { %p6367_p4 = pnand %p6366_p9, %p6604_p5 }
 0x3ea   : > { %v7547_v13 = vpop.f32.mrf.mxu0  ;;  %p6368_p8 = pneg %p6367_p4 }
 0x3ec   : > { %v7559_v19 = vpop.f32.mrf.mxu0 }
 0x3ed   : > { %v5734_v61 = vadd.f32 %v7559_v19, %v7547_v13  ;;  %v3026_v13 = vmul.f32 %v7573_v37, %v7647_v53 }
 0x3ef   : > { %v7561_v20 = vpop.f32.mrf.mxu0 }
 0x3f1   : > { %v7565_v26 = vpop.f32.mrf.mxu0 }
 0x3f2   : > { %v5737_v19 = vadd.f32 %v7565_v26, %v7561_v20  ;;  %v7679_v20 = vrot.slane %v7531_v49, %v7661_v9  ;;  %v7683_v26 = vrot.slane %v7531_v49, %v7664_v10 }
 0x3f4   : > { %v7579_v35 = vpop.f32.mrf.mxu0  ;;  %8738 = vst [vmem:[#allocation41_spill] sm:$0xff] %v7679_v20  ;;  %8739 = vst [vmem:[#allocation42_spill] sm:$0xff] %v7683_v26  ;;  %v2579_v57 = vadd.f32 %v5737_v19, %v7638_v27  ;;  %v3131_v19 = vmul.f32 %v7679_v20, %v7567_v28 }
 0x3f6   : > { %v7589_v52 = vpop.f32.mrf.mxu0 }
 0x3f9   : > { %v7600_v0 = vpop.f32.mrf.mxu0 }
 0x3fb   : > { %v7616_v7 = vpop.f32.mrf.mxu0 }
 0x3fe   : > { %v5776_v63 = vpop.f32.mrf.mxu1  ;;  %v5823_v29 = vpop.f32.mrf.mxu0 }
 0x400   : > { %v5777_v48 = vpop.f32.mrf.mxu1  ;;  %v5824_v51 = vpop.f32.mrf.mxu0 }
 0x401   : > { %v5778_v62 = vadd.f32 %v5777_v48, %v5776_v63  ;;  %v5825_v54 = vadd.f32 %v5824_v51, %v5823_v29  ;;  %v3103_v63 = vrot.slane %v3087_v47, 2  ;;  %v2574_v48 = vadd.f32 %v5734_v61, %v7638_v27 }
 0x402   : > { %v5779_v12 = vpop.f32.mrf.mxu1  ;;  %v5826_v16 = vpop.f32.mrf.mxu0  ;;  %v7675_v51 = vadd.f32 %v3060_v2, %v3032_v1  ;;  %v5740_v1 = vadd.f32 %v7589_v52, %v7579_v35  ;;  %v2939_v2 = vmul.f32 %v7536_v50, %v2905_v17 }
 0x403   : > { %v2659_v38 = vadd.f32 %v5778_v62, %v2569_v60  ;;  %v2919_v60 = vmul.f32 %v7540_v59, %v2905_v17 }
 0x404   : > { %v5780_v30 = vpop.f32.mrf.mxu1  ;;  %v5827_v33 = vpop.f32.mrf.mxu0 }
 0x405   : > { %v7673_v11 = vadd.f32 %v5825_v54, %v2659_v38  ;;  %v5781_v29 = vadd.f32 %v5780_v30, %v5779_v12  ;;  %v5828_v42 = vadd.f32 %v5827_v33, %v5826_v16  ;;  %v3034_v12 = vadd.f32 %v3026_v13, %v3014_v8  ;;  %v7695_v54 = vld [vmem:[%s8597_s11 + $0x8] sm:$0xff] }
 0x406   : > { %v5782_v47 = vpop.f32.mrf.mxu1  ;;  %v5829_v56 = vpop.f32.mrf.mxu0  ;;  %v7703_v35 = vrot.slane %v7695_v54, %v7387_v41  ;;  %v3151_v13 = vmul.f32 %v7683_v26, %v7567_v28 }
 0x407   : > { %v5370_v22 = vmul.f32 -1.702, %v7673_v11  ;;  %v2664_v62 = vadd.f32 %v5781_v29, %v2574_v48  ;;  %v3119_v29 = vadd.f32 %v3103_v63, %v3075_v58  ;;  %v5743_v58 = vadd.f32 %v7616_v7, %v7600_v0 }
 0x408   : > { %v5783_v16 = vpop.f32.mrf.mxu1  ;;  %v5830_v49 = vpop.f32.mrf.mxu0  ;;  %8740 = vst [vmem:[#allocation43_spill] sm:$0xff] %v7703_v35  ;;  %v2927_v63 = vadd.f32 %v2919_v60, %v7555_v15  ;;  %v2983_v60 = vmul.f32 %v7551_v14, %v2905_v17 }
 0x409   : > { %v2782_v38 = vmul.f32 1.442695, %v5370_v22  ;;  %v7697_v30 = vadd.f32 %v5828_v42, %v2664_v62  ;;  %v5784_v33 = vadd.f32 %v5783_v16, %v5782_v47  ;;  %v5831_v48 = vadd.f32 %v5830_v49, %v5829_v56 }
 0x40a   : > { %v5785_v52 = vpop.f32.mrf.mxu1  ;;  %v5832_v8 = vpop.f32.mrf.mxu0  ;;  %v3062_v22 = vrot.slane %v3046_v21, 1  ;;  %v2584_v47 = vadd.f32 %v5740_v1, %v7638_v27  ;;  %v3077_v56 = vadd.f32 %v3061_v44, %v3033_v18  ;;  %v3139_v21 = vadd.f32 %v3131_v19, %v3119_v29 }
 0x40b   : > { %6159 = vpow2.f32 %v2782_v38  ;;  %v5371_v42 = vmul.f32 -1.702, %v7697_v30  ;;  %v2669_v62 = vadd.f32 %v5784_v33, %v2579_v57  ;;  %v2955_v38 = vrot.slane %v2939_v2, 1 }
 0x40c   : > { %v5786_v16 = vpop.f32.mrf.mxu1  ;;  %v5833_v49 = vpop.f32.mrf.mxu0  ;;  %v3167_v57 = vrot.slane %v3151_v13, 1  ;;  %v3195_v1 = vmul.f32 %v7703_v35, %v7567_v28  ;;  %v3089_v18 = vmul.f32 %v7614_v6, %v7581_v36  ;;  %v2589_v44 = vadd.f32 %v5743_v58, %v7638_v27 }
 0x40d   : > { %v2784_v61 = vmul.f32 1.442695, %v5371_v42  ;;  %v7712_v4 = vadd.f32 %v5831_v48, %v2669_v62  ;;  %v5787_v32 = vadd.f32 %v5786_v16, %v5785_v52  ;;  %v5834_v37 = vadd.f32 %v5833_v49, %v5832_v8 }
 0x40e   : > { %v5788_v50 = vpop.f32.mrf.mxu1  ;;  %v5835_v59 = vpop.f32.mrf.mxu0  ;;  %v3078_v33 = vadd.f32 %v3062_v22, %v3034_v12  ;;  %v3090_v29 = vmul.f32 %v7614_v6, %v7647_v53  ;;  %v7731_v27 = vrot.slane %v7695_v54, %v7463_v24  ;;  %v3183_v17 = vadd.f32 %v3167_v57, %v3139_v21  ;;  %v3236_v22 = vld [vmem:[#allocation3 + $0x30] sm:$0x3f]  ;;  %v2904_v57 = vld [vmem:[#allocation3 + $0x28] sm:$0x3f] }
 0x40f   : > { %6161 = vpow2.f32 %v2784_v61  ;;  %v5372_v0 = vmul.f32 -1.702, %v7712_v4  ;;  %v2674_v7 = vadd.f32 %v5787_v32, %v2584_v47  ;;  %v7727_v32 = vrot.slane %v7695_v54, %v7471_v39 }
 0x410   : > { %v5789_v2 = vpop.f32.mrf.mxu1  ;;  %v5836_v48 = vpop.f32.mrf.mxu0  ;;  %8742 = vst [vmem:[#allocation45_spill] sm:$0xff] %v7731_v27  ;;  %v3211_v12 = vrot.slane %v3195_v1, 2  ;;  %v3105_v42 = vrot.slane %v3089_v18, 2  ;;  %v7739_v62 = vrot.slane %v7695_v54, %v7474_v46  ;;  %v3106_v47 = vrot.slane %v3090_v29, 2 }
 0x411   : > { %v2786_v19 = vmul.f32 1.442695, %v5372_v0  ;;  %v7723_v52 = vadd.f32 %v5834_v37, %v2674_v7  ;;  %v5790_v28 = vadd.f32 %v5789_v2, %v5788_v50  ;;  %v5837_v61 = vadd.f32 %v5836_v48, %v5835_v59  ;;  %8741 = vst [vmem:[#allocation44_spill] sm:$0xff] %v7727_v32 }
 0x412   : > { %v2971_v37 = vadd.f32 %v2955_v38, %v2927_v63  ;;  %v8743_v50 = vrot.slane %v7658_v3, 2  ;;  %8744 = vst [vmem:[#allocation46_spill] sm:$0xff] %v7739_v62  ;;  %v3132_v58 = vmul.f32 %v7679_v20, %v7581_v36  ;;  %v3152_v21 = vmul.f32 %v7683_v26, %v7581_v36 }
 0x413   : > { %6163 = vpow2.f32 %v2786_v19  ;;  %v5373_v8 = vmul.f32 -1.702, %v7723_v52  ;;  %v2679_v13 = vadd.f32 %v5790_v28, %v2589_v44  ;;  %v3227_v63 = vadd.f32 %v3211_v12, %v3183_v17 }
 0x414   : > { %v3120_v59 = vadd.f32 %v8743_v50, %v7675_v51  ;;  %v3252_v38 = vmul.f32 %v7727_v32, %v3236_v22  ;;  %v3272_v3 = vmul.f32 %v7731_v27, %v3236_v22  ;;  %v3133_v51 = vmul.f32 %v7679_v20, %v7647_v53 }
 0x415   : > { %v2788_v16 = vmul.f32 1.442695, %v5373_v8  ;;  %v7743_v49 = vadd.f32 %v5837_v61, %v2679_v13  ;;  %v3121_v0 = vadd.f32 %v3105_v42, %v3077_v56  ;;  %v3153_v7 = vmul.f32 %v7683_v26, %v7647_v53 }
 0x416   : > { %v2999_v44 = vrot.slane %v2983_v60, 2  ;;  %v3122_v2 = vadd.f32 %v3106_v47, %v3078_v33  ;;  %v3134_v48 = vmul.f32 %v7679_v20, %v2904_v57  ;;  %v3154_v29 = vmul.f32 %v7683_v26, %v2904_v57 }
 0x417   : > { %6165 = vpow2.f32 %v2788_v16  ;;  %v5374_v1 = vmul.f32 -1.702, %v7743_v49  ;;  %v3140_v28 = vadd.f32 %v3132_v58, %v3120_v59  ;;  %v3196_v17 = vmul.f32 %v7703_v35, %v7581_v36 }
 0x418   : > { %v6160_v18 = vpop.eup %6159  ;;  %v3168_v12 = vrot.slane %v3152_v21, 1  ;;  %v3260_v8 = vadd.f32 %v3252_v38, %v3227_v63  ;;  %v3288_v13 = vrot.slane %v3272_v3, 1  ;;  %v3316_v56 = vmul.f32 %v7739_v62, %v3236_v22 }
 0x419   : > { %v2792_v19 = vadd.f32 1.0, %v6160_v18  ;;  %v2790_v61 = vmul.f32 1.442695, %v5374_v1  ;;  %v3141_v42 = vadd.f32 %v3133_v51, %v3121_v0  ;;  %v3169_v50 = vrot.slane %v3153_v7, 1  ;;  %v3573_v0 = vld [vmem:[#allocation3 + $0x60] sm:$0x3f] }
 0x41a   : > { %v3197_v60 = vmul.f32 %v7703_v35, %v7647_v53  ;;  %v3142_v47 = vadd.f32 %v3134_v48, %v3122_v2  ;;  %v3170_v16 = vrot.slane %v3154_v29, 1  ;;  %v3198_v59 = vmul.f32 %v7703_v35, %v2904_v57 }
 0x41b   : > { %6167 = vrcp.f32 %v2792_v19  ;;  %v7764_v36 = vrot.slane %v7605_v5, %v7474_v46  ;;  %v7768_v58 = vrot.slane %v7605_v5, %v7504_v45  ;;  %v7772_v22 = vrot.slane %v7605_v5, %v7507_v55 }
 0x41c   : > { %v6162_v33 = vpop.eup %6161  ;;  %6169 = vpow2.f32 %v2790_v61  ;;  %v7774_v53 = vadd.f32 %v2999_v44, %v2971_v37  ;;  %v7778_v63 = vrot.slane %v7695_v54, %v7504_v45  ;;  %v7782_v57 = vrot.slane %v7695_v54, %v7507_v55  ;;  %v3241_v44 = vld [vmem:[#allocation3 + $0x58] sm:$0x3f] }
 0x41d   : > { %v2793_v21 = vadd.f32 1.0, %v6162_v33  ;;  %v3212_v38 = vrot.slane %v3196_v17, 2  ;;  %v3184_v3 = vadd.f32 %v3168_v12, %v3140_v28  ;;  %v3304_v51 = vadd.f32 %v3288_v13, %v3260_v8  ;;  %v3578_v33 = vld [vmem:[#allocation3 + $0x88] sm:$0x3f]  ;;  %v3580_v45 = vld [vmem:[#allocation3 + $0x98] sm:$0x3f] }
 0x41e   : > { %v3332_v1 = vrot.slane %v3316_v56, 2  ;;  %v3185_v18 = vadd.f32 %v3169_v50, %v3141_v42  ;;  %v3186_v2 = vadd.f32 %v3170_v16, %v3142_v47  ;;  %v3213_v48 = vrot.slane %v3197_v60, 2  ;;  %v3242_v56 = vld [vmem:[#allocation3 + $0x60] sm:$0x3f] }
 0x41f   : > { %6171 = vrcp.f32 %v2793_v21  ;;  %v3214_v37 = vrot.slane %v3198_v59, 2  ;;  %v7786_v29 = vrot.slane %v7695_v54, %v7661_v9  ;;  %v7790_v19 = vrot.slane %v7695_v54, %v7664_v10 }
 0x420   : > { %v6164_v7 = vpop.eup %6163  ;;  %v7794_v28 = vrot.slane %v7605_v5, %v7387_v41  ;;  %v7798_v17 = vrot.slane %v7605_v5, %v7661_v9  ;;  %v7802_v8 = vmul.f32 %v7764_v36, %v3573_v0  ;;  %v7805_v13 = vmul.f32 %v7768_v58, %v3573_v0 }
 0x421   : > { %v2794_v61 = vadd.f32 1.0, %v6164_v7  ;;  %v7807_v42 = vadd.f32 %v3212_v38, %v3184_v3  ;;  %v7809_v50 = vadd.f32 %v3332_v1, %v3304_v51  ;;  %v7816_v47 = vrot.slane %v7605_v5, %v7664_v10  ;;  %v3579_v5 = vld [vmem:[#allocation3 + $0x90] sm:$0x3f]  ;;  %v2910_v10 = vld [vmem:[#allocation3 + $0x58] sm:$0x3f] }
 0x422   : > { %v7812_v60 = vmul.f32 %v7794_v28, %v3241_v44  ;;  %v7818_v16 = vadd.f32 %v3213_v48, %v3185_v18  ;;  %v7820_v59 = vadd.f32 %v3214_v37, %v3186_v2  ;;  %v7823_v21 = vmul.f32 %v7633_v40, %v3241_v44 }
 0x423   : > { %6173 = vrcp.f32 %v2794_v61  ;;  %v7827_v3 = vrot.slane %v7610_v34, %v7387_v41  ;;  %v7830_v51 = vmul.f32 %v7731_v27, %v3242_v56  ;;  %v7833_v1 = vmul.f32 %v7739_v62, %v3242_v56 }
 0x424   : > { %v6166_v9 = vpop.eup %6165  ;;  %v7836_v7 = vmul.f32 %v7625_v23, %v3573_v0  ;;  %v7841_v48 = vmul.f32 %v7644_v31, %v3578_v33  ;;  %v7844_v34 = vmul.f32 %v7790_v19, %v3241_v44  ;;  %v7848_v61 = vmul.f32 %v7629_v25, %v3578_v33 }
 0x425   : > { %v2795_v38 = vadd.f32 1.0, %v6166_v9  ;;  %8745 = vst [vmem:[#allocation47_spill] sm:$0xff] %v7830_v51  ;;  %8746 = vst [vmem:[#allocation48_spill] sm:$0xff] %v7833_v1  ;;  %v7852_v12 = vmul.f32 %v7727_v32, %v3242_v56  ;;  %v7855_v2 = vmul.f32 %v7764_v36, %v3579_v5  ;;  %v7858_v18 = vmul.f32 %v7683_v26, %v2910_v10 }
 0x426   : > { %8747 = vst [vmem:[#allocation49_spill] sm:$0xff] %v7841_v48  ;;  %8748 = vst [vmem:[#allocation50_spill] sm:$0xff] %v7848_v61  ;;  %v7864_v37 = vmul.f32 %v7827_v3, %v3578_v33  ;;  %v7870_v39 = vmul.f32 %v7768_v58, %v3579_v5  ;;  %v7873_v24 = vmul.f32 %v7703_v35, %v2910_v10  ;;  %v8774_v48 = vrot.slane %v7695_v54, 5  ;;  %v8778_v35 = vld [vmem:[#allocation35_spill] sm:$0xff] }
 0x427   : > { %6175 = vrcp.f32 %v2795_v38  ;;  %8749 = vst [vmem:[#allocation51_spill] sm:$0xff] %v7852_v12  ;;  %8750 = vst [vmem:[#allocation52_spill] sm:$0xff] %v7855_v2  ;;  %v7882_v0 = vmul.f32 %v7679_v20, %v2910_v10  ;;  %v7885_v55 = vmul.f32 %v7764_v36, %v3580_v45  ;;  %v7889_v41 = vmul.f32 %v7798_v17, %v3580_v45 }
 0x428   : > { %v6168_v9 = vpop.eup %6167  ;;  %8751 = vst [vmem:[#allocation53_spill] sm:$0xff] %v7858_v18  ;;  %8752 = vst [vmem:[#allocation54_spill] sm:$0xff] %v7864_v37  ;;  %v7895_v10 = vmul.f32 %v7625_v23, %v3580_v45  ;;  %v8788_v20 = vrot.slane %v7802_v8, 1 }
 0x429   : > { %v6170_v38 = vpop.eup %6169  ;;  %v7861_v44 = vmul.f32 %v6168_v9, %v7673_v11  ;;  %8753 = vst [vmem:[#allocation55_spill] sm:$0xff] %v7870_v39  ;;  %8754 = vst [vmem:[#allocation56_spill] sm:$0xff] %v7873_v24  ;;  %v7879_v9 = vmul.f32 %v7625_v23, %v3579_v5 }
 0x42a   : > { %v2796_v56 = vadd.f32 1.0, %v6170_v38  ;;  %8756 = vst [vmem:[#allocation58_spill] sm:$0xff] %v7882_v0  ;;  %8757 = vst [vmem:[#allocation59_spill] sm:$0xff] %v7885_v55  ;;  %v7899_v0 = vmul.f32 %v7772_v22, %v3580_v45 }
 0x42b   : > { %v2841_v11 = vcombine.high %v7861_v44, %v7861_v44  ;;  %8755 = vst [vmem:[#allocation57_spill] sm:$0xff] %v7879_v9  ;;  %8758 = vst [vmem:[#allocation60_spill] sm:$0xff] %v7889_v41  ;;  %v5375_v51 = vrot.slane %v7861_v44, 9  ;;  %v7910_v9 = vmul.f32 %v7816_v47, %v3580_v45  ;;  %v3912_v12 = vmul.f32 %v8774_v48, %v7861_v44 }
 0x42c   : > { %v6172_v38 = vpop.eup %6171  ;;  %6177 = vrcp.f32 %v2796_v56  ;;  %8759 = vst [vmem:[#allocation61_spill] sm:$0xff] %v7895_v10  ;;  %8760 = vst [vmem:[#allocation62_spill] sm:$0xff] %v7899_v0  ;;  %v7906_v56 = vmul.f32 %v7768_v58, %v3580_v45 }
 0x42d   : > { %v2847_v33 = vrot.slane %v2841_v11, 5  ;;  %v2808_v5 = vmul.f32 %v6172_v38, %v7697_v30  ;;  %8762 = vst [vmem:[#allocation64_spill] sm:$0xff] %v7910_v9  ;;  %v7989_v26 = vadd.f32 %v3912_v12, %v8778_v35 }
 0x42e   : > { %8761 = vst [vmem:[#allocation63_spill] sm:$0xff] %v7906_v56 }
 0x42f   : > { %v2848_v2 = vsel %vm6978_vm2, %v5375_v51, %v2847_v33  ;;  %v2849_v1 = vrot.slane %v2847_v33, 4  ;;  %v2842_v18 = vcombine.high %v2808_v5, %v2808_v5  ;;  %v2850_v61 = vrot.slane %v2808_v5, 5  ;;  %v3581_v5 = vld [vmem:[#allocation3 + $0xa0] sm:$0x3f] }
 0x430   : > { %v6174_v11 = vpop.eup %6173  ;;  %2879 = vst [vmem:[#allocation3 + $0x39] sm:$0xf] %v2848_v2  ;;  %v7916_v2 = vmul.f32 %v7798_v17, %v3581_v5  ;;  %v7919_v30 = vmul.f32 %v7816_v47, %v3581_v5  ;;  %v7922_v38 = vmul.f32 %v7644_v31, %v3581_v5  ;;  %v7925_v45 = vmul.f32 %v7629_v25, %v3581_v5 }
 0x431   : > { %v2851_v46 = vsel %vm6978_vm2, %v2849_v1, %v2850_v61  ;;  %v2852_v0 = vrot.slane %v2850_v61, 4  ;;  %v2853_v51 = vrot.slane %v2842_v18, 5  ;;  %v2809_v33 = vmul.f32 %v6174_v11, %v7712_v4 }
 0x432   : > { %2880 = vst [vmem:[#allocation3 + $0x41] sm:$0xf] %v2851_v46  ;;  %8763 = vst [vmem:[#allocation65_spill] sm:$0xff] %v7916_v2  ;;  %v7931_v41 = vmul.f32 %v7772_v22, %v3581_v5  ;;  %v7935_v55 = vmul.f32 %v7827_v3, %v3581_v5  ;;  %v8771_v46 = vld [vmem:[#allocation38_spill] sm:$0xff] }
 0x433   : > { %8764 = vst [vmem:[#allocation66_spill] sm:$0xff] %v7919_v30  ;;  %8765 = vst [vmem:[#allocation67_spill] sm:$0xff] %v7922_v38  ;;  %v2854_v1 = vsel %vm6978_vm2, %v2852_v0, %v2853_v51  ;;  %v2855_v18 = vrot.slane %v2853_v51, 4  ;;  %v2843_v61 = vcombine.high %v2809_v33, %v2809_v33  ;;  %v2856_v4 = vrot.slane %v2809_v33, 5  ;;  %v8772_v33 = vld [vmem:[#allocation39_spill] sm:$0xff] }
 0x434   : > { %8766 = vst [vmem:[#allocation68_spill] sm:$0xff] %v7925_v45  ;;  %v6176_v11 = vpop.eup %6175  ;;  %2881 = vst [vmem:[#allocation3 + $0x49] sm:$0xf] %v2854_v1  ;;  %v7960_v38 = vld [vmem:[#allocation3 + $0xa8] sm:$0x3f] }
 0x435   : > { %8767 = vst [vmem:[#allocation69_spill] sm:$0xff] %v7931_v41  ;;  %8768 = vst [vmem:[#allocation70_spill] sm:$0xff] %v7935_v55  ;;  %v2857_v10 = vsel %vm6978_vm2, %v2855_v18, %v2856_v4  ;;  %v2858_v24 = vrot.slane %v2856_v4, 4  ;;  %v2859_v0 = vrot.slane %v2843_v61, 5  ;;  %v2810_v51 = vmul.f32 %v6176_v11, %v7723_v52  ;;  %v8769_v61 = vld [vmem:[#allocation34_spill] sm:$0xff] }
 0x436   : > { %2882 = vst [vmem:[#allocation3 + $0x51] sm:$0xf] %v2857_v10  ;;  %v8770_v10 = vld [vmem:[#allocation33_spill] sm:$0xff]  ;;  %8773 = vst [vmem:[#allocation34_spill] sm:$0xff] %v7960_v38 }
 0x437   : > { %v7944_v39 = vld [vmem:[#allocation3 + $0x38] sm:$0x3f]  ;;  %v2860_v5 = vsel %vm6978_vm2, %v2858_v24, %v2859_v0  ;;  %v2861_v55 = vrot.slane %v2859_v0, 4  ;;  %v2844_v18 = vcombine.high %v2810_v51, %v2810_v51  ;;  %v2862_v4 = vrot.slane %v2810_v51, 5 }
 0x438   : > { %v2920_v52 = vmul.f32 %v8769_v61, %v7944_v39  ;;  %v2940_v11 = vmul.f32 %v8770_v10, %v7944_v39  ;;  %v2984_v1 = vmul.f32 %v7551_v14, %v7944_v39  ;;  %v3027_v41 = vmul.f32 %v8771_v46, %v7944_v39  ;;  %2883 = vst [vmem:[#allocation3 + $0x69] sm:$0xf] %v2860_v5  ;;  %v3237_v56 = vld [vmem:[#allocation3 + $0x38] sm:$0x3f] }
 0x439   : > { %v3047_v45 = vmul.f32 %v8772_v33, %v7944_v39  ;;  %v2863_v24 = vsel %vm6978_vm2, %v2861_v55, %v2862_v4  ;;  %v2864_v0 = vrot.slane %v2862_v4, 4  ;;  %v2865_v51 = vrot.slane %v2844_v18, 5  ;;  %v6178_v30 = vpop.eup %6177  ;;  %v7971_v18 = vld [vmem:[#allocation3 + $0x40] sm:$0x3f] }
 0x43a   : > { %v2928_v9 = vadd.f32 %v2920_v52, %v7555_v15  ;;  %v2956_v2 = vrot.slane %v2940_v11, 1  ;;  %2884 = vst [vmem:[#allocation3 + $0x71] sm:$0xf] %v2863_v24  ;;  %v7968_v5 = vmul.f32 %v7644_v31, %v7960_v38  ;;  %v3035_v55 = vadd.f32 %v3027_v41, %v7774_v53  ;;  %v8007_v12 = vld [vmem:[#allocation3 + $0x40] sm:$0x3f] }
 0x43b   : > { %v3063_v4 = vrot.slane %v3047_v45, 1  ;;  %v7973_v37 = vld [vmem:[#allocation3 + $0x48] sm:$0x3f]  ;;  %v2866_v52 = vsel %vm6978_vm2, %v2864_v0, %v2865_v51  ;;  %v7979_v11 = vmul.f32 %v7827_v3, %v7960_v38  ;;  %v3000_v48 = vrot.slane %v2984_v1, 2 }
 0x43c   : > { %8775 = vst [vmem:[#allocation38_spill] sm:$0xff] %v7968_v5  ;;  %8776 = vst [vmem:[#allocation39_spill] sm:$0xff] %v7973_v37  ;;  %v2972_v54 = vadd.f32 %v2956_v2, %v2928_v9  ;;  %v2922_v44 = vmul.f32 %v8769_v61, %v7973_v37  ;;  %v2942_v41 = vmul.f32 %v8770_v10, %v7973_v37  ;;  %v2867_v53 = vrot.slane %v2865_v51, 4 }
 0x43d   : > { %8777 = vst [vmem:[#allocation71_spill] sm:$0xff] %v7979_v11  ;;  %2885 = vst [vmem:[#allocation3 + $0x79] sm:$0xf] %v2866_v52  ;;  %v2811_v45 = vmul.f32 %v6178_v30, %v7743_v49  ;;  %v3253_v24 = vmul.f32 %v7727_v32, %v3237_v56  ;;  %v3273_v0 = vmul.f32 %v7731_v27, %v3237_v56  ;;  %v7995_v2 = vld [vmem:[#allocation3 + $0x50] sm:$0x3f] }
 0x43e   : > { %v7993_v9 = vmul.f32 %v8769_v61, %v7971_v18  ;;  %8780 = vst [vmem:[#allocation72_spill] sm:$0xff] %v7995_v2  ;;  %v7999_v1 = vmul.f32 %v7551_v14, %v7973_v37  ;;  %v8002_v49 = vadd.f32 %v3000_v48, %v2972_v54  ;;  %v8004_v30 = vadd.f32 %v3063_v4, %v3035_v55 }
 0x43f   : > { %v2930_v52 = vadd.f32 %v2922_v44, %v7555_v15  ;;  %v2868_v35 = vrot.slane %v2811_v45, 5  ;;  %v2958_v11 = vrot.slane %v2942_v41, 1  ;;  %v3261_v61 = vadd.f32 %v3253_v24, %v7807_v42  ;;  %v8027_v45 = vld [vmem:[#allocation3 + $0x48] sm:$0x3f] }
 0x440   : > { %8779 = vst [vmem:[#allocation35_spill] sm:$0xff] %v7993_v9  ;;  %8781 = vst [vmem:[#allocation73_spill] sm:$0xff] %v7999_v1  ;;  %v3289_v38 = vrot.slane %v3273_v0, 1  ;;  %v3317_v10 = vmul.f32 %v7739_v62, %v3237_v56  ;;  %v8013_v14 = vmul.f32 %v8772_v33, %v7995_v2  ;;  %v8017_v54 = vmul.f32 %v7614_v6, %v7995_v2 }
 0x441   : > { %8782 = vst [vmem:[#allocation74_spill] sm:$0xff] %v8002_v49  ;;  %8783 = vst [vmem:[#allocation75_spill] sm:$0xff] %v8004_v30  ;;  %v2869_v55 = vsel %vm6978_vm2, %v2867_v53, %v2868_v35  ;;  %v3360_v4 = vmul.f32 %v7778_v63, %v3237_v56  ;;  %v8025_v42 = vmul.f32 %v8771_v46, %v7995_v2  ;;  %v3240_v49 = vld [vmem:[#allocation3 + $0x50] sm:$0x3f] }
 0x442   : > { %8784 = vst [vmem:[#allocation76_spill] sm:$0xff] %v8013_v14  ;;  %8785 = vst [vmem:[#allocation77_spill] sm:$0xff] %v8017_v54  ;;  %v3305_v44 = vadd.f32 %v3289_v38, %v3261_v61  ;;  %v3333_v41 = vrot.slane %v3317_v10, 2  ;;  %v3380_v0 = vmul.f32 %v7782_v57, %v3237_v56  ;;  %v3381_v43 = vmul.f32 %v7782_v57, %v8007_v12 }
 0x443   : > { %8786 = vst [vmem:[#allocation78_spill] sm:$0xff] %v8025_v42  ;;  %2886 = vst [vmem:[#allocation3 + $0x81] sm:$0xf] %v2869_v55  ;;  %v3368_v24 = vadd.f32 %v3360_v4, %v7809_v50  ;;  %v3424_v53 = vmul.f32 %v7786_v29, %v3237_v56  ;;  %v8034_v35 = vadd.f32 %v2958_v11, %v2930_v52  ;;  %v3574_v4 = vld [vmem:[#allocation3 + $0x68] sm:$0x3f] }
 0x444   : > { %v3349_v51 = vadd.f32 %v3333_v41, %v3305_v44  ;;  %v3361_v48 = vmul.f32 %v7778_v63, %v8007_v12  ;;  %v3425_v38 = vmul.f32 %v7786_v29, %v8007_v12  ;;  %v3396_v61 = vrot.slane %v3380_v0, 1  ;;  %v8062_v30 = vld [vmem:[#allocation3 + $0x78] sm:$0x3f] }
 0x445   : > { %8787 = vst [vmem:[#allocation79_spill] sm:$0xff] %v8034_v35  ;;  %v3468_v55 = vmul.f32 %v7790_v19, %v8007_v12  ;;  %v3397_v56 = vrot.slane %v3381_v43, 1  ;;  %v3488_v11 = vmul.f32 %v7794_v28, %v8007_v12  ;;  %v3489_v52 = vmul.f32 %v7794_v28, %v8027_v45 }
 0x446   : > { %v3369_v5 = vadd.f32 %v3361_v48, %v3349_v51  ;;  %v3412_v44 = vadd.f32 %v3396_v61, %v3368_v24  ;;  %v3440_v41 = vrot.slane %v3424_v53, 2  ;;  %v3532_v10 = vmul.f32 %v7633_v40, %v8007_v12  ;;  %v8054_v48 = vld [vmem:[#allocation3 + $0x70] sm:$0x3f] }
 0x447   : > { %v3533_v0 = vmul.f32 %v7633_v40, %v8027_v45  ;;  %v3441_v2 = vrot.slane %v3425_v38, 2  ;;  %v3469_v51 = vmul.f32 %v7790_v19, %v8027_v45  ;;  %v3610_v43 = vmul.f32 %v7764_v36, %v3574_v4 }
 0x448   : > { %v3413_v50 = vadd.f32 %v3397_v56, %v3369_v5  ;;  %v3456_v54 = vadd.f32 %v3440_v41, %v3412_v44  ;;  %v3504_v14 = vrot.slane %v3488_v11, 1  ;;  %v3590_v24 = vmul.f32 %v7625_v23, %v3574_v4 }
 0x449   : > { %v3654_v53 = vmul.f32 %v7768_v58, %v3574_v4  ;;  %v3505_v9 = vrot.slane %v3489_v52, 1  ;;  %v3548_v15 = vrot.slane %v3532_v10, 2  ;;  %v3549_v42 = vrot.slane %v3533_v0, 2 }
 0x44a   : > { %v3457_v61 = vadd.f32 %v3441_v2, %v3413_v50  ;;  %v3476_v1 = vadd.f32 %v3468_v55, %v3456_v54  ;;  %v3626_v5 = vrot.slane %v3610_v43, 1  ;;  %v3717_v38 = vmul.f32 %v7798_v17, %v3574_v4 }
 0x44b   : > { %v3718_v56 = vmul.f32 %v7798_v17, %v8054_v48  ;;  %v3697_v11 = vmul.f32 %v7772_v22, %v3574_v4  ;;  %v3698_v44 = vmul.f32 %v7772_v22, %v8054_v48  ;;  %v3761_v2 = vmul.f32 %v7816_v47, %v3574_v4 }
 0x44c   : > { %v3477_v35 = vadd.f32 %v3469_v51, %v3457_v61  ;;  %v3520_v50 = vadd.f32 %v3504_v14, %v3476_v1  ;;  %v3670_v10 = vrot.slane %v3654_v53, 2  ;;  %v3762_v54 = vmul.f32 %v7816_v47, %v8054_v48 }
 0x44d   : > { %v3805_v55 = vmul.f32 %v7827_v3, %v8054_v48  ;;  %v3733_v41 = vrot.slane %v3717_v38, 1  ;;  %v3734_v0 = vrot.slane %v3718_v56, 1  ;;  %v8074_v51 = vmul.f32 %v7644_v31, %v8054_v48 }
 0x44e   : > { %v3521_v52 = vadd.f32 %v3505_v9, %v3477_v35  ;;  %v3564_v43 = vadd.f32 %v3548_v15, %v3520_v50  ;;  %v3777_v61 = vrot.slane %v3761_v2, 2  ;;  %v3806_v4 = vmul.f32 %v7827_v3, %v8062_v30 }
 0x44f   : > { %v8080_v14 = vmul.f32 %v7644_v31, %v8062_v30  ;;  %v8084_v53 = vmul.f32 %v7629_v25, %v8054_v48  ;;  %v3254_v9 = vmul.f32 %v7727_v32, %v8007_v12  ;;  %v3255_v35 = vmul.f32 %v7727_v32, %v8027_v45 }
 0x450   : > { %v3565_v1 = vadd.f32 %v3549_v42, %v3521_v52  ;;  %v3597_v15 = vadd.f32 %v7836_v7, %v3564_v43  ;;  %v3778_v38 = vrot.slane %v3762_v54, 2  ;;  %v3841_v56 = vrot.slane %v8074_v51, 1 }
 0x451   : > { %v8094_v2 = vmul.f32 %v7629_v25, %v8062_v30  ;;  %v3262_v50 = vadd.f32 %v3254_v9, %v7818_v16  ;;  %v3263_v52 = vadd.f32 %v3255_v35, %v7820_v59  ;;  %v3274_v37 = vmul.f32 %v7731_v27, %v8007_v12 }
 0x452   : > { %v3598_v42 = vadd.f32 %v3590_v24, %v3565_v1  ;;  %v3641_v32 = vadd.f32 %v8788_v20, %v3597_v15  ;;  %v3275_v7 = vmul.f32 %v7731_v27, %v8027_v45  ;;  %v3318_v54 = vmul.f32 %v7739_v62, %v8007_v12 }
 0x453   : > { %v3319_v24 = vmul.f32 %v7739_v62, %v8027_v45  ;;  %v3842_v16 = vrot.slane %v8080_v14, 1  ;;  %v3885_v59 = vrot.slane %v8084_v53, 2  ;;  %v3290_v43 = vrot.slane %v3274_v37, 1 }
 0x454   : > { %v3642_v51 = vadd.f32 %v3626_v5, %v3598_v42  ;;  %v8789_v1 = vrot.slane %v7805_v13, 2  ;;  %v3291_v20 = vrot.slane %v3275_v7, 1  ;;  %v3334_v9 = vrot.slane %v3318_v54, 2 }
 0x455   : > { %v3335_v35 = vrot.slane %v3319_v24, 2  ;;  %v3306_v27 = vadd.f32 %v3290_v43, %v3262_v50  ;;  %v3382_v12 = vmul.f32 %v7782_v57, %v8027_v45  ;;  %v3383_v25 = vmul.f32 %v7782_v57, %v3240_v49 }
 0x456   : > { %v3685_v8 = vadd.f32 %v8789_v1, %v3641_v32  ;;  %v3686_v15 = vadd.f32 %v3670_v10, %v3642_v51  ;;  %v3307_v5 = vadd.f32 %v3291_v20, %v3263_v52  ;;  %v3426_v14 = vmul.f32 %v7786_v29, %v8027_v45 }
 0x457   : > { %v3427_v37 = vmul.f32 %v7786_v29, %v3240_v49  ;;  %v3886_v32 = vrot.slane %v8094_v2, 2  ;;  %v3350_v13 = vadd.f32 %v3334_v9, %v3306_v27  ;;  %v3362_v10 = vmul.f32 %v7778_v63, %v8027_v45 }
 0x458   : > { %v3705_v62 = vadd.f32 %v3697_v11, %v3685_v8  ;;  %v3706_v53 = vadd.f32 %v3698_v44, %v3686_v15  ;;  %v3351_v50 = vadd.f32 %v3335_v35, %v3307_v5  ;;  %v3363_v7 = vmul.f32 %v7778_v63, %v3240_v49 }
 0x459   : > { %v3398_v54 = vrot.slane %v3382_v12, 1  ;;  %v3370_v11 = vadd.f32 %v3362_v10, %v3350_v13  ;;  %v3399_v52 = vrot.slane %v3383_v25, 1  ;;  %v3442_v51 = vrot.slane %v3426_v14, 2 }
 0x45a   : > { %v3749_v42 = vadd.f32 %v3733_v41, %v3705_v62  ;;  %v3750_v24 = vadd.f32 %v3734_v0, %v3706_v53  ;;  %v3371_v1 = vadd.f32 %v3363_v7, %v3351_v50  ;;  %v3443_v8 = vrot.slane %v3427_v37, 2  ;;  %v3577_v53 = vld [vmem:[#allocation3 + $0x80] sm:$0x3f] }
 0x45b   : > { %v3490_v44 = vmul.f32 %v7794_v28, %v3240_v49  ;;  %v3414_v2 = vadd.f32 %v3398_v54, %v3370_v11  ;;  %v3470_v27 = vmul.f32 %v7790_v19, %v3240_v49  ;;  %v3534_v45 = vmul.f32 %v7633_v40, %v3240_v49 }
 0x45c   : > { %v3793_v43 = vadd.f32 %v3777_v61, %v3749_v42  ;;  %v3794_v20 = vadd.f32 %v3778_v38, %v3750_v24  ;;  %v3415_v41 = vadd.f32 %v3399_v52, %v3371_v1  ;;  %v3591_v9 = vmul.f32 %v7625_v23, %v8054_v48 }
 0x45d   : > { %v3611_v25 = vmul.f32 %v7764_v36, %v8054_v48  ;;  %v3458_v61 = vadd.f32 %v3442_v51, %v3414_v2  ;;  %v3612_v35 = vmul.f32 %v7764_v36, %v8062_v30  ;;  %v3655_v38 = vmul.f32 %v7768_v58, %v8054_v48 }
 0x45e   : > { %v3813_v62 = vadd.f32 %v3805_v55, %v3793_v43  ;;  %v3814_v0 = vadd.f32 %v3806_v4, %v3794_v20  ;;  %v3459_v12 = vadd.f32 %v3443_v8, %v3415_v41  ;;  %v3506_v5 = vrot.slane %v3490_v44, 1 }
 0x45f   : > { %v3656_v49 = vmul.f32 %v7768_v58, %v8062_v30  ;;  %v3478_v14 = vadd.f32 %v3470_v27, %v3458_v61  ;;  %v3550_v37 = vrot.slane %v3534_v45, 2  ;;  %v3592_v4 = vmul.f32 %v7625_v23, %v8062_v30 }
 0x460   : > { %v3857_v15 = vadd.f32 %v3841_v56, %v3813_v62  ;;  %v3858_v55 = vadd.f32 %v3842_v16, %v3814_v0  ;;  %v3479_v13 = vadd.f32 %v7844_v34, %v3459_v12  ;;  %v3627_v10 = vrot.slane %v3611_v25, 1  ;;  %v8792_v12 = vld [vmem:[#allocation74_spill] sm:$0xff] }
 0x461   : > { %v3628_v42 = vrot.slane %v3612_v35, 1  ;;  %v3671_v50 = vrot.slane %v3655_v38, 2  ;;  %v3522_v56 = vadd.f32 %v3506_v5, %v3478_v14  ;;  %v3719_v54 = vmul.f32 %v7798_v17, %v8062_v30 }
 0x462   : > { %v3901_v7 = vadd.f32 %v3885_v59, %v3857_v15  ;;  %v3902_v48 = vadd.f32 %v3886_v32, %v3858_v55  ;;  %v8790_v24 = vrot.slane %v7812_v60, 1  ;;  %v3672_v11 = vrot.slane %v3656_v49, 2 }
 0x463   : > { %v3720_v52 = vmul.f32 %v7798_v17, %v3577_v53  ;;  %v3763_v51 = vmul.f32 %v7816_v47, %v8062_v30  ;;  %v3566_v34 = vadd.f32 %v3550_v37, %v3522_v56  ;;  %v3699_v1 = vmul.f32 %v7772_v22, %v8062_v30  ;;  %v8793_v37 = vld [vmem:[#allocation41_spill] sm:$0xff] }
 0x464   : > { %v3523_v16 = vadd.f32 %v8790_v24, %v3479_v13  ;;  %v3922_v43 = vcombine.low %v3901_v7, %v3902_v48  ;;  %v3764_v59 = vmul.f32 %v7816_v47, %v3577_v53  ;;  %v8791_v32 = vrot.slane %v7823_v21, 2  ;;  %v8794_v7 = vld [vmem:[#allocation39_spill] sm:$0xff] }
 0x465   : > { %v3700_v44 = vmul.f32 %v7772_v22, %v3577_v53  ;;  %v3735_v60 = vrot.slane %v3719_v54, 1  ;;  %v3807_v20 = vmul.f32 %v7827_v3, %v3577_v53  ;;  %v3599_v27 = vadd.f32 %v3591_v9, %v3566_v34 }
 0x466   : > { %v3567_v8 = vadd.f32 %v8791_v32, %v3523_v16  ;;  %v8152_v2 = vrot.slane %v3922_v43, 7  ;;  %v3736_v45 = vrot.slane %v3720_v52, 1  ;;  %v3779_v62 = vrot.slane %v3763_v51, 2  ;;  %v8796_v16 = vld [vmem:[#allocation42_spill] sm:$0xff]  ;;  %v8797_v43 = vld [vmem:[#allocation43_spill] sm:$0xff] }
 0x467   : > { %v3028_v25 = vmul.f32 %v8771_v46, %v7971_v18  ;;  %v3048_v30 = vmul.f32 %v8772_v33, %v7971_v18  ;;  %v3091_v21 = vmul.f32 %v7614_v6, %v7944_v39  ;;  %v3643_v61 = vadd.f32 %v3627_v10, %v3599_v27  ;;  %v3243_v27 = vld [vmem:[#allocation3 + $0x68] sm:$0x3f] }
 0x468   : > { %v3600_v41 = vadd.f32 %v3592_v4, %v3567_v8  ;;  %v8163_v0 = vsel %vm1942_vm7, %v7989_v26, %v8152_v2  ;;  %v3780_v35 = vrot.slane %v3764_v59, 2  ;;  %v3827_v9 = vmul.f32 %v7644_v31, %v3577_v53 }
 0x469   : > { %v5376_v38 = vmul.f32 -1.702, %v8163_v0  ;;  %v3036_v5 = vadd.f32 %v3028_v25, %v8792_v12  ;;  %v3064_v49 = vrot.slane %v3048_v30, 1  ;;  %v3687_v55 = vadd.f32 %v3671_v50, %v3643_v61  ;;  %v8799_v12 = vld [vmem:[#allocation79_spill] sm:$0xff] }
 0x46a   : > { %v3644_v15 = vadd.f32 %v3628_v42, %v3600_v41  ;;  %v3092_v14 = vmul.f32 %v7614_v6, %v7971_v18  ;;  %v3107_v39 = vrot.slane %v3091_v21, 2  ;;  %v3135_v4 = vmul.f32 %v8793_v37, %v7971_v18  ;;  %v8795_v42 = vld [vmem:[#allocation75_spill] sm:$0xff]  ;;  %v8798_v41 = vld [vmem:[#allocation40_spill] sm:$0xff] }
 0x46b   : > { %v3949_v26 = vmul.f32 1.442695, %v5376_v38  ;;  %v3080_v10 = vadd.f32 %v3064_v49, %v3036_v5  ;;  %v3136_v48 = vmul.f32 %v8793_v37, %v8794_v7  ;;  %v3707_v56 = vadd.f32 %v3699_v1, %v3687_v55  ;;  %v8800_v5 = vld [vmem:[#allocation73_spill] sm:$0xff] }
 0x46c   : > { %v3688_v13 = vadd.f32 %v3672_v11, %v3644_v15  ;;  %v3108_v54 = vrot.slane %v3092_v14, 2  ;;  %v3123_v24 = vadd.f32 %v3107_v39, %v8795_v42  ;;  %v3155_v50 = vmul.f32 %v8796_v16, %v7971_v18 }
 0x46d   : > { %6179 = vpow2.f32 %v3949_v26  ;;  %v3156_v51 = vmul.f32 %v8796_v16, %v8794_v7  ;;  %v3199_v34 = vmul.f32 %v8797_v43, %v7971_v18  ;;  %v3751_v11 = vadd.f32 %v3735_v60, %v3707_v56  ;;  %v8803_v56 = vld [vmem:[#allocation54_spill] sm:$0xff] }
 0x46e   : > { %v3708_v52 = vadd.f32 %v3700_v44, %v3688_v13  ;;  %v3124_v59 = vadd.f32 %v3108_v54, %v3080_v10  ;;  %v3143_v32 = vadd.f32 %v3135_v4, %v3123_v24  ;;  %v3171_v8 = vrot.slane %v3155_v50, 1  ;;  %v8187_v4 = vld [vmem:[#allocation3 + $0x70] sm:$0x3f]  ;;  %v8805_v24 = vld [vmem:[#allocation46_spill] sm:$0xff] }
 0x46f   : > { %v3871_v25 = vmul.f32 %v8798_v41, %v3577_v53  ;;  %v3172_v30 = vrot.slane %v3156_v51, 1  ;;  %v3200_v21 = vmul.f32 %v8797_v43, %v8794_v7  ;;  %v3795_v61 = vadd.f32 %v3779_v62, %v3751_v11  ;;  %v8802_v13 = vld [vmem:[#allocation45_spill] sm:$0xff] }
 0x470   : > { %v3752_v1 = vadd.f32 %v3736_v45, %v3708_v52  ;;  %v3144_v44 = vadd.f32 %v3136_v48, %v3124_v59  ;;  %v3187_v38 = vadd.f32 %v3171_v8, %v3143_v32  ;;  %v3215_v15 = vrot.slane %v3199_v34, 2  ;;  %v8804_v48 = vld [vmem:[#allocation44_spill] sm:$0xff]  ;;  %v8806_v34 = vld [vmem:[#allocation51_spill] sm:$0xff]  ;;  %v8807_v11 = vld [vmem:[#allocation49_spill] sm:$0xff] }
 0x471   : > { %v8801_v49 = vrot.slane %v8800_v5, 2  ;;  %v3843_v14 = vrot.slane %v3827_v9, 1  ;;  %v3216_v39 = vrot.slane %v3200_v21, 2  ;;  %v3815_v45 = vadd.f32 %v3807_v20, %v3795_v61 }
 0x472   : > { %v3796_v60 = vadd.f32 %v3780_v35, %v3752_v1  ;;  %v3188_v26 = vadd.f32 %v3172_v30, %v3144_v44  ;;  %v3231_v53 = vadd.f32 %v3215_v15, %v3187_v38  ;;  %v3277_v10 = vmul.f32 %v8802_v13, %v3243_v27  ;;  %v8810_v44 = vld [vmem:[#allocation47_spill] sm:$0xff] }
 0x473   : > { %v3018_v55 = vadd.f32 %v8801_v49, %v8799_v12  ;;  %v3887_v62 = vrot.slane %v3871_v25, 2  ;;  %v3257_v42 = vmul.f32 %v8804_v48, %v3243_v27  ;;  %v3321_v50 = vmul.f32 %v8805_v24, %v3243_v27  ;;  %v8809_v25 = vld [vmem:[#allocation78_spill] sm:$0xff] }
 0x474   : > { %v3816_v54 = vadd.f32 %v8803_v56, %v3796_v60  ;;  %v3859_v52 = vadd.f32 %v3843_v14, %v3815_v45  ;;  %v3232_v51 = vadd.f32 %v3216_v39, %v3188_v26  ;;  %v3264_v35 = vadd.f32 %v8806_v34, %v3231_v53  ;;  %v8205_v12 = vld [vmem:[#allocation3 + $0x78] sm:$0x3f]  ;;  %v8814_v53 = vld [vmem:[#allocation48_spill] sm:$0xff] }
 0x475   : > { %v3384_v9 = vmul.f32 %v7782_v57, %v3243_v27  ;;  %v8808_v59 = vrot.slane %v8807_v11, 1  ;;  %v3385_v32 = vmul.f32 %v7782_v57, %v8187_v4  ;;  %v3428_v8 = vmul.f32 %v7786_v29, %v3243_v27  ;;  %v8812_v49 = vld [vmem:[#allocation50_spill] sm:$0xff] }
 0x476   : > { %v3429_v1 = vmul.f32 %v7786_v29, %v8187_v4  ;;  %v3038_v30 = vadd.f32 %v8809_v25, %v3018_v55  ;;  %v3265_v21 = vadd.f32 %v3257_v42, %v3232_v51  ;;  %v3293_v61 = vrot.slane %v3277_v10, 1 }
 0x477   : > { %v3860_v20 = vadd.f32 %v8808_v59, %v3816_v54  ;;  %v8811_v38 = vrot.slane %v8810_v44, 1  ;;  %v3903_v5 = vadd.f32 %v3887_v62, %v3859_v52  ;;  %v8813_v60 = vrot.slane %v8812_v49, 2  ;;  %v8819_v49 = vld [vmem:[#allocation36_spill] sm:$0xff] }
 0x478   : > { %v3337_v39 = vrot.slane %v3321_v50, 2  ;;  %v3364_v45 = vmul.f32 %v7778_v63, %v3243_v27  ;;  %v3309_v26 = vadd.f32 %v3293_v61, %v3265_v21  ;;  %v8815_v56 = vrot.slane %v8814_v53, 2  ;;  %v8816_v21 = vld [vmem:[#allocation37_spill] sm:$0xff]  ;;  %v8817_v61 = vld [vmem:[#allocation35_spill] sm:$0xff] }
 0x479   : > { %v3308_v15 = vadd.f32 %v8811_v38, %v3264_v35  ;;  %v3904_v14 = vadd.f32 %v8813_v60, %v3860_v20  ;;  %v3365_v55 = vmul.f32 %v7778_v63, %v8187_v4  ;;  %v3400_v10 = vrot.slane %v3384_v9, 1 }
 0x47a   : > { %v3401_v51 = vrot.slane %v3385_v32, 1  ;;  %v3444_v34 = vrot.slane %v3428_v8, 2  ;;  %v3445_v35 = vrot.slane %v3429_v1, 2  ;;  %v6180_v11 = vpop.eup %6179  ;;  %v3353_v62 = vadd.f32 %v3337_v39, %v3309_v26 }
 0x47b   : > { %v3352_v54 = vadd.f32 %v8815_v56, %v3308_v15  ;;  %v3923_v42 = vcombine.low %v3903_v5, %v3904_v14  ;;  %v3472_v50 = vmul.f32 %v7790_v19, %v8187_v4  ;;  %v3473_v27 = vmul.f32 %v7790_v19, %v8205_v12  ;;  %v8818_v15 = vld [vmem:[#allocation33_spill] sm:$0xff] }
 0x47c   : > { %v3959_v59 = vadd.f32 1.0, %v6180_v11  ;;  %v3492_v25 = vmul.f32 %v7794_v28, %v8187_v4  ;;  %v3493_v9 = vmul.f32 %v7794_v28, %v8205_v12  ;;  %v3373_v32 = vadd.f32 %v3365_v55, %v3353_v62  ;;  %v8820_v55 = vld [vmem:[#allocation76_spill] sm:$0xff] }
 0x47d   : > { %v3372_v52 = vadd.f32 %v3364_v45, %v3352_v54  ;;  %v8218_v20 = vrot.slane %v3923_v42, 7  ;;  %v3536_v1 = vmul.f32 %v7633_v40, %v8187_v4  ;;  %v2929_v44 = vadd.f32 %v8817_v61, %v8816_v21  ;;  %v8824_v61 = vld [vmem:[#allocation34_spill] sm:$0xff] }
 0x47e   : > { %6181 = vrcp.f32 %v3959_v59  ;;  %v2941_v5 = vmul.f32 %v8818_v15, %v7971_v18  ;;  %v2985_v60 = vmul.f32 %v8819_v49, %v7971_v18  ;;  %v3417_v39 = vadd.f32 %v3401_v51, %v3373_v32 }
 0x47f   : > { %v3416_v8 = vadd.f32 %v3400_v10, %v3372_v52  ;;  %v8231_v38 = vsel %vm1942_vm7, %v8152_v2, %v8218_v20  ;;  %v3537_v26 = vmul.f32 %v7633_v40, %v8205_v12  ;;  %v3508_v53 = vrot.slane %v3492_v25, 1  ;;  %v8248_v25 = vld [vmem:[#allocation3 + $0x88] sm:$0x3f] }
 0x480   : > { %v5377_v14 = vmul.f32 -1.702, %v8231_v38  ;;  %v3509_v56 = vrot.slane %v3493_v9, 1  ;;  %v2957_v54 = vrot.slane %v2941_v5, 1  ;;  %v8821_v10 = vrot.slane %v8820_v55, 1  ;;  %v8828_v55 = vld [vmem:[#allocation57_spill] sm:$0xff] }
 0x481   : > { %v3460_v45 = vadd.f32 %v3444_v34, %v3416_v8  ;;  %v3461_v11 = vadd.f32 %v3445_v35, %v3417_v39  ;;  %v3001_v52 = vrot.slane %v2985_v60, 2  ;;  %v3049_v18 = vmul.f32 %v8772_v33, %v8794_v7  ;;  %v8822_v34 = vld [vmem:[#allocation77_spill] sm:$0xff] }
 0x482   : > { %v3082_v2 = vadd.f32 %v8821_v10, %v3038_v30  ;;  %v3951_v42 = vmul.f32 1.442695, %v5377_v14  ;;  %v2973_v59 = vadd.f32 %v2957_v54, %v2929_v44  ;;  %v3093_v51 = vmul.f32 %v7614_v6, %v8794_v7  ;;  %v8825_v44 = vld [vmem:[#allocation58_spill] sm:$0xff]  ;;  %v8826_v39 = vld [vmem:[#allocation53_spill] sm:$0xff] }
 0x483   : > { %v3480_v62 = vadd.f32 %v3472_v50, %v3460_v45  ;;  %v8823_v32 = vrot.slane %v8822_v34, 2  ;;  %v3481_v9 = vadd.f32 %v3473_v27, %v3461_v11  ;;  %v3552_v30 = vrot.slane %v3536_v1, 2 }
 0x484   : > { %6183 = vpow2.f32 %v3951_v42  ;;  %v8252_v35 = vmul.f32 %v8798_v41, %v8824_v61  ;;  %v3017_v50 = vadd.f32 %v3001_v52, %v2973_v59  ;;  %v3029_v33 = vmul.f32 %v8771_v46, %v8794_v7  ;;  %v8832_v59 = vld [vmem:[#allocation61_spill] sm:$0xff] }
 0x485   : > { %v3126_v8 = vadd.f32 %v8823_v32, %v3082_v2  ;;  %v3524_v21 = vadd.f32 %v3508_v53, %v3480_v62  ;;  %v3525_v6 = vadd.f32 %v3509_v56, %v3481_v9  ;;  %v3553_v5 = vrot.slane %v3537_v26, 2  ;;  %v8829_v2 = vld [vmem:[#allocation72_spill] sm:$0xff] }
 0x486   : > { %v8259_v60 = vmul.f32 %v7790_v19, %v8248_v25  ;;  %v3037_v27 = vadd.f32 %v3029_v33, %v3017_v50  ;;  %v3065_v14 = vrot.slane %v3049_v18, 1  ;;  %v3109_v1 = vrot.slane %v3093_v51, 2  ;;  %v8830_v56 = vld [vmem:[#allocation56_spill] sm:$0xff] }
 0x487   : > { %v3146_v15 = vadd.f32 %v8825_v44, %v3126_v8  ;;  %v3568_v49 = vadd.f32 %v3552_v30, %v3524_v21  ;;  %v8827_v45 = vrot.slane %v8826_v39, 1  ;;  %v3569_v54 = vadd.f32 %v3553_v5, %v3525_v6  ;;  %v8833_v51 = vld [vmem:[#allocation52_spill] sm:$0xff]  ;;  %v8285_v30 = vld [vmem:[#allocation3 + $0x80] sm:$0x3f] }
 0x488   : > { %v3157_v46 = vmul.f32 %v8796_v16, %v8829_v2  ;;  %v3279_v7 = vmul.f32 %v8802_v13, %v8205_v12  ;;  %v3081_v26 = vadd.f32 %v3065_v14, %v3037_v27  ;;  %v8831_v42 = vrot.slane %v8830_v56, 2 }
 0x489   : > { %v3190_v53 = vadd.f32 %v8827_v45, %v3146_v15  ;;  %v3601_v10 = vadd.f32 %v8828_v55, %v3568_v49  ;;  %v3259_v62 = vmul.f32 %v8804_v48, %v8205_v12  ;;  %v3323_v52 = vmul.f32 %v8805_v24, %v8205_v12  ;;  %v8835_v15 = vld [vmem:[#allocation59_spill] sm:$0xff]  ;;  %v4443_v45 = vld [vmem:[#allocation12 + $0x78] sm:$0xff] }
 0x48a   : > { %v3602_v18 = vadd.f32 %v8832_v59, %v3569_v54  ;;  %v8834_v34 = vrot.slane %v8833_v51, 1  ;;  %v3137_v16 = vmul.f32 %v8793_v37, %v8829_v2  ;;  %v8281_v8 = vmul.f32 %v7794_v28, %v8248_v25  ;;  %v8837_v49 = vld [vmem:[#allocation55_spill] sm:$0xff] }
 0x48b   : > { %v3234_v11 = vadd.f32 %v8831_v42, %v3190_v53  ;;  %v3125_v9 = vadd.f32 %v3109_v1, %v3081_v26  ;;  %v3201_v21 = vmul.f32 %v8797_v43, %v8829_v2  ;;  %v3295_v33 = vrot.slane %v3279_v7, 1  ;;  %v6182_v44 = vpop.eup %6181  ;;  %v4073_v43 = vld [vmem:[#allocation10 + $0x2f0] sm:$0xff]  ;;  %v8839_v7 = vld [vmem:[#allocation63_spill] sm:$0xff]  ;;  %v8841_v42 = vld [vmem:[#allocation62_spill] sm:$0xff] }
 0x48c   : > { %v3645_v32 = vadd.f32 %v8834_v34, %v3601_v10  ;;  %v8836_v6 = vrot.slane %v8835_v15, 1  ;;  %v8838_v27 = vrot.slane %v8837_v49, 2  ;;  %v3173_v37 = vrot.slane %v3157_v46, 1  ;;  %v4068_v10 = vld [vmem:[#allocation10 + $0x2c8] sm:$0xff]  ;;  %v4458_v2 = vld [vmem:[#allocation12 + $0xf0] sm:$0xff] }
 0x48d   : > { %v3267_v50 = vadd.f32 %v3259_v62, %v3234_v11  ;;  %v8293_v39 = vmul.f32 %v8802_v13, %v8187_v4  ;;  %v8296_v1 = vmul.f32 %v6182_v44, %v8163_v0  ;;  %v3145_v53 = vadd.f32 %v3137_v16, %v3125_v9  ;;  %v4067_v0 = vld [vmem:[#allocation10 + $0x2c0] sm:$0xff]  ;;  %v4442_v62 = vld [vmem:[#allocation12 + $0x70] sm:$0xff]  ;;  %v8843_v16 = vld [vmem:[#allocation60_spill] sm:$0xff] }
 0x48e   : > { %v3646_v5 = vadd.f32 %v8836_v6, %v3602_v18  ;;  %v3689_v14 = vadd.f32 %v8838_v27, %v3645_v32  ;;  %v3339_v55 = vrot.slane %v3323_v52, 2  ;;  %v8840_v26 = vrot.slane %v8839_v7, 2  ;;  %v8842_v34 = vld [vmem:[#allocation69_spill] sm:$0xff]  ;;  %v4457_v6 = vld [vmem:[#allocation12 + $0xe8] sm:$0xff] }
 0x48f   : > { %v3311_v54 = vadd.f32 %v3295_v33, %v3267_v50  ;;  %v3367_v46 = vmul.f32 %v7778_v63, %v8285_v30  ;;  %v3387_v13 = vmul.f32 %v7782_v57, %v8285_v30  ;;  %4172 = vmatmul.mubr.f32.vlgmr.msra.gmra.mxu1 %v8296_v1  ;;  %4267 = vmatmul.mubr.f32.vlgmr.msra.gmra.mxu0 %v8296_v1  ;;  %v3217_v59 = vrot.slane %v3201_v21, 2  ;;  %v4062_v21 = vld [vmem:[#allocation10 + $0x298] sm:$0xff] }
 0x490   : > { %v3690_v56 = vadd.f32 %v8840_v26, %v3646_v5  ;;  %v3709_v11 = vadd.f32 %v8841_v42, %v3689_v14  ;;  %v3189_v52 = vadd.f32 %v3173_v37, %v3145_v53  ;;  %v3431_v51 = vmul.f32 %v7786_v29, %v8285_v30  ;;  %4298 = vmatpush1.msra.mxu1 %v4073_v43  ;;  %v4061_v43 = vld [vmem:[#allocation10 + $0x290] sm:$0xff] }
 0x491   : > { %v3355_v18 = vadd.f32 %v3339_v55, %v3311_v54  ;;  %5839 = vmatpush3.msra.mxu0 %v4443_v45  ;;  %v8844_v9 = vrot.slane %v8843_v16, 1  ;;  %v3258_v33 = vmul.f32 %v8804_v48, %v8187_v4  ;;  %v3511_v44 = vrot.slane %v8281_v8, 1  ;;  %v6184_v15 = vpop.eup %6183  ;;  %4299 = vmatprep.subr.mxu1 %v4068_v10  ;;  %v4441_v45 = vld [vmem:[#allocation12 + $0x68] sm:$0xff]  ;;  %v8845_v53 = vld [vmem:[#allocation65_spill] sm:$0xff]  ;;  %v4452_v8 = vld [vmem:[#allocation12 + $0xc0] sm:$0xff] }
 0x492   : > { %v3710_v32 = vadd.f32 %v8842_v34, %v3690_v56  ;;  %5840 = vmatprep.subr.mxu0 %v4458_v2  ;;  %v3233_v5 = vadd.f32 %v3217_v59, %v3189_v52  ;;  %v3322_v49 = vmul.f32 %v8805_v24, %v8187_v4  ;;  %v3403_v14 = vrot.slane %v3387_v13, 1  ;;  %4300 = vmatpush1.msra.mxu1 %v4067_v0  ;;  %v8847_v55 = vld [vmem:[#allocation64_spill] sm:$0xff]  ;;  %v4456_v24 = vld [vmem:[#allocation12 + $0xe0] sm:$0xff]  ;;  %v8852_v59 = vld [vmem:[#allocation70_spill] sm:$0xff] }
 0x493   : > { %v3753_v50 = vadd.f32 %v8844_v9, %v3709_v11  ;;  %v3375_v27 = vadd.f32 %v3367_v46, %v3355_v18  ;;  %5841 = vmatpush3.msra.mxu0 %v4442_v62  ;;  %v3960_v37 = vadd.f32 1.0, %v6184_v15  ;;  %v8846_v48 = vrot.slane %v8845_v53, 1  ;;  %v4056_v4 = vld [vmem:[#allocation10 + $0x268] sm:$0xff]  ;;  %4301 = vmatprep.subr.mxu1 %v4062_v21  ;;  %v4055_v13 = vld [vmem:[#allocation10 + $0x260] sm:$0xff]  ;;  %v8850_v62 = vld [vmem:[#allocation66_spill] sm:$0xff] }
 0x494   : > { %v8848_v7 = vrot.slane %v8847_v55, 2  ;;  %v8323_v2 = vmul.f32 %v7633_v40, %v8248_v25  ;;  %v8849_v26 = vmov 0.0   ;;  %v3266_v56 = vadd.f32 %v3258_v33, %v3233_v5  ;;  %5842 = vmatprep.subr.mxu0 %v4457_v6  ;;  %v4440_v0 = vld [vmem:[#allocation12 + $0x60] sm:$0xff]  ;;  %4302 = vmatpush1.msra.mxu1 %v4061_v43  ;;  %v4049_v33 = vld [vmem:[#allocation10 + $0x230] sm:$0xff]  ;;  %v4439_v15 = vld [vmem:[#allocation12 + $0x58] sm:$0xff] }
 0x495   : > { %v3754_v54 = vadd.f32 %v8846_v48, %v3710_v32  ;;  %4177 = vmatprep.mubr.f32.mxu1 %v8849_v26  ;;  %4272 = vmatprep.mubr.f32.mxu0 %v8849_v26  ;;  %v3294_v42 = vrot.slane %v8293_v39, 1  ;;  %v3419_v11 = vadd.f32 %v3403_v14, %v3375_v27  ;;  %v3447_v46 = vrot.slane %v3431_v51, 2  ;;  %v4050_v32 = vld [vmem:[#allocation10 + $0x238] sm:$0xff]  ;;  %v8853_v21 = vld [vmem:[#allocation71_spill] sm:$0xff] }
 0x496   : > { %v3797_v10 = vadd.f32 %v8848_v7, %v3753_v50  ;;  %6185 = vrcp.f32 %v3960_v37  ;;  %v8851_v52 = vrot.slane %v8850_v62, 2  ;;  %v8333_v34 = vmul.f32 %v7764_v36, %v8824_v61  ;;  %5843 = vmatpush3.msra.mxu0 %v4441_v45  ;;  %v4455_v39 = vld [vmem:[#allocation12 + $0xd8] sm:$0xff]  ;;  %4303 = vmatprep.subr.mxu1 %v4056_v4  ;;  %v8854_v5 = vld [vmem:[#allocation67_spill] sm:$0xff]  ;;  %v4454_v45 = vld [vmem:[#allocation12 + $0xd0] sm:$0xff] }
 0x497   : > { %v3310_v16 = vadd.f32 %v3294_v42, %v3266_v56  ;;  %v3338_v51 = vrot.slane %v3322_v49, 2  ;;  %v3386_v9 = vmul.f32 %v7782_v57, %v8205_v12  ;;  %v3463_v50 = vadd.f32 %v3447_v46, %v3419_v11  ;;  %5844 = vmatprep.subr.mxu0 %v4456_v24  ;;  %4304 = vmatpush1.msra.mxu1 %v4055_v13  ;;  %v4044_v49 = vld [vmem:[#allocation10 + $0x208] sm:$0xff]  ;;  %v4043_v55 = vld [vmem:[#allocation10 + $0x200] sm:$0xff]  ;;  %v4438_v7 = vld [vmem:[#allocation12 + $0x50] sm:$0xff] }
 0x498   : > { %v3798_v25 = vadd.f32 %v8851_v52, %v3754_v54  ;;  %v3817_v18 = vadd.f32 %v8852_v59, %v3797_v10  ;;  %v8855_v27 = vrot.slane %v8854_v5, 1  ;;  %v3890_v37 = vrot.slane %v8252_v35, 2  ;;  %5845 = vmatpush3.msra.mxu0 %v4440_v0  ;;  %4305 = vmatprep.subr.mxu1 %v4050_v32  ;;  %v8856_v35 = vld [vmem:[#allocation38_spill] sm:$0xff]  ;;  %v4453_v56 = vld [vmem:[#allocation12 + $0xc8] sm:$0xff]  ;;  %v4037_v11 = vld [vmem:[#allocation10 + $0x1d0] sm:$0xff] }
 0x499   : > { %v3366_v43 = vmul.f32 %v7778_v63, %v8205_v12  ;;  %v3354_v57 = vadd.f32 %v3338_v51, %v3310_v16  ;;  %v3430_v53 = vmul.f32 %v7786_v29, %v8205_v12  ;;  %v3483_v48 = vadd.f32 %v8259_v60, %v3463_v50  ;;  %5846 = vmatprep.subr.mxu0 %v4455_v39  ;;  %v4038_v24 = vld [vmem:[#allocation10 + $0x1d8] sm:$0xff]  ;;  %v8353_v60 = vld [vmem:[#allocation3 + $0xb0] sm:$0x3f]  ;;  %v4437_v46 = vld [vmem:[#allocation12 + $0x48] sm:$0xff] }
 0x49a   : > { %v3818_v6 = vadd.f32 %v8853_v21, %v3798_v25  ;;  %v3861_v14 = vadd.f32 %v8855_v27, %v3817_v18  ;;  %v3555_v54 = vrot.slane %v8323_v2, 2  ;;  %v8857_v10 = vrot.slane %v8856_v35, 1  ;;  %4306 = vmatpush1.msra.mxu1 %v4049_v33  ;;  %5847 = vmatpush3.msra.mxu0 %v4439_v15  ;;  %v8858_v13 = vld [vmem:[#allocation68_spill] sm:$0xff]  ;;  %v4031_v39 = vld [vmem:[#allocation10 + $0x1a0] sm:$0xff]  ;;  %v4026_v50 = vld [vmem:[#allocation10 + $0x178] sm:$0xff] }
 0x49b   : > { %v3596_v63 = vmul.f32 %v7625_v23, %v8824_v61  ;;  %v3374_v42 = vadd.f32 %v3366_v43, %v3354_v57  ;;  %v3402_v29 = vrot.slane %v3386_v9, 1  ;;  %v3527_v12 = vadd.f32 %v3511_v44, %v3483_v48  ;;  %4307 = vmatprep.subr.mxu1 %v4044_v49  ;;  %5848 = vmatprep.subr.mxu0 %v4454_v45  ;;  %v4032_v59 = vld [vmem:[#allocation10 + $0x1a8] sm:$0xff]  ;;  %v4436_v16 = vld [vmem:[#allocation12 + $0x40] sm:$0xff]  ;;  %v4451_v33 = vld [vmem:[#allocation12 + $0xb8] sm:$0xff] }
 0x49c   : > { %v3862_v4 = vadd.f32 %v8857_v10, %v3818_v6  ;;  %v3660_v2 = vmul.f32 %v7768_v58, %v8824_v61  ;;  %v8859_v0 = vrot.slane %v8858_v13, 2  ;;  %v3632_v25 = vrot.slane %v8333_v34, 1  ;;  %4308 = vmatpush1.msra.mxu1 %v4043_v55  ;;  %5849 = vmatpush3.msra.mxu0 %v4438_v7  ;;  %v4025_v5 = vld [vmem:[#allocation10 + $0x170] sm:$0xff]  ;;  %v4435_v27 = vld [vmem:[#allocation12 + $0x38] sm:$0xff]  ;;  %v4020_v49 = vld [vmem:[#allocation10 + $0x148] sm:$0xff] }
 0x49d   : > { %v3418_v44 = vadd.f32 %v3402_v29, %v3374_v42  ;;  %v3446_v18 = vrot.slane %v3430_v53, 2  ;;  %v3494_v32 = vmul.f32 %v7794_v28, %v8285_v30  ;;  %v3571_v61 = vadd.f32 %v3555_v54, %v3527_v12  ;;  %4309 = vmatprep.subr.mxu1 %v4038_v24  ;;  %5850 = vmatprep.subr.mxu0 %v4453_v56  ;;  %v4450_v45 = vld [vmem:[#allocation12 + $0xb0] sm:$0xff]  ;;  %v4449_v12 = vld [vmem:[#allocation12 + $0xa8] sm:$0xff] }
 0x49e   : > { %v3905_v62 = vadd.f32 %v8859_v0, %v3861_v14  ;;  %v3906_v52 = vadd.f32 %v3890_v37, %v3862_v4  ;;  %v3474_v9 = vmul.f32 %v7790_v19, %v8285_v30  ;;  %v8366_v34 = vmul.f32 %v7798_v17, %v8353_v60  ;;  %4310 = vmatpush1.msra.mxu1 %v4037_v11  ;;  %v6207_v19 = vld [vmem:[#allocation3 + $0xa0] sm:$0x3f]  ;;  %v4434_v54 = vld [vmem:[#allocation12 + $0x30] sm:$0xff]  ;;  %v4433_v0 = vld [vmem:[#allocation12 + $0x28] sm:$0xff] }
 0x49f   : > { %5851 = vmatpush3.msra.mxu0 %v4437_v46  ;;  %v3462_v15 = vadd.f32 %v3446_v18, %v3418_v44  ;;  %v3538_v28 = vmul.f32 %v7633_v40, %v8285_v30  ;;  %v3604_v21 = vadd.f32 %v3596_v63, %v3571_v61  ;;  %v3676_v6 = vrot.slane %v3660_v2, 2  ;;  %4311 = vmatprep.subr.mxu1 %v4032_v59  ;;  %v4013_v13 = vld [vmem:[#allocation10 + $0x110] sm:$0xff]  ;;  %v6208_v59 = vld [vmem:[#allocation3 + $0xa8] sm:$0x3f] }
 0x4a0   : > { %v3924_v51 = vcombine.low %v3905_v62, %v3906_v52  ;;  %5852 = vmatprep.subr.mxu0 %v4452_v8  ;;  %v3615_v37 = vmul.f32 %v6207_v19, %v7764_v36  ;;  %v3704_v43 = vmul.f32 %v7772_v22, %v8353_v60  ;;  %4312 = vmatpush1.msra.mxu1 %v4031_v39  ;;  %v3510_v40 = vrot.slane %v3494_v32, 1  ;;  %v4019_v36 = vld [vmem:[#allocation10 + $0x140] sm:$0xff]  ;;  %v4008_v62 = vld [vmem:[#allocation10 + $0xe8] sm:$0xff] }
 0x4a1   : > { %5853 = vmatpush3.msra.mxu0 %v4436_v16  ;;  %v3482_v57 = vadd.f32 %v3474_v9, %v3462_v15  ;;  %v3648_v30 = vadd.f32 %v3632_v25, %v3604_v21  ;;  %v3768_v53 = vmul.f32 %v7816_v47, %v8353_v60  ;;  %4313 = vmatprep.subr.mxu1 %v4026_v50  ;;  %v3740_v35 = vrot.slane %v8366_v34, 1  ;;  %v4448_v52 = vld [vmem:[#allocation12 + $0xa0] sm:$0xff]  ;;  %v4002_v50 = vld [vmem:[#allocation10 + $0xb8] sm:$0xff]  ;;  %v4446_v21 = vld [vmem:[#allocation12 + $0x90] sm:$0xff] }
 0x4a2   : > { %v8370_v14 = vrot.slane %v3924_v51, 7  ;;  %5854 = vmatprep.subr.mxu0 %v4451_v33  ;;  %v3595_v55 = vmul.f32 %v6207_v19, %v7625_v23  ;;  %v3659_v7 = vmul.f32 %v6207_v19, %v7768_v58  ;;  %4314 = vmatpush1.msra.mxu1 %v4025_v5  ;;  %v3554_v24 = vrot.slane %v3538_v28, 2  ;;  %v4014_v58 = vld [vmem:[#allocation10 + $0x118] sm:$0xff]  ;;  %v4007_v39 = vld [vmem:[#allocation10 + $0xe0] sm:$0xff]  ;;  %v4430_v19 = vld [vmem:[#allocation12 + $0x10] sm:$0xff] }
 0x4a3   : > { %v6186_v10 = vpop.eup %6185  ;;  %5855 = vmatpush3.msra.mxu0 %v4435_v27  ;;  %v3526_v63 = vadd.f32 %v3510_v40, %v3482_v57  ;;  %v3692_v56 = vadd.f32 %v3676_v6, %v3648_v30  ;;  %4315 = vmatprep.subr.mxu1 %v4020_v49  ;;  %v3631_v29 = vrot.slane %v3615_v37, 1  ;;  %v3784_v46 = vrot.slane %v3768_v53, 2  ;;  %v4432_v16 = vld [vmem:[#allocation12 + $0x20] sm:$0xff]  ;;  %v4447_v33 = vld [vmem:[#allocation12 + $0x98] sm:$0xff]  ;;  %v4445_v40 = vld [vmem:[#allocation12 + $0x88] sm:$0xff] }
 0x4a4   : > { %v8380_v48 = vsel %vm1942_vm7, %v8218_v20, %v8370_v14  ;;  %v8387_v42 = vmul.f32 %v6186_v10, %v8231_v38  ;;  %5856 = vmatprep.subr.mxu0 %v4450_v45  ;;  %v3584_v20 = vld [vmem:[#allocation3 + $0xb8] sm:$0x3f]  ;;  %4316 = vmatpush1.msra.mxu1 %v4019_v36  ;;  %v3675_v38 = vrot.slane %v3659_v7, 2  ;;  %v3723_v8 = vmul.f32 %v6208_v59, %v7798_v17  ;;  %v4001_v17 = vld [vmem:[#allocation10 + $0xb0] sm:$0xff]  ;;  %v3995_v27 = vld [vmem:[#allocation10 + $0x80] sm:$0xff] }
 0x4a5   : > { %v5378_v4 = vmul.f32 -1.702, %v8380_v48  ;;  %5857 = vmatpush3.msra.mxu0 %v4434_v54  ;;  %v3570_v2 = vadd.f32 %v3554_v24, %v3526_v63  ;;  %v3712_v11 = vadd.f32 %v3704_v43, %v3692_v56  ;;  %4317 = vmatprep.subr.mxu1 %v4014_v58  ;;  %v3703_v18 = vmul.f32 %v6208_v59, %v7772_v22  ;;  %v4431_v15 = vld [vmem:[#allocation12 + $0x18] sm:$0xff]  ;;  %v3989_v30 = vld [vmem:[#allocation10 + $0x50] sm:$0xff]  ;;  %v4429_v53 = vld [vmem:[#allocation12 + $0x8] sm:$0xff] }
 0x4a6   : > { %4178 = vmatmul.mubr.f32.gmra.mxu1 %v8387_v42  ;;  %4273 = vmatmul.mubr.f32.gmra.mxu0 %v8387_v42  ;;  %v3767_v32 = vmul.f32 %v6208_v59, %v7816_v47  ;;  %v3812_v61 = vmul.f32 %v7827_v3, %v3584_v20  ;;  %v3832_v34 = vmul.f32 %v7644_v31, %v3584_v20  ;;  %v3739_v22 = vrot.slane %v3723_v8, 1  ;;  %v3996_v47 = vld [vmem:[#allocation10 + $0x88] sm:$0xff]  ;;  %v3990_v57 = vld [vmem:[#allocation10 + $0x58] sm:$0xff]  ;;  %v4444_v7 = vld [vmem:[#allocation12 + $0x80] sm:$0xff] }
 0x4a7   : > { %v3953_v23 = vmul.f32 1.442695, %v5378_v4  ;;  %4183 = vmatprep.mubr.f32.mxu1 %v8849_v26  ;;  %4278 = vmatprep.mubr.f32.mxu0 %v8849_v26  ;;  %v3603_v25 = vadd.f32 %v3595_v55, %v3570_v2  ;;  %v3756_v44 = vadd.f32 %v3740_v35, %v3712_v11  ;;  %v3831_v5 = vmul.f32 %v7644_v31, %v8353_v60  ;;  %v3984_v55 = vld [vmem:[#allocation10 + $0x28] sm:$0xff]  ;;  %v3983_v35 = vld [vmem:[#allocation10 + $0x20] sm:$0xff] }
 0x4a8   : > { %5858 = vmatprep.subr.mxu0 %v4449_v12  ;;  %4318 = vmatpush1.msra.mxu1 %v4013_v13  ;;  %v3783_v6 = vrot.slane %v3767_v32, 2  ;;  %v3848_v49 = vrot.slane %v3832_v34, 1  ;;  %v3876_v45 = vmul.f32 %v8798_v41, %v3584_v20  ;;  %v3811_v31 = vmul.f32 %v7827_v3, %v8353_v60  ;;  %v4428_v10 = vld [vmem:[#allocation12] sm:$0xff]  ;;  %v4491_v20 = vld [vmem:[#allocation12 + $0x1f8] sm:$0xff] }
 0x4a9   : > { %6187 = vpow2.f32 %v3953_v23  ;;  %5859 = vmatpush3.msra.mxu0 %v4433_v0  ;;  %v3647_v51 = vadd.f32 %v3631_v29, %v3603_v25  ;;  %v3800_v9 = vadd.f32 %v3784_v46, %v3756_v44  ;;  %4319 = vmatprep.subr.mxu1 %v4008_v62  ;;  %v3875_v54 = vmul.f32 %v8798_v41, %v8353_v60  ;;  %v4523_v29 = vld [vmem:[#allocation12 + $0x2f8] sm:$0xff] }
 0x4aa   : > { %5860 = vmatprep.subr.mxu0 %v4448_v52  ;;  %4320 = vmatpush1.msra.mxu1 %v4007_v39  ;;  %v3847_v63 = vrot.slane %v3831_v5, 1  ;;  %v3892_v56 = vrot.slane %v3876_v45, 2  ;;  %v4507_v34 = vld [vmem:[#allocation12 + $0x278] sm:$0xff]  ;;  %v4520_v5 = vld [vmem:[#allocation12 + $0x2e0] sm:$0xff]  ;;  %v4518_v45 = vld [vmem:[#allocation12 + $0x2d0] sm:$0xff] }
 0x4ab   : > { %v3691_v28 = vadd.f32 %v3675_v38, %v3647_v51  ;;  %5861 = vmatpush3.msra.mxu0 %v4432_v16  ;;  %4321 = vmatprep.subr.mxu1 %v4002_v50  ;;  %v3820_v43 = vadd.f32 %v3812_v61, %v3800_v9  ;;  %v3891_v41 = vrot.slane %v3875_v54, 2  ;;  %v4423_v16 = vld [vmem:[%s8420_s24 + $0x8] sm:$0xff]  ;;  %v4422_v51 = vld [vmem:[%s8420_s24] sm:$0xff]  ;;  %v4484_v54 = vld [vmem:[#allocation12 + $0x1c0] sm:$0xff] }
 0x4ac   : > { %5862 = vmatprep.subr.mxu0 %v4447_v33  ;;  %4322 = vmatpush1.msra.mxu1 %v4001_v17  ;;  %v4475_v9 = vld [vmem:[#allocation12 + $0x178] sm:$0xff]  ;;  %v4490_v50 = vld [vmem:[#allocation12 + $0x1f0] sm:$0xff] }
 0x4ad   : > { %v3711_v37 = vadd.f32 %v3703_v18, %v3691_v28  ;;  %5863 = vmatpush3.msra.mxu0 %v4431_v15  ;;  %4323 = vmatprep.subr.mxu1 %v3996_v47  ;;  %v3864_v24 = vadd.f32 %v3848_v49, %v3820_v43  ;;  %v4522_v33 = vld [vmem:[#allocation12 + $0x2f0] sm:$0xff]  ;;  %v4489_v28 = vld [vmem:[#allocation12 + $0x1e8] sm:$0xff]  ;;  %v4471_v43 = vld [vmem:[#allocation12 + $0x158] sm:$0xff] }
 0x4ae   : > { %5864 = vmatprep.subr.mxu0 %v4446_v21  ;;  %4324 = vmatpush1.msra.mxu1 %v3995_v27  ;;  %v4474_v17 = vld [vmem:[#allocation12 + $0x170] sm:$0xff]  ;;  %v4473_v47 = vld [vmem:[#allocation12 + $0x168] sm:$0xff]  ;;  %v4504_v27 = vld [vmem:[#allocation12 + $0x260] sm:$0xff] }
 0x4af   : > { %v3755_v36 = vadd.f32 %v3739_v22, %v3711_v37  ;;  %5865 = vmatpush3.msra.mxu0 %v4430_v19  ;;  %4325 = vmatprep.subr.mxu1 %v3990_v57  ;;  %v3908_v12 = vadd.f32 %v3892_v56, %v3864_v24  ;;  %v4506_v15 = vld [vmem:[#allocation12 + $0x270] sm:$0xff]  ;;  %v4521_v22 = vld [vmem:[#allocation12 + $0x2e8] sm:$0xff]  ;;  %v4487_v19 = vld [vmem:[#allocation12 + $0x1d8] sm:$0xff] }
 0x4b0   : > { %5866 = vmatprep.subr.mxu0 %v4445_v40  ;;  %4326 = vmatpush1.msra.mxu1 %v3989_v30  ;;  %v4505_v21 = vld [vmem:[#allocation12 + $0x268] sm:$0xff]  ;;  %v4519_v37 = vld [vmem:[#allocation12 + $0x2d8] sm:$0xff]  ;;  %v4470_v57 = vld [vmem:[#allocation12 + $0x150] sm:$0xff] }
 0x4b1   : > { %v3799_v4 = vadd.f32 %v3783_v6, %v3755_v36  ;;  %5867 = vmatpush3.msra.mxu0 %v4429_v53  ;;  %4327 = vmatprep.subr.mxu1 %v3984_v55  ;;  %v4488_v6 = vld [vmem:[#allocation12 + $0x1e0] sm:$0xff]  ;;  %v4503_v49 = vld [vmem:[#allocation12 + $0x258] sm:$0xff]  ;;  %v4502_v40 = vld [vmem:[#allocation12 + $0x250] sm:$0xff] }
 0x4b2   : > { %5868 = vmatprep.subr.mxu0 %v4444_v7  ;;  %4328 = vmatpush1.msra.mxu1 %v3983_v35  ;;  %v4485_v30 = vld [vmem:[#allocation12 + $0x1c8] sm:$0xff]  ;;  %v4516_v55 = vld [vmem:[#allocation12 + $0x2c0] sm:$0xff]  ;;  %v4499_v24 = vld [vmem:[#allocation12 + $0x238] sm:$0xff] }
 0x4b3   : > { %v3819_v3 = vadd.f32 %v3811_v31, %v3799_v4  ;;  %5869 = vmatpush3.msra.mxu0 %v4428_v10  ;;  %5873 = vmatprep.subr.mxu1 %v4491_v20  ;;  %v4517_v53 = vld [vmem:[#allocation12 + $0x2c8] sm:$0xff]  ;;  %v4468_v7 = vld [vmem:[#allocation12 + $0x140] sm:$0xff]  ;;  %v4483_v10 = vld [vmem:[#allocation12 + $0x1b8] sm:$0xff] }
 0x4b4   : > { %5908 = vmatprep.subr.mxu0 %v4523_v29  ;;  %v4469_v36 = vld [vmem:[#allocation12 + $0x148] sm:$0xff]  ;;  %v4500_v35 = vld [vmem:[#allocation12 + $0x240] sm:$0xff]  ;;  %v4515_v4 = vld [vmem:[#allocation12 + $0x2b8] sm:$0xff] }
 0x4b5   : > { %v3863_v58 = vadd.f32 %v3847_v63, %v3819_v3  ;;  %v4501_v31 = vld [vmem:[#allocation12 + $0x248] sm:$0xff]  ;;  %v4467_v63 = vld [vmem:[#allocation12 + $0x138] sm:$0xff]  ;;  %v4482_v56 = vld [vmem:[#allocation12 + $0x1b0] sm:$0xff] }
 0x4b6   : > { %v6188_v60 = vpop.eup %6187  ;;  %v4514_v20 = vld [vmem:[#allocation12 + $0x2b0] sm:$0xff] }
 0x4b7   : > { %v3961_v23 = vadd.f32 1.0, %v6188_v60  ;;  %v3907_v2 = vadd.f32 %v3891_v41, %v3863_v58  ;;  %v4466_v29 = vld [vmem:[#allocation12 + $0x130] sm:$0xff]  ;;  %v4481_v41 = vld [vmem:[#allocation12 + $0x1a8] sm:$0xff] }
 0x4b8   : > { %v4498_v3 = vld [vmem:[#allocation12 + $0x230] sm:$0xff]  ;;  %v4513_v60 = vld [vmem:[#allocation12 + $0x2a8] sm:$0xff] }
 0x4b9   : > { %6189 = vrcp.f32 %v3961_v23  ;;  %v3925_v11 = vcombine.low %v3907_v2, %v3908_v12  ;;  %v4465_v23 = vld [vmem:[#allocation12 + $0x128] sm:$0xff]  ;;  %v4480_v12 = vld [vmem:[#allocation12 + $0x1a0] sm:$0xff] }
 0x4ba   : > { %v4497_v58 = vld [vmem:[#allocation12 + $0x228] sm:$0xff]  ;;  %v4512_v2 = vld [vmem:[#allocation12 + $0x2a0] sm:$0xff] }
 0x4bb   : > { %v3931_v46 = vrot.slane %v3925_v11, 7  ;;  %v4464_v11 = vld [vmem:[#allocation12 + $0x120] sm:$0xff] }
 0x4bd   : > { %v3932_v13 = vsel %vm1942_vm7, %v8370_v14, %v3931_v46  ;;  %v5380_v0 = vmul.f32 -1.702, %v3931_v46 }
 0x4be   : > { %v5379_v38 = vmul.f32 -1.702, %v3932_v13 }
 0x4bf   : > { %v3957_v62 = vmul.f32 1.442695, %v5380_v0  ;;  %v4511_v0 = vld [vmem:[#allocation12 + $0x298] sm:$0xff] }
 0x4c0   : > { %v3955_v52 = vmul.f32 1.442695, %v5379_v38  ;;  %v4463_v38 = vld [vmem:[#allocation12 + $0x118] sm:$0xff] }
 0x4c1   : > { %6191 = vpow2.f32 %v3957_v62  ;;  %v4495_v62 = vld [vmem:[#allocation12 + $0x218] sm:$0xff] }
 0x4c2   : > { %6193 = vpow2.f32 %v3955_v52  ;;  %v4478_v52 = vld [vmem:[#allocation12 + $0x190] sm:$0xff] }
 0x4c6   : > { %v6190_v25 = vpop.eup %6189 }
 0x4c7   : > { %v8408_v59 = vmul.f32 %v6190_v25, %v8380_v48  ;;  %v4510_v25 = vld [vmem:[#allocation12 + $0x290] sm:$0xff] }
 0x4c9   : > { %4184 = vmatmul.mubr.f32.gmra.mxu1 %v8408_v59  ;;  %4279 = vmatmul.mubr.f32.gmra.mxu0 %v8408_v59 }
 0x4ca   : > { %4189 = vmatprep.mubr.f32.mxu1 %v8849_v26  ;;  %4284 = vmatprep.mubr.f32.mxu0 %v8849_v26 }
 0x4ce   : > { %v6192_v14 = vpop.eup %6191 }
 0x4cf   : > { %v6194_v8 = vpop.eup %6193  ;;  %v3963_v18 = vadd.f32 1.0, %v6192_v14  ;;  %v4494_v14 = vld [vmem:[#allocation12 + $0x210] sm:$0xff] }
 0x4d0   : > { %v3962_v44 = vadd.f32 1.0, %v6194_v8  ;;  %v4477_v8 = vld [vmem:[#allocation12 + $0x188] sm:$0xff] }
 0x4d2   : > { %6195 = vrcp.f32 %v3962_v44  ;;  %v4509_v44 = vld [vmem:[#allocation12 + $0x288] sm:$0xff] }
 0x4d3   : > { %6197 = vrcp.f32 %v3963_v18  ;;  %v4461_v18 = vld [vmem:[#allocation12 + $0x108] sm:$0xff] }
 0x4df   : > { %v6196_v32 = vpop.eup %6195 }
 0x4e0   : > { %v8415_v61 = vmul.f32 %v6196_v32, %v3932_v13  ;;  %v6198_v48 = vpop.eup %6197  ;;  %v4479_v13 = vld [vmem:[#allocation12 + $0x198] sm:$0xff]  ;;  %v4493_v32 = vld [vmem:[#allocation12 + $0x208] sm:$0xff] }
 0x4e1   : > { %v8426_v39 = vmul.f32 %v6198_v48, %v3931_v46  ;;  %v4496_v46 = vld [vmem:[#allocation12 + $0x220] sm:$0xff] }
 0x4e2   : > { %4190 = vmatmul.mubr.f32.gmra.mxu1 %v8415_v61  ;;  %4285 = vmatmul.mubr.f32.gmra.mxu0 %v8415_v61  ;;  %v4508_v48 = vld [vmem:[#allocation12 + $0x280] sm:$0xff] }
 0x4e3   : > { %4195 = vmatprep.mubr.f32.mxu1 %v8849_v26  ;;  %4290 = vmatprep.mubr.f32.mxu0 %v8849_v26 }
 0x4e6   : > { %4196 = vmatmul.mubr.f32.gmra.mxu1 %v8426_v39  ;;  %4291 = vmatmul.mubr.f32.gmra.mxu0 %v8426_v39 }
 0x4e7   : > { %4361 = vmatprep.mubr.f32.mxu1 %v8849_v26  ;;  %4595 = vmatprep.mubr.f32.mxu0 %v4423_v16  ;;  %v4425_v16 = vld [vmem:[%s8420_s24 + $0x18] sm:$0xff] }
 0x4ea   : > { %4362 = vmatmul.mubr.f32.vlgmr.msra.gmra.mxu1 %v8296_v1  ;;  %4596 = vmatmul.mubr.f32.vlgmr.msra.gmra.mxu0 %v4422_v51  ;;  %v4472_v1 = vld [vmem:[#allocation12 + $0x160] sm:$0xff] }
 0x4eb   : > { %5874 = vmatpush3.msra.mxu1 %v4475_v9  ;;  %5909 = vmatpush3.msra.mxu0 %v4507_v34  ;;  %v4492_v51 = vld [vmem:[#allocation12 + $0x200] sm:$0xff]  ;;  %v4427_v9 = vld [vmem:[%s8420_s24 + $0x28] sm:$0xff] }
 0x4ec   : > { %5875 = vmatprep.subr.mxu1 %v4490_v50  ;;  %5910 = vmatprep.subr.mxu0 %v4522_v33  ;;  %v4424_v34 = vld [vmem:[%s8420_s24 + $0x10] sm:$0xff]  ;;  %v4426_v50 = vld [vmem:[%s8420_s24 + $0x20] sm:$0xff]  ;;  %s6017_s24 = smul.u32 768, %s6587_s3  ;;  %s6455_s3 = smov [#allocation15]  }
 0x4ed   : > { %4367 = vmatprep.mubr.f32.mxu1 %v8849_v26  ;;  %5876 = vmatpush3.msra.mxu1 %v4474_v17  ;;  %v8451_v33 = vld [vmem:[%s8600_s14] sm:$0x3f]  ;;  %v8861_v17 = vld [vmem:[#allocation27_spill] sm:$0xff]  ;;  %s6369_s27 = sshll.u32 %s6455_s3, 4  ;;  %s6370_s27 = int_to_ptr.vmem [resolvable:$false] %s6369_s27 }
 0x4ee   : > { %5911 = vmatpush3.msra.mxu0 %v4506_v15  ;;  %4368 = vmatmul.mubr.f32.gmra.mxu1 %v8387_v42  ;;  %v4486_v42 = vld [vmem:[#allocation12 + $0x1d0] sm:$0xff]  ;;  %v8455_v15 = vrot.slane %v8451_v33, %v8861_v17  ;;  %s6371_s22 = scalar_lea.vmem %s6370_s27, 1536  ;;  %p6372_p13 = scmp.lt.s32.totalorder %s5136_s0, %s6370_s27 }
 0x4ef   : > { %5877 = vmatprep.subr.mxu1 %v4489_v28  ;;  %5912 = vmatprep.subr.mxu0 %v4521_v22  ;;  %v8862_v28 = vld [vmem:[#allocation28_spill] sm:$0xff]  ;;  %p6373_p7 = scmp.lt.s32.totalorder %s6371_s22, %s6365_s28 }
 0x4f0   : > { %5878 = vmatpush3.msra.mxu1 %v4473_v47  ;;  %5913 = vmatpush3.msra.mxu0 %v4505_v21  ;;  %v8459_v22 = vrot.slane %v8451_v33, %v8862_v28  ;;  %v8863_v47 = vld [vmem:[#allocation29_spill] sm:$0xff] }
 0x4f1   : > { %5879 = vmatprep.subr.mxu1 %v4488_v6  ;;  %5914 = vmatprep.subr.mxu0 %v4520_v5  ;;  %v8463_v21 = vrot.slane %v8451_v33, %v8863_v47  ;;  %v8864_v6 = vld [vmem:[#allocation30_spill] sm:$0xff]  ;;  %p6374_p11 = por %p6373_p7, %p6372_p13 }
 0x4f2   : > { %4373 = vmatprep.mubr.f32.mxu1 %v8849_v26  ;;  %5880 = vmatpush3.msra.mxu1 %v4472_v1  ;;  %v8467_v5 = vrot.slane %v8451_v33, %v8864_v6 }
 0x4f3   : > { %5915 = vmatpush3.msra.mxu0 %v4504_v27  ;;  %4374 = vmatmul.mubr.f32.gmra.mxu1 %v8408_v59  ;;  %v4462_v59 = vld [vmem:[#allocation12 + $0x110] sm:$0xff]  ;;  %p6375_p0 = pnand %p6374_p11, %p6368_p8 }
 0x4f4   : > { %5881 = vmatprep.subr.mxu1 %v4487_v19  ;;  %5916 = vmatprep.subr.mxu0 %v4519_v37 }
 0x4f5   : > { %5882 = vmatpush3.msra.mxu1 %v4471_v43  ;;  %5917 = vmatpush3.msra.mxu0 %v4503_v49 }
 0x4f6   : > { %5883 = vmatprep.subr.mxu1 %v4486_v42  ;;  %5918 = vmatprep.subr.mxu0 %v4518_v45 }
 0x4f7   : > { %4379 = vmatprep.mubr.f32.mxu1 %v8849_v26  ;;  %5884 = vmatpush3.msra.mxu1 %v4470_v57 }
 0x4f8   : > { %5919 = vmatpush3.msra.mxu0 %v4502_v40  ;;  %4380 = vmatmul.mubr.f32.gmra.mxu1 %v8415_v61  ;;  %v4476_v61 = vld [vmem:[#allocation12 + $0x180] sm:$0xff] }
 0x4f9   : > { %5885 = vmatprep.subr.mxu1 %v4485_v30  ;;  %5920 = vmatprep.subr.mxu0 %v4517_v53 }
 0x4fa   : > { %5886 = vmatpush3.msra.mxu1 %v4469_v36  ;;  %5921 = vmatpush3.msra.mxu0 %v4501_v31 }
 0x4fb   : > { %5887 = vmatprep.subr.mxu1 %v4484_v54  ;;  %5922 = vmatprep.subr.mxu0 %v4516_v55 }
 0x4fc   : > { %4385 = vmatprep.mubr.f32.mxu1 %v8849_v26  ;;  %5888 = vmatpush3.msra.mxu1 %v4468_v7  ;;  %v4848_v7 = vld [vmem:[#allocation13 + $0x2d8] sm:$0xff] }
 0x4fd   : > { %5923 = vmatpush3.msra.mxu0 %v4500_v35  ;;  %4386 = vmatmul.mubr.f32.gmra.mxu1 %v8426_v39  ;;  %v4460_v39 = vld [vmem:[#allocation12 + $0x100] sm:$0xff]  ;;  %v4847_v35 = vld [vmem:[#allocation13 + $0x2d0] sm:$0xff] }
 0x4fe   : > { %5889 = vmatprep.subr.mxu1 %v4483_v10  ;;  %5924 = vmatprep.subr.mxu0 %v4515_v4  ;;  %v4850_v10 = vld [vmem:[#allocation13 + $0x2e8] sm:$0xff] }
 0x4ff   : > { %5890 = vmatpush3.msra.mxu1 %v4467_v63  ;;  %5925 = vmatpush3.msra.mxu0 %v4499_v24  ;;  %v4842_v4 = vld [vmem:[#allocation13 + $0x2a8] sm:$0xff]  ;;  %v4849_v63 = vld [vmem:[#allocation13 + $0x2e0] sm:$0xff] }
 0x500   : > { %5891 = vmatprep.subr.mxu1 %v4482_v56  ;;  %5926 = vmatprep.subr.mxu0 %v4514_v20  ;;  %v4841_v20 = vld [vmem:[#allocation13 + $0x2a0] sm:$0xff] }
 0x501   : > { %5892 = vmatpush3.msra.mxu1 %v4466_v29  ;;  %5927 = vmatpush3.msra.mxu0 %v4498_v3  ;;  %v4844_v29 = vld [vmem:[#allocation13 + $0x2b8] sm:$0xff] }
 0x502   : > { %5893 = vmatprep.subr.mxu1 %v4481_v41  ;;  %5928 = vmatprep.subr.mxu0 %v4513_v60  ;;  %v4836_v60 = vld [vmem:[#allocation13 + $0x278] sm:$0xff] }
 0x503   : > { %5894 = vmatpush3.msra.mxu1 %v4465_v23  ;;  %5929 = vmatpush3.msra.mxu0 %v4497_v58  ;;  %v4843_v23 = vld [vmem:[#allocation13 + $0x2b0] sm:$0xff] }
 0x504   : > { %5895 = vmatprep.subr.mxu1 %v4480_v12  ;;  %5930 = vmatprep.subr.mxu0 %v4512_v2  ;;  %v4835_v2 = vld [vmem:[#allocation13 + $0x270] sm:$0xff] }
 0x505   : > { %5896 = vmatpush3.msra.mxu1 %v4464_v11  ;;  %5931 = vmatpush3.msra.mxu0 %v4496_v46  ;;  %v4838_v11 = vld [vmem:[#allocation13 + $0x288] sm:$0xff] }
 0x506   : > { %5897 = vmatprep.subr.mxu1 %v4479_v13  ;;  %5932 = vmatprep.subr.mxu0 %v4511_v0  ;;  %v4830_v0 = vld [vmem:[#allocation13 + $0x248] sm:$0xff] }
 0x507   : > { %5898 = vmatpush3.msra.mxu1 %v4463_v38  ;;  %5933 = vmatpush3.msra.mxu0 %v4495_v62  ;;  %v4837_v38 = vld [vmem:[#allocation13 + $0x280] sm:$0xff] }
 0x508   : > { %5899 = vmatprep.subr.mxu1 %v4478_v52  ;;  %5934 = vmatprep.subr.mxu0 %v4510_v25  ;;  %v4829_v62 = vld [vmem:[#allocation13 + $0x240] sm:$0xff]  ;;  %v4832_v52 = vld [vmem:[#allocation13 + $0x258] sm:$0xff] }
 0x509   : > { %5900 = vmatpush3.msra.mxu1 %v4462_v59  ;;  %5935 = vmatpush3.msra.mxu0 %v4494_v14  ;;  %v4824_v25 = vld [vmem:[#allocation13 + $0x218] sm:$0xff]  ;;  %v4831_v59 = vld [vmem:[#allocation13 + $0x250] sm:$0xff] }
 0x50a   : > { %5901 = vmatprep.subr.mxu1 %v4477_v8  ;;  %5936 = vmatprep.subr.mxu0 %v4509_v44  ;;  %v4823_v14 = vld [vmem:[#allocation13 + $0x210] sm:$0xff]  ;;  %v4826_v8 = vld [vmem:[#allocation13 + $0x228] sm:$0xff] }
 0x50b   : > { %5902 = vmatpush3.msra.mxu1 %v4461_v18  ;;  %5937 = vmatpush3.msra.mxu0 %v4493_v32  ;;  %v4818_v44 = vld [vmem:[#allocation13 + $0x1e8] sm:$0xff]  ;;  %v4825_v18 = vld [vmem:[#allocation13 + $0x220] sm:$0xff] }
 0x50c   : > { %5903 = vmatprep.subr.mxu1 %v4476_v61  ;;  %5938 = vmatprep.subr.mxu0 %v4508_v48  ;;  %v4817_v32 = vld [vmem:[#allocation13 + $0x1e0] sm:$0xff]  ;;  %v4820_v61 = vld [vmem:[#allocation13 + $0x1f8] sm:$0xff] }
 0x50d   : > { %5904 = vmatpush3.msra.mxu1 %v4460_v39  ;;  %4665 = vmatprep.mubr.f32.mxu1 %v4425_v16  ;;  %v4812_v48 = vld [vmem:[#allocation13 + $0x1b8] sm:$0xff]  ;;  %v4819_v39 = vld [vmem:[#allocation13 + $0x1f0] sm:$0xff] }
 0x50e   : > { %5939 = vmatpush3.msra.mxu0 %v4492_v51  ;;  %4735 = vmatprep.mubr.f32.mxu0 %v4427_v9  ;;  %v4811_v16 = vld [vmem:[#allocation13 + $0x1b0] sm:$0xff]  ;;  %v4814_v51 = vld [vmem:[#allocation13 + $0x1c8] sm:$0xff] }
 0x50f   : > { %4666 = vmatmul.mubr.f32.vlgmr.msra.gmra.mxu1 %v4424_v34  ;;  %4736 = vmatmul.mubr.f32.vlgmr.msra.gmra.mxu0 %v4426_v50  ;;  %v4806_v9 = vld [vmem:[#allocation13 + $0x188] sm:$0xff]  ;;  %v4813_v34 = vld [vmem:[#allocation13 + $0x1c0] sm:$0xff] }
 0x510   : > { %4949 = vmatprep.mubr.f32.mxu1 %v8849_v26  ;;  %5020 = vmatprep.mubr.f32.mxu0 %v8849_v26  ;;  %v4805_v50 = vld [vmem:[#allocation13 + $0x180] sm:$0xff] }
 0x511   : > { %4885 = vmatprep.subr.mxu1 %v4848_v7  ;;  %4956 = vmatprep.subr.mxu0 %v4850_v10  ;;  %v4784_v7 = vld [vmem:[#allocation13 + $0xd8] sm:$0xff]  ;;  %v4783_v10 = vld [vmem:[#allocation13 + $0xd0] sm:$0xff] }
 0x512   : > { %4886 = vmatpush1.msra.mxu1 %v4847_v35  ;;  %4957 = vmatpush1.msra.mxu0 %v4849_v63  ;;  %v4776_v35 = vld [vmem:[#allocation13 + $0x98] sm:$0xff]  ;;  %v4778_v63 = vld [vmem:[#allocation13 + $0xa8] sm:$0xff] }
 0x513   : > { %4887 = vmatprep.subr.mxu1 %v4842_v4  ;;  %4958 = vmatprep.subr.mxu0 %v4844_v29  ;;  %v4775_v4 = vld [vmem:[#allocation13 + $0x90] sm:$0xff]  ;;  %v4772_v29 = vld [vmem:[#allocation13 + $0x78] sm:$0xff] }
 0x514   : > { %4888 = vmatpush1.msra.mxu1 %v4841_v20  ;;  %4959 = vmatpush1.msra.mxu0 %v4843_v23  ;;  %v4769_v20 = vld [vmem:[#allocation13 + $0x60] sm:$0xff]  ;;  %v4766_v23 = vld [vmem:[#allocation13 + $0x48] sm:$0xff] }
 0x515   : > { %4889 = vmatprep.subr.mxu1 %v4836_v60  ;;  %4960 = vmatprep.subr.mxu0 %v4838_v11  ;;  %v4763_v60 = vld [vmem:[#allocation13 + $0x30] sm:$0xff]  ;;  %v4760_v11 = vld [vmem:[#allocation13 + $0x18] sm:$0xff] }
 0x516   : > { %4890 = vmatpush1.msra.mxu1 %v4835_v2  ;;  %4961 = vmatpush1.msra.mxu0 %v4837_v38  ;;  %v4757_v2 = vld [vmem:[#allocation13] sm:$0xff]  ;;  %v4852_v38 = vld [vmem:[#allocation13 + $0x2f8] sm:$0xff] }
 0x517   : > { %4891 = vmatprep.subr.mxu1 %v4830_v0  ;;  %4962 = vmatprep.subr.mxu0 %v4832_v52  ;;  %v4759_v0 = vld [vmem:[#allocation13 + $0x10] sm:$0xff] }
 0x518   : > { %4892 = vmatpush1.msra.mxu1 %v4829_v62  ;;  %4963 = vmatpush1.msra.mxu0 %v4831_v59 }
 0x519   : > { %4893 = vmatprep.subr.mxu1 %v4824_v25  ;;  %4964 = vmatprep.subr.mxu0 %v4826_v8 }
 0x51a   : > { %4894 = vmatpush1.msra.mxu1 %v4823_v14  ;;  %4965 = vmatpush1.msra.mxu0 %v4825_v18 }
 0x51b   : > { %4895 = vmatprep.subr.mxu1 %v4818_v44  ;;  %4966 = vmatprep.subr.mxu0 %v4820_v61 }
 0x51c   : > { %4896 = vmatpush1.msra.mxu1 %v4817_v32  ;;  %4967 = vmatpush1.msra.mxu0 %v4819_v39 }
 0x51d   : > { %4897 = vmatprep.subr.mxu1 %v4812_v48  ;;  %4968 = vmatprep.subr.mxu0 %v4814_v51  ;;  %v8865_v48 = vld [vmem:[#allocation31_spill] sm:$0xff] }
 0x51e   : > { %4898 = vmatpush1.msra.mxu1 %v4811_v16  ;;  %4969 = vmatpush1.msra.mxu0 %v4813_v34  ;;  %v4096_v39 = vrot.slane %v8451_v33, %v8865_v48 }
 0x51f   : > { %4899 = vmatprep.subr.mxu1 %v4806_v9 }
 0x520   : > { %4900 = vmatpush1.msra.mxu1 %v4805_v50  ;;  %v8866_v50 = vld [vmem:[#allocation32_spill] sm:$0xff] }
 0x54f   : > { %v4173_v1 = vpop.f32.mrf.mxu1  ;;  %v4268_v27 = vpop.f32.mrf.mxu0 }
 0x550   : > { %v4174_v19 = vadd.f32 %v4173_v1, %v8455_v15  ;;  %v4269_v37 = vadd.f32 %v4268_v27, %v8459_v22  ;;  %v4808_v1 = vld [vmem:[#allocation13 + $0x198] sm:$0xff] }
 0x551   : > { %v4175_v43 = vpop.f32.mrf.mxu1  ;;  %v4270_v49 = vpop.f32.mrf.mxu0  ;;  %4970 = vmatprep.subr.mxu0 %v4808_v1  ;;  %v4800_v27 = vld [vmem:[#allocation13 + $0x158] sm:$0xff]  ;;  %v4100_v1 = vrot.slane %v8451_v33, %v8866_v50 }
 0x552   : > { %4392 = vst [vmem:[%s8474_s30] sm:$0xff] %v4174_v19  ;;  %4394 = vst [vmem:[%s8474_s30 + $0x10] sm:$0xff] %v4269_v37  ;;  %v4176_v42 = vadd.f32 %v4175_v43, %v8463_v21  ;;  %v4271_v45 = vadd.f32 %v4270_v49, %v8467_v5  ;;  %v4807_v19 = vld [vmem:[#allocation13 + $0x190] sm:$0xff]  ;;  %4901 = vmatprep.subr.mxu1 %v4800_v27  ;;  %v4802_v43 = vld [vmem:[#allocation13 + $0x168] sm:$0xff] }
 0x553   : > { %4971 = vmatpush1.msra.mxu0 %v4807_v19  ;;  %v4799_v37 = vld [vmem:[#allocation13 + $0x150] sm:$0xff]  ;;  %v4794_v49 = vld [vmem:[#allocation13 + $0x128] sm:$0xff] }
 0x554   : > { %4393 = vst [vmem:[%s8474_s30 + $0x8] sm:$0xff] %v4176_v42  ;;  %4395 = vst [vmem:[%s8474_s30 + $0x18] sm:$0xff] %v4271_v45  ;;  %4902 = vmatpush1.msra.mxu1 %v4799_v37  ;;  %4972 = vmatprep.subr.mxu0 %v4802_v43  ;;  %v4801_v42 = vld [vmem:[#allocation13 + $0x160] sm:$0xff] }
 0x555   : > { %4903 = vmatprep.subr.mxu1 %v4794_v49  ;;  %4973 = vmatpush1.msra.mxu0 %v4801_v42  ;;  %v4793_v45 = vld [vmem:[#allocation13 + $0x120] sm:$0xff] }
 0x556   : > { %4904 = vmatpush1.msra.mxu1 %v4793_v45 }
 0x566   : > { %v4179_v57 = vpop.f32.mrf.mxu1  ;;  %v4274_v40 = vpop.f32.mrf.mxu0 }
 0x567   : > { %v4180_v30 = vadd.f32 %v4179_v57, %v8455_v15  ;;  %v4275_v53 = vadd.f32 %v4274_v40, %v8459_v22  ;;  %v4796_v57 = vld [vmem:[#allocation13 + $0x138] sm:$0xff] }
 0x568   : > { %v4181_v36 = vpop.f32.mrf.mxu1  ;;  %v4276_v31 = vpop.f32.mrf.mxu0  ;;  %4974 = vmatprep.subr.mxu0 %v4796_v57  ;;  %v4788_v40 = vld [vmem:[#allocation13 + $0xf8] sm:$0xff] }
 0x569   : > { %4398 = vst [vmem:[%s8474_s30 + $0x30] sm:$0xff] %v4180_v30  ;;  %4400 = vst [vmem:[%s8474_s30 + $0x40] sm:$0xff] %v4275_v53  ;;  %v4182_v54 = vadd.f32 %v4181_v36, %v8463_v21  ;;  %v4277_v55 = vadd.f32 %v4276_v31, %v8467_v5  ;;  %v4795_v30 = vld [vmem:[#allocation13 + $0x130] sm:$0xff]  ;;  %4905 = vmatprep.subr.mxu1 %v4788_v40  ;;  %v4790_v36 = vld [vmem:[#allocation13 + $0x108] sm:$0xff] }
 0x56a   : > { %4975 = vmatpush1.msra.mxu0 %v4795_v30  ;;  %v4787_v53 = vld [vmem:[#allocation13 + $0xf0] sm:$0xff]  ;;  %v4782_v31 = vld [vmem:[#allocation13 + $0xc8] sm:$0xff] }
 0x56b   : > { %4399 = vst [vmem:[%s8474_s30 + $0x38] sm:$0xff] %v4182_v54  ;;  %4401 = vst [vmem:[%s8474_s30 + $0x48] sm:$0xff] %v4277_v55  ;;  %4906 = vmatpush1.msra.mxu1 %v4787_v53  ;;  %4976 = vmatprep.subr.mxu0 %v4790_v36  ;;  %v4789_v54 = vld [vmem:[#allocation13 + $0x100] sm:$0xff] }
 0x56c   : > { %4907 = vmatprep.subr.mxu1 %v4782_v31  ;;  %4977 = vmatpush1.msra.mxu0 %v4789_v54  ;;  %v4781_v55 = vld [vmem:[#allocation13 + $0xc0] sm:$0xff] }
 0x56d   : > { %4908 = vmatpush1.msra.mxu1 %v4781_v55  ;;  %4978 = vmatprep.subr.mxu0 %v4784_v7 }
 0x56e   : > { %4909 = vmatprep.subr.mxu1 %v4776_v35  ;;  %4979 = vmatpush1.msra.mxu0 %v4783_v10 }
 0x56f   : > { %4910 = vmatpush1.msra.mxu1 %v4775_v4  ;;  %4980 = vmatprep.subr.mxu0 %v4778_v63  ;;  %v5381_v4 = vld [vmem:[%s8602_s16] ss:$0 sm:$0xff] }
 0x589   : > { %v4185_v24 = vpop.f32.mrf.mxu1  ;;  %v4280_v56 = vpop.f32.mrf.mxu0 }
 0x58a   : > { %v4186_v3 = vadd.f32 %v4185_v24, %v8455_v15  ;;  %v4281_v41 = vadd.f32 %v4280_v56, %v8459_v22  ;;  %v4770_v24 = vld [vmem:[#allocation13 + $0x68] sm:$0xff]  ;;  %v4777_v56 = vld [vmem:[#allocation13 + $0xa0] sm:$0xff] }
 0x58b   : > { %v4187_v58 = vpop.f32.mrf.mxu1  ;;  %v4282_v12 = vpop.f32.mrf.mxu0  ;;  %4911 = vmatprep.subr.mxu1 %v4770_v24  ;;  %4981 = vmatpush1.msra.mxu0 %v4777_v56 }
 0x58c   : > { %4404 = vst [vmem:[%s8474_s30 + $0x60] sm:$0xff] %v4186_v3  ;;  %4406 = vst [vmem:[%s8474_s30 + $0x70] sm:$0xff] %v4281_v41  ;;  %v4188_v46 = vadd.f32 %v4187_v58, %v8463_v21  ;;  %v4283_v13 = vadd.f32 %v4282_v12, %v8467_v5  ;;  %v4764_v3 = vld [vmem:[#allocation13 + $0x38] sm:$0xff]  ;;  %v4771_v41 = vld [vmem:[#allocation13 + $0x70] sm:$0xff]  ;;  %4912 = vmatpush1.msra.mxu1 %v4769_v20  ;;  %4982 = vmatprep.subr.mxu0 %v4772_v29 }
 0x58d   : > { %v4758_v58 = vld [vmem:[#allocation13 + $0x8] sm:$0xff]  ;;  %4913 = vmatprep.subr.mxu1 %v4764_v3  ;;  %4983 = vmatpush1.msra.mxu0 %v4771_v41  ;;  %v4765_v12 = vld [vmem:[#allocation13 + $0x40] sm:$0xff] }
 0x58e   : > { %4405 = vst [vmem:[%s8474_s30 + $0x68] sm:$0xff] %v4188_v46  ;;  %4407 = vst [vmem:[%s8474_s30 + $0x78] sm:$0xff] %v4283_v13  ;;  %4914 = vmatpush1.msra.mxu1 %v4763_v60  ;;  %4984 = vmatprep.subr.mxu0 %v4766_v23 }
 0x58f   : > { %4915 = vmatprep.subr.mxu1 %v4758_v58  ;;  %4985 = vmatpush1.msra.mxu0 %v4765_v12 }
 0x590   : > { %4916 = vmatpush1.msra.mxu1 %v4757_v2  ;;  %4986 = vmatprep.subr.mxu0 %v4760_v11 }
 0x591   : > { %4987 = vmatpush1.msra.mxu0 %v4759_v0  ;;  %5027 = vmatprep.subr.mxu1 %v4852_v38 }
 0x5a2   : > { %v4191_v46 = vpop.f32.mrf.mxu1  ;;  %v4286_v13 = vpop.f32.mrf.mxu0 }
 0x5a3   : > { %v4192_v62 = vadd.f32 %v4191_v46, %v8455_v15  ;;  %v4287_v52 = vadd.f32 %v4286_v13, %v8459_v22 }
 0x5a4   : > { %v4193_v25 = vpop.f32.mrf.mxu1  ;;  %v4288_v59 = vpop.f32.mrf.mxu0 }
 0x5a5   : > { %4410 = vst [vmem:[%s8474_s30 + $0x90] sm:$0xff] %v4192_v62  ;;  %4412 = vst [vmem:[%s8474_s30 + $0xa0] sm:$0xff] %v4287_v52  ;;  %v4194_v14 = vadd.f32 %v4193_v25, %v8463_v21  ;;  %v4289_v8 = vadd.f32 %v4288_v59, %v8467_v5 }
 0x5a6   : > { %v4197_v44 = vpop.f32.mrf.mxu1  ;;  %v4292_v18 = vpop.f32.mrf.mxu0 }
 0x5a7   : > { %4411 = vst [vmem:[%s8474_s30 + $0x98] sm:$0xff] %v4194_v14  ;;  %4413 = vst [vmem:[%s8474_s30 + $0xa8] sm:$0xff] %v4289_v8  ;;  %v4198_v32 = vadd.f32 %v4197_v44, %v8455_v15  ;;  %v4293_v61 = vadd.f32 %v4292_v18, %v8459_v22  ;;  %v4851_v14 = vld [vmem:[#allocation13 + $0x2f0] sm:$0xff]  ;;  %v4846_v8 = vld [vmem:[#allocation13 + $0x2c8] sm:$0xff] }
 0x5a8   : > { %v4199_v16 = vpop.f32.mrf.mxu1  ;;  %v4294_v51 = vpop.f32.mrf.mxu0  ;;  %v4845_v44 = vld [vmem:[#allocation13 + $0x2c0] sm:$0xff]  ;;  %v4840_v18 = vld [vmem:[#allocation13 + $0x298] sm:$0xff] }
 0x5a9   : > { %4416 = vst [vmem:[%s8474_s30 + $0xc0] sm:$0x1] %v4198_v32  ;;  %4418 = vst [vmem:[%s8474_s30 + $0xd0] sm:$0x1] %v4293_v61  ;;  %v4200_v9 = vadd.f32 %v4199_v16, %v8463_v21  ;;  %v4295_v34 = vadd.f32 %v4294_v51, %v8467_v5  ;;  %v4839_v32 = vld [vmem:[#allocation13 + $0x290] sm:$0xff]  ;;  %v4834_v61 = vld [vmem:[#allocation13 + $0x268] sm:$0xff] }
 0x5aa   : > { %v4363_v15 = vpop.f32.mrf.mxu1  ;;  %v5870_v7 = vpop.f32.mrf.mxu0  ;;  %v4828_v16 = vld [vmem:[#allocation13 + $0x238] sm:$0xff]  ;;  %v4827_v51 = vld [vmem:[#allocation13 + $0x230] sm:$0xff] }
 0x5ab   : > { %4417 = vst [vmem:[%s8474_s30 + $0xc8] sm:$0x1] %v4200_v9  ;;  %4419 = vst [vmem:[%s8474_s30 + $0xd8] sm:$0x1] %v4295_v34  ;;  %v4364_v22 = vadd.f32 %v4363_v15, %v4096_v39  ;;  %v4822_v9 = vld [vmem:[#allocation13 + $0x208] sm:$0xff]  ;;  %v4821_v34 = vld [vmem:[#allocation13 + $0x200] sm:$0xff] }
 0x5ac   : > { %v4365_v27 = vpop.f32.mrf.mxu1  ;;  %v5871_v35 = vpop.f32.mrf.mxu0  ;;  %v4815_v15 = vld [vmem:[#allocation13 + $0x1d0] sm:$0xff] }
 0x5ad   : > { %4396 = vst [vmem:[%s8474_s30 + $0x20] sm:$0xff] %v4364_v22  ;;  %v4366_v19 = vadd.f32 %v4365_v27, %v4100_v1  ;;  %v5872_v10 = vadd.f32 %v5871_v35, %v5870_v7  ;;  %v4809_v22 = vld [vmem:[#allocation13 + $0x1a0] sm:$0xff]  ;;  %v4804_v27 = vld [vmem:[#allocation13 + $0x178] sm:$0xff] }
 0x5ae   : > { %v4369_v37 = vpop.f32.mrf.mxu1 }
 0x5af   : > { %4397 = vst [vmem:[%s8474_s30 + $0x28] sm:$0xff] %v4366_v19  ;;  %v4370_v43 = vadd.f32 %v4369_v37, %v4096_v39  ;;  %v4598_v29 = vadd.f32 %v5872_v10, %v5381_v4  ;;  %v4803_v19 = vld [vmem:[#allocation13 + $0x170] sm:$0xff]  ;;  %v4798_v37 = vld [vmem:[#allocation13 + $0x148] sm:$0xff] }
 0x5b0   : > { %v4371_v21 = vpop.f32.mrf.mxu1 }
 0x5b1   : > { %4402 = vst [vmem:[%s8474_s30 + $0x50] sm:$0xff] %v4370_v43  ;;  %v4372_v5 = vadd.f32 %v4371_v21, %v4100_v1  ;;  %v4797_v43 = vld [vmem:[#allocation13 + $0x140] sm:$0xff]  ;;  %v4792_v21 = vld [vmem:[#allocation13 + $0x118] sm:$0xff] }
 0x5b3   : > { %4403 = vst [vmem:[%s8474_s30 + $0x58] sm:$0xff] %v4372_v5  ;;  %v4375_v33 = vpop.f32.mrf.mxu1  ;;  %v4791_v5 = vld [vmem:[#allocation13 + $0x110] sm:$0xff] }
 0x5b4   : > { %v4376_v49 = vadd.f32 %v4375_v33, %v4096_v39  ;;  %v4786_v33 = vld [vmem:[#allocation13 + $0xe8] sm:$0xff] }
 0x5b5   : > { %v4377_v42 = vpop.f32.mrf.mxu1 }
 0x5b6   : > { %4408 = vst [vmem:[%s8474_s30 + $0x80] sm:$0xff] %v4376_v49  ;;  %v4378_v45 = vadd.f32 %v4377_v42, %v4100_v1  ;;  %v4785_v49 = vld [vmem:[#allocation13 + $0xe0] sm:$0xff]  ;;  %v4780_v42 = vld [vmem:[#allocation13 + $0xb8] sm:$0xff] }
 0x5b8   : > { %4409 = vst [vmem:[%s8474_s30 + $0x88] sm:$0xff] %v4378_v45  ;;  %v4381_v57 = vpop.f32.mrf.mxu1  ;;  %v4779_v45 = vld [vmem:[#allocation13 + $0xb0] sm:$0xff] }
 0x5b9   : > { %v4382_v40 = vadd.f32 %v4381_v57, %v4096_v39  ;;  %v4774_v57 = vld [vmem:[#allocation13 + $0x88] sm:$0xff] }
 0x5ba   : > { %v4383_v30 = vpop.f32.mrf.mxu1 }
 0x5bb   : > { %4414 = vst [vmem:[%s8474_s30 + $0xb0] sm:$0xff] %v4382_v40  ;;  %v4384_v53 = vadd.f32 %v4383_v30, %v4100_v1  ;;  %v4773_v40 = vld [vmem:[#allocation13 + $0x80] sm:$0xff]  ;;  %v4768_v30 = vld [vmem:[#allocation13 + $0x58] sm:$0xff] }
 0x5bd   : > { %4415 = vst [vmem:[%s8474_s30 + $0xb8] sm:$0xff] %v4384_v53  ;;  %v4387_v36 = vpop.f32.mrf.mxu1  ;;  %v4767_v53 = vld [vmem:[#allocation13 + $0x50] sm:$0xff] }
 0x5be   : > { %v4388_v31 = vadd.f32 %v4387_v36, %v4096_v39  ;;  %v4833_v39 = vld [vmem:[#allocation13 + $0x260] sm:$0xff]  ;;  %v4762_v36 = vld [vmem:[#allocation13 + $0x28] sm:$0xff] }
 0x5bf   : > { %v4389_v54 = vpop.f32.mrf.mxu1 }
 0x5c0   : > { %4420 = vst [vmem:[%s8474_s30 + $0xe0] sm:$0x1] %v4388_v31  ;;  %v4390_v55 = vadd.f32 %v4389_v54, %v4100_v1  ;;  %v4816_v1 = vld [vmem:[#allocation13 + $0x1d8] sm:$0xff]  ;;  %v4761_v31 = vld [vmem:[#allocation13 + $0x20] sm:$0xff]  ;;  %v4853_v54 = vld [vmem:[%s8604_s18] sm:$0x3f] }
 0x5c1   : > { %v4866_v7 = vrot.slane %v4853_v54, %v8862_v28  ;;  %v4862_v35 = vrot.slane %v4853_v54, %v8863_v47  ;;  %v4870_v10 = vrot.slane %v4853_v54, %v8864_v6  ;;  %v4878_v28 = vrot.slane %v4853_v54, %v8866_v50 }
 0x5c2   : > { %4421 = vst [vmem:[%s8474_s30 + $0xe8] sm:$0x1] %v4390_v55  ;;  %v4858_v55 = vrot.slane %v4853_v54, %v8861_v17  ;;  %v4874_v17 = vrot.slane %v4853_v54, %v8865_v48  ;;  %s5133_s30 = scalar_lea.hbm %s8867_s21, %s6017_s24 }
 0x5cf   : > { %v5905_v63 = vpop.f32.mrf.mxu1  ;;  %v5940_v24 = vpop.f32.mrf.mxu0 }
 0x5d1   : > { %v5906_v56 = vpop.f32.mrf.mxu1  ;;  %v5941_v20 = vpop.f32.mrf.mxu0 }
 0x5d2   : > { %v5907_v3 = vadd.f32 %v5906_v56, %v5905_v63  ;;  %v5942_v60 = vadd.f32 %v5941_v20, %v5940_v24 }
 0x5d4   : > { %v4668_v41 = vadd.f32 %v5907_v3, %v4598_v29 }
 0x5d6   : > { %v4738_v23 = vadd.f32 %v5942_v60, %v4668_v41 }
 0x5d8   : > { %v5382_v58 = vmul.f32 -1.702, %v4738_v23 }
 0x5da   : > { %v4743_v12 = vmul.f32 1.442695, %v5382_v58 }
 0x5dc   : > { %6199 = vpow2.f32 %v4743_v12 }
 0x5e9   : > { %v6200_v2 = vpop.eup %6199 }
 0x5ea   : > { %v4745_v11 = vadd.f32 1.0, %v6200_v2 }
 0x5ec   : > { %6201 = vrcp.f32 %v4745_v11 }
 0x5f9   : > { %v6202_v46 = vpop.eup %6201 }
 0x5fa   : > { %v4748_v13 = vmul.f32 %v6202_v46, %v4738_v23 }
 0x5fc   : > { %v5383_v0 = vmul.f32 -1.702, %v4748_v13 }
 0x5fe   : > { %v4751_v38 = vmul.f32 1.442695, %v5383_v0 }
 0x600   : > { %6203 = vpow2.f32 %v4751_v38 }
 0x60d   : > { %v6204_v62 = vpop.eup %6203 }
 0x60e   : > { %v4753_v52 = vadd.f32 1.0, %v6204_v62 }
 0x610   : > { %6205 = vrcp.f32 %v4753_v52 }
 0x61d   : > { %v6206_v25 = vpop.eup %6205 }
 0x61e   : > { %v8533_v59 = vmul.f32 %v6206_v25, %v4748_v13 }
 0x620   : > { %4950 = vmatmul.mubr.f32.vlgmr.msra.gmra.mxu1 %v8533_v59  ;;  %5021 = vmatmul.mubr.f32.vlgmr.msra.gmra.mxu0 %v8533_v59 }
 0x621   : > { %5028 = vmatpush1.msra.mxu1 %v4851_v14  ;;  %5091 = vmatprep.mubr.f32.mxu1 %v8849_v26  ;;  %v4810_v26 = vld [vmem:[#allocation13 + $0x1a8] sm:$0xff] }
 0x622   : > { %5029 = vmatprep.subr.mxu1 %v4846_v8 }
 0x623   : > { %5030 = vmatpush1.msra.mxu1 %v4845_v44 }
 0x624   : > { %5031 = vmatprep.subr.mxu1 %v4840_v18 }
 0x625   : > { %5032 = vmatpush1.msra.mxu1 %v4839_v32 }
 0x626   : > { %5033 = vmatprep.subr.mxu1 %v4834_v61 }
 0x627   : > { %5034 = vmatpush1.msra.mxu1 %v4833_v39 }
 0x628   : > { %5035 = vmatprep.subr.mxu1 %v4828_v16 }
 0x629   : > { %5036 = vmatpush1.msra.mxu1 %v4827_v51 }
 0x62a   : > { %5037 = vmatprep.subr.mxu1 %v4822_v9 }
 0x62b   : > { %5038 = vmatpush1.msra.mxu1 %v4821_v34 }
 0x62c   : > { %5039 = vmatprep.subr.mxu1 %v4816_v1 }
 0x62d   : > { %5040 = vmatpush1.msra.mxu1 %v4815_v15 }
 0x62e   : > { %5041 = vmatprep.subr.mxu1 %v4810_v26 }
 0x62f   : > { %5042 = vmatpush1.msra.mxu1 %v4809_v22 }
 0x630   : > { %5043 = vmatprep.subr.mxu1 %v4804_v27 }
 0x631   : > { %5044 = vmatpush1.msra.mxu1 %v4803_v19 }
 0x632   : > { %5045 = vmatprep.subr.mxu1 %v4798_v37 }
 0x633   : > { %5046 = vmatpush1.msra.mxu1 %v4797_v43 }
 0x634   : > { %5047 = vmatprep.subr.mxu1 %v4792_v21 }
 0x635   : > { %5048 = vmatpush1.msra.mxu1 %v4791_v5 }
 0x636   : > { %5049 = vmatprep.subr.mxu1 %v4786_v33 }
 0x637   : > { %5050 = vmatpush1.msra.mxu1 %v4785_v49 }
 0x638   : > { %5051 = vmatprep.subr.mxu1 %v4780_v42 }
 0x639   : > { %5052 = vmatpush1.msra.mxu1 %v4779_v45 }
 0x63a   : > { %5053 = vmatprep.subr.mxu1 %v4774_v57 }
 0x63b   : > { %5054 = vmatpush1.msra.mxu1 %v4773_v40 }
 0x63c   : > { %5055 = vmatprep.subr.mxu1 %v4768_v30 }
 0x63d   : > { %5056 = vmatpush1.msra.mxu1 %v4767_v53 }
 0x63e   : > { %5057 = vmatprep.subr.mxu1 %v4762_v36 }
 0x63f   : > { %5058 = vmatpush1.msra.mxu1 %v4761_v31 }
 0x640   : > { %5092 = vmatmul.mubr.f32.vlgmr.msra.gmra.mxu1 %v8533_v59 }
 0x6e0   : > { %v4951_v4 = vpop.f32.mrf.mxu1  ;;  %v5022_v63 = vpop.f32.mrf.mxu0 }
 0x6e1   : > { %v4952_v24 = vadd.f32 %v4951_v4, %v4858_v55  ;;  %v5023_v56 = vadd.f32 %v5022_v63, %v4866_v7 }
 0x6e2   : > { %v4953_v20 = vpop.f32.mrf.mxu1  ;;  %v5024_v29 = vpop.f32.mrf.mxu0 }
 0x6e3   : > { %5098 = vst [vmem:[%s782_s7] sm:$0xff] %v4952_v24  ;;  %5100 = vst [vmem:[%s782_s7 + $0x10] sm:$0xff] %v5023_v56  ;;  %v4954_v3 = vadd.f32 %v4953_v20, %v4862_v35  ;;  %v5025_v41 = vadd.f32 %v5024_v29, %v4870_v10 }
 0x6e5   : > { %5099 = vst [vmem:[%s782_s7 + $0x8] sm:$0xff] %v4954_v3  ;;  %5101 = vst [vmem:[%s782_s7 + $0x18] sm:$0xff] %v5025_v41 }
 0x700   : > { %v5093_v47 = vpop.f32.mrf.mxu1 }
 0x701   : > { %v5094_v6 = vadd.f32 %v5093_v47, %v4874_v17 }
 0x702   : > { %v5095_v60 = vpop.f32.mrf.mxu1 }
 0x703   : > { %5102 = vst [vmem:[%s782_s7 + $0x20] sm:$0xff] %v5094_v6  ;;  %v5096_v23 = vadd.f32 %v5095_v60, %v4878_v28 }
 0x705   : > { %5103 = vst [vmem:[%s782_s7 + $0x28] sm:$0xff] %v5096_v23 }
 0x706   : > { %6378 = shalt.err (!%p6375_p0)
}
 0x707   : > { %s6379_s2 = scalar_lea.hbm %s5133_s30, 768  ;;  %s6383_s24 = scalar_lea.hbm %s8867_s21, 1536 }
 0x708   : > { %p6380_p3 = scmp.ne.s32.totalorder %s5133_s30, %s6379_s2  ;;  %p6384_p1 = scmp.lt.s32.totalorder %s5133_s30, %s8867_s21 }
 0x709   : > { %p6385_p2 = scmp.lt.s32.totalorder %s6383_s24, %s6379_s2 }
 0x70a   : > { %p6381_p12 = pnand %p6380_p3, %p6604_p5 }
 0x70b   : > { %p6386_p9 = por %p6385_p2, %p6384_p1 }
 0x70c   : > { %p6382_p10 = pneg %p6381_p12 }
 0x70e   : > { %p6387_p4 = pnand %p6386_p9, %p6382_p10 }
 0x710   : > { %6390 = shalt.err (!%p6387_p4)
}
 0x711   : > { %6042 = dma.vmem_to_hbm [thread:$0]  (%p6604_p5), %s5136_s0, 768, %s5133_s30, %s5115_s29  }
 0x712 PF: > { %s8868_s28 = sld [smem:[#allocation23_spill]] }
 0x713   : > { %s8869_s3 = sld [smem:[#allocation21_spill]] }
 0x718   : > { %p6079_p8 = scmp.ge.s32.totalorder %s8868_s28, 2 }
 0x719   : > { %s5163_s22 = sand.u32 1, %s8869_s3  }
 0x71a   : > { %p6064_p13 = pnand %p6079_p8, %p6608_p6  ;;  %s5164_s23 = scalar_lea.sflag [#allocation6], %s5163_s22 }
 0x71c   : > { %p6065_p7 = pneg %p6064_p13 }
 0x71e   : > { %6424 = dma.done.wait (%p6065_p7), %s5164_s23, 768  }
 0x71f   : > { %6426 = vsyncadd (%p6065_p7), %s5164_s23, 4294966528  ;;  %s8871_s27 = sld [smem:[#allocation24_spill]]  ;;  %s8874_s2 = smov %s6433_s25 }
 0x720   : > { %s8872_s7 = sld [smem:[#allocation22_spill]] }
 0x721   : > { %s8873_s26 = sld [smem:[#allocation25_spill]] }
 0x725   : > { %p36_p11 = scmp.ge.s32.totalorder %s8871_s27, 4  }
 0x726   : > { %s8875_s25 = smov %s8872_s7 }
 0x727   :  { %38 = sbr.rel (!%p36_p11) target bundleno = 16 (0x10), region = 190 }
 0x72c   :  { %5169 = vsyncpa [#allocation5], 1 }
 0x72d   :  { %5171 = vsyncpa [#allocation5 + $0x1], 1 }
 0x72e   :  { %5172 = vsyncpa [#allocation8], 1 }
 0x72f   :  { %5173 = vsyncpa [#allocation11], 1 }
 0x730   :  { %5174 = vsyncpa [#allocation14], 1 }
 0x731   :  { %5175 = vsyncpa [#allocation6], 1 }
 0x732   :  { %5177 = vsyncpa [#allocation6 + $0x1], 1 }

</bundles_post_ra>
